<compile_context>
chip_gen: v7x
topology: tpu7x:2x2x1
jax: 0.10.0
libtpu: 0.0.40
codegen_flags: <defaults>
</compile_context>

<pallas_src>
import math
import functools

import jax
import jax.numpy as jnp
from jax.experimental import pallas as pl
from jax.experimental.pallas import tpu as pltpu

NEG_INF = -1e9          # additive mask value (finite -> no NaN in softmax)
LN_EPS = 1e-5
# Conservative scoped-VMEM budget: fits v5e/v6e (128 MiB physical) and v7x (64 MiB).
VMEM_LIMIT_BYTES = 32 * 1024 * 1024


def _cparams(*sems):
    return pltpu.CompilerParams(dimension_semantics=sems,
                                vmem_limit_bytes=VMEM_LIMIT_BYTES)


def _choose_tile(dim, target):
    """Largest tile <= target that evenly divides dim (prefers 128-multiples)."""
    if dim <= target:
        return dim
    t = (target // 128) * 128
    while t >= 128:
        if dim % t == 0:
            return t
        t -= 128
    return dim


# ----------------------------------------------------------------------------
# Shared in-kernel helpers (f32 math, bf16 MXU inputs)
# ----------------------------------------------------------------------------
def _layernorm(z, g, b, eps):
    mu = jnp.mean(z, axis=-1, keepdims=True)
    d = z - mu
    var = jnp.mean(d * d, axis=-1, keepdims=True)
    return d * jax.lax.rsqrt(var + eps) * g + b


def _proj(xb, w, b):
    """xb: (M, E) bf16, w: (Dh, E), b: (1, Dh) -> (M, Dh) f32  (x @ w.T + b)."""
    y = jax.lax.dot_general(xb, w.astype(jnp.bfloat16),
                            (((1,), (1,)), ((), ())),
                            preferred_element_type=jnp.float32)
    return y + b


def _head_attend(q, k, v, bias, wo_h, scale):
    """One attention head + its slice of the output projection.
    q: (Tq, Dh), k/v: (Tk, Dh) f32; bias broadcastable to (Tq, Tk);
    wo_h: (E, Dh).  Returns this head's (Tq, E) contribution to out_proj."""
    s = jax.lax.dot_general(q.astype(jnp.bfloat16), k.astype(jnp.bfloat16),
                            (((1,), (1,)), ((), ())),
                            preferred_element_type=jnp.float32) * scale + bias
    m = jnp.max(s, axis=-1, keepdims=True)
    p = jnp.exp(s - m)
    p = p * pl.reciprocal(jnp.sum(p, axis=-1, keepdims=True), approx=True)
    o = jnp.dot(p.astype(jnp.bfloat16), v.astype(jnp.bfloat16),
                preferred_element_type=jnp.float32)            # (Tq, Dh)
    return jax.lax.dot_general(o.astype(jnp.bfloat16), wo_h.astype(jnp.bfloat16),
                               (((1,), (1,)), ((), ())),
                               preferred_element_type=jnp.float32)   # (Tq, E)


# ----------------------------------------------------------------------------
# Fused self-attention block: QKV proj + MHA + out proj + residual + LayerNorm
# one grid step per batch element; all I/O lane-dense (T, E) blocks
# ----------------------------------------------------------------------------
def _self_attn_block_kernel(x_ref, wqkv_ref, bqkv_ref, wo_ref, bo_ref,
                            mask_ref, kp_ref, g_ref, bt_ref, o_ref,
                            *, nhead, scale, eps):
    x = x_ref[0]                                   # (T, E) f32
    xb = x.astype(jnp.bfloat16)
    bias = mask_ref[...] + kp_ref[0]               # (Tq,Tk) + (1,Tk) -> (Tq,Tk)
    z = x + bo_ref[...]                            # residual + out-proj bias
    for h in range(nhead):                         # static unrolled per-head loop
        q = _proj(xb, wqkv_ref[0, h], bqkv_ref[0, h])
        k = _proj(xb, wqkv_ref[1, h], bqkv_ref[1, h])
        v = _proj(xb, wqkv_ref[2, h], bqkv_ref[2, h])
        z = z + _head_attend(q, k, v, bias, wo_ref[h], scale)
    o_ref[0] = _layernorm(z, g_ref[...], bt_ref[...], eps)


def self_attn_block(x, p, nhead, attn_mask, kpm_add, ln_g, ln_b):
    """x: (N, T, E).  attn_mask: (T, T) additive.  kpm_add: (N, T) additive."""
    N, T, E = x.shape
    Dh = E // nhead
    wqkv = p["in_w"].reshape(3, nhead, Dh, E)
    bqkv = p["in_b"].reshape(3, nhead, 1, Dh)
    wo = p["out_w"].reshape(E, nhead, Dh).transpose(1, 0, 2)   # (H, E, Dh)
    return pl.pallas_call(
        functools.partial(_self_attn_block_kernel, nhead=nhead,
                          scale=1.0 / math.sqrt(Dh), eps=LN_EPS),
        out_shape=jax.ShapeDtypeStruct((N, T, E), jnp.float32),
        grid=(N,),
        in_specs=[
            pl.BlockSpec((1, T, E), lambda b: (b, 0, 0)),
            pl.BlockSpec((3, nhead, Dh, E), lambda b: (0, 0, 0, 0)),
            pl.BlockSpec((3, nhead, 1, Dh), lambda b: (0, 0, 0, 0)),
            pl.BlockSpec((nhead, E, Dh), lambda b: (0, 0, 0)),
            pl.BlockSpec((1, E), lambda b: (0, 0)),
            pl.BlockSpec((T, T), lambda b: (0, 0)),
            pl.BlockSpec((1, 1, T), lambda b: (b, 0, 0)),
            pl.BlockSpec((1, E), lambda b: (0, 0)),
            pl.BlockSpec((1, E), lambda b: (0, 0)),
        ],
        out_specs=pl.BlockSpec((1, T, E), lambda b: (b, 0, 0)),
        compiler_params=_cparams("parallel"),
    )(x, wqkv, bqkv, wo, p["out_b"].reshape(1, E), attn_mask,
      kpm_add.reshape(N, 1, T), ln_g.reshape(1, E), ln_b.reshape(1, E))


# ----------------------------------------------------------------------------
# Fused cross-attention block (memory_mask is None in the module)
# ----------------------------------------------------------------------------
def _cross_attn_block_kernel(x_ref, m_ref, wq_ref, bq_ref, wkv_ref, bkv_ref,
                             wo_ref, bo_ref, kp_ref, g_ref, bt_ref, o_ref,
                             *, nhead, scale, eps):
    x = x_ref[0]                                   # (T, E) f32
    xb = x.astype(jnp.bfloat16)
    mem = m_ref[0].astype(jnp.bfloat16)            # (S, E)
    bias = kp_ref[0]                               # (1, S) additive key padding
    z = x + bo_ref[...]
    for h in range(nhead):
        q = _proj(xb, wq_ref[h], bq_ref[h])
        k = _proj(mem, wkv_ref[0, h], bkv_ref[0, h])
        v = _proj(mem, wkv_ref[1, h], bkv_ref[1, h])
        z = z + _head_attend(q, k, v, bias, wo_ref[h], scale)
    o_ref[0] = _layernorm(z, g_ref[...], bt_ref[...], eps)


def cross_attn_block(x, memory, p, nhead, mem_kpm_add, ln_g, ln_b):
    """x: (N, T, E) decoder state, memory: (N, S, E), mem_kpm_add: (N, S)."""
    N, T, E = x.shape
    S = memory.shape[1]
    Dh = E // nhead
    wq = p["in_w"][:E].reshape(nhead, Dh, E)
    bq = p["in_b"][:E].reshape(nhead, 1, Dh)
    wkv = p["in_w"][E:].reshape(2, nhead, Dh, E)
    bkv = p["in_b"][E:].reshape(2, nhead, 1, Dh)
    wo = p["out_w"].reshape(E, nhead, Dh).transpose(1, 0, 2)   # (H, E, Dh)
    return pl.pallas_call(
        functools.partial(_cross_attn_block_kernel, nhead=nhead,
                          scale=1.0 / math.sqrt(Dh), eps=LN_EPS),
        out_shape=jax.ShapeDtypeStruct((N, T, E), jnp.float32),
        grid=(N,),
        in_specs=[
            pl.BlockSpec((1, T, E), lambda b: (b, 0, 0)),
            pl.BlockSpec((1, S, E), lambda b: (b, 0, 0)),
            pl.BlockSpec((nhead, Dh, E), lambda b: (0, 0, 0)),
            pl.BlockSpec((nhead, 1, Dh), lambda b: (0, 0, 0)),
            pl.BlockSpec((2, nhead, Dh, E), lambda b: (0, 0, 0, 0)),
            pl.BlockSpec((2, nhead, 1, Dh), lambda b: (0, 0, 0, 0)),
            pl.BlockSpec((nhead, E, Dh), lambda b: (0, 0, 0)),
            pl.BlockSpec((1, E), lambda b: (0, 0)),
            pl.BlockSpec((1, 1, S), lambda b: (b, 0, 0)),
            pl.BlockSpec((1, E), lambda b: (0, 0)),
            pl.BlockSpec((1, E), lambda b: (0, 0)),
        ],
        out_specs=pl.BlockSpec((1, T, E), lambda b: (b, 0, 0)),
        compiler_params=_cparams("parallel"),
    )(x, memory, wq, bq, wkv, bkv, wo, p["out_b"].reshape(1, E),
      mem_kpm_add.reshape(N, 1, S), ln_g.reshape(1, E), ln_b.reshape(1, E))


# ----------------------------------------------------------------------------
# Fused FFN: lin1 + ReLU + lin2 + residual + LayerNorm (hidden stays in VMEM)
# ----------------------------------------------------------------------------
def _ffn_ln_kernel(x_ref, w1_ref, b1_ref, w2_ref, b2_ref, g_ref, bt_ref, o_ref, *, eps):
    x = x_ref[...]
    h = jax.lax.dot_general(
        x.astype(jnp.bfloat16), w1_ref[...].astype(jnp.bfloat16),
        (((1,), (1,)), ((), ())), preferred_element_type=jnp.float32)
    h = jnp.maximum(h + b1_ref[...], 0.0)                       # (tm, F) hidden
    y = jax.lax.dot_general(
        h.astype(jnp.bfloat16), w2_ref[...].astype(jnp.bfloat16),
        (((1,), (1,)), ((), ())), preferred_element_type=jnp.float32)
    z = x + y + b2_ref[...]
    o_ref[...] = _layernorm(z, g_ref[...], bt_ref[...], eps)


def ffn_ln(x2d, w1, b1, w2, b2, gamma, beta, tm=512):
    """LayerNorm(x + relu(x@w1.T+b1)@w2.T+b2).  x2d: (M, E)."""
    M, E = x2d.shape
    F = w1.shape[0]
    tm = _choose_tile(M, tm)
    return pl.pallas_call(
        functools.partial(_ffn_ln_kernel, eps=LN_EPS),
        out_shape=jax.ShapeDtypeStruct((M, E), jnp.float32),
        grid=(M // tm,),
        in_specs=[
            pl.BlockSpec((tm, E), lambda i: (i, 0)),
            pl.BlockSpec((F, E), lambda i: (0, 0)),
            pl.BlockSpec((1, F), lambda i: (0, 0)),
            pl.BlockSpec((E, F), lambda i: (0, 0)),
            pl.BlockSpec((1, E), lambda i: (0, 0)),
            pl.BlockSpec((1, E), lambda i: (0, 0)),
            pl.BlockSpec((1, E), lambda i: (0, 0)),
        ],
        out_specs=pl.BlockSpec((tm, E), lambda i: (i, 0)),
        compiler_params=_cparams("parallel"),
    )(x2d, w1, b1.reshape(1, F), w2, b2.reshape(1, E),
      gamma.reshape(1, E), beta.reshape(1, E))


# ----------------------------------------------------------------------------
# Plain LayerNorm (final encoder/decoder norms)
# ----------------------------------------------------------------------------
def _ln_kernel(x_ref, g_ref, b_ref, o_ref, *, eps):
    o_ref[...] = _layernorm(x_ref[...], g_ref[...], b_ref[...], eps)


def layer_norm(x2d, gamma, beta, tm=512):
    M, E = x2d.shape
    tm = _choose_tile(M, tm)
    return pl.pallas_call(
        functools.partial(_ln_kernel, eps=LN_EPS),
        out_shape=jax.ShapeDtypeStruct((M, E), jnp.float32),
        grid=(M // tm,),
        in_specs=[
            pl.BlockSpec((tm, E), lambda i: (i, 0)),
            pl.BlockSpec((1, E), lambda i: (0, 0)),
            pl.BlockSpec((1, E), lambda i: (0, 0)),
        ],
        out_specs=pl.BlockSpec((tm, E), lambda i: (i, 0)),
        compiler_params=_cparams("parallel"),
    )(x2d, gamma.reshape(1, E), beta.reshape(1, E))


# ----------------------------------------------------------------------------
# Tiled dense: y = x @ w.T + b   (generator / nn.Linear semantics)
# ----------------------------------------------------------------------------
def _matmul_kernel(x_ref, w_ref, b_ref, o_ref, acc_ref):
    @pl.when(pl.program_id(2) == 0)
    def _():
        acc_ref[...] = jnp.zeros_like(acc_ref)

    acc_ref[...] += jax.lax.dot_general(
        x_ref[...].astype(jnp.bfloat16), w_ref[...].astype(jnp.bfloat16),
        (((1,), (1,)), ((), ())), preferred_element_type=jnp.float32)

    @pl.when(pl.program_id(2) == pl.num_programs(2) - 1)
    def _():
        o_ref[...] = acc_ref[...] + b_ref[...]


def dense(x, w, b, tm=512, tn=512, tk=512):
    """x: (M, K), w: (N, K), b: (N,) -> (M, N)."""
    M, K = x.shape
    N = w.shape[0]
    tm = _choose_tile(M, tm)
    tn = _choose_tile(N, tn)
    tk = _choose_tile(K, tk)
    return pl.pallas_call(
        _matmul_kernel,
        out_shape=jax.ShapeDtypeStruct((M, N), jnp.float32),
        grid=(M // tm, N // tn, K // tk),
        in_specs=[
            pl.BlockSpec((tm, tk), lambda i, j, k: (i, k)),
            pl.BlockSpec((tn, tk), lambda i, j, k: (j, k)),
            pl.BlockSpec((1, tn), lambda i, j, k: (0, j)),
        ],
        out_specs=pl.BlockSpec((tm, tn), lambda i, j, k: (i, j)),
        scratch_shapes=[pltpu.VMEM((tm, tn), jnp.float32)],
        compiler_params=_cparams("parallel", "parallel", "arbitrary"),
    )(x, w, b.reshape(1, N))


# ----------------------------------------------------------------------------
# Model glue (batch-first internal layout)
# ----------------------------------------------------------------------------
def token_embed_and_pe(tokens, emb_table, pos_emb):
    """tokens: (S, N) int32 -> (N, S, E) batch-first; embedding*sqrt(E) + PE."""
    # TODO(synk): embedding gather stays an XLA-level jnp.take (no clean Pallas
    #             gather win at this scale).
    S = tokens.shape[0]
    E = emb_table.shape[1]                  # static python int
    emb = jnp.take(emb_table, tokens.T, axis=0) * math.sqrt(E)   # (N, S, E)
    return emb + pos_emb[:S, 0][None, :, :]


def encoder_layer(h, lp, nhead, src_mask, src_kpm_add):
    N, S, E = h.shape
    h = self_attn_block(h, lp["self_attn"], nhead, src_mask, src_kpm_add,
                        lp["norm1_g"], lp["norm1_b"])
    h = ffn_ln(h.reshape(N * S, E), lp["lin1_w"], lp["lin1_b"],
               lp["lin2_w"], lp["lin2_b"], lp["norm2_g"], lp["norm2_b"])
    return h.reshape(N, S, E)


def decoder_layer(g, memory, lp, nhead, tgt_mask, tgt_kpm_add, mem_kpm_add):
    N, T, E = g.shape
    g = self_attn_block(g, lp["self_attn"], nhead, tgt_mask, tgt_kpm_add,
                        lp["norm1_g"], lp["norm1_b"])
    g = cross_attn_block(g, memory, lp["cross_attn"], nhead, mem_kpm_add,
                         lp["norm2_g"], lp["norm2_b"])
    g = ffn_ln(g.reshape(N * T, E), lp["lin1_w"], lp["lin1_b"],
               lp["lin2_w"], lp["lin2_b"], lp["norm3_g"], lp["norm3_b"])
    return g.reshape(N, T, E)


def seq2seq_forward(params, x_tok, y_tok, src_mask, tgt_mask,
                    src_kpm, tgt_kpm, mem_kpm, nhead):
    # TODO(synk): dropout layers are treated as eval-mode identity (no RNG drop).
    E = params["src_emb"].shape[1]
    src_kpm_add = jnp.where(src_kpm, NEG_INF, 0.0).astype(jnp.float32)   # (N,S)
    tgt_kpm_add = jnp.where(tgt_kpm, NEG_INF, 0.0).astype(jnp.float32)   # (N,T)
    mem_kpm_add = jnp.where(mem_kpm, NEG_INF, 0.0).astype(jnp.float32)   # (N,S)
    src_mask = src_mask.astype(jnp.float32)
    tgt_mask = tgt_mask.astype(jnp.float32)

    # ----- encoder -----
    h = token_embed_and_pe(x_tok, params["src_emb"], params["pos_emb"])  # (N,S,E)
    N, S, _ = h.shape
    for lp in params["enc_layers"]:
        h = encoder_layer(h, lp, nhead, src_mask, src_kpm_add)
    memory = layer_norm(h.reshape(N * S, E), params["enc_norm_g"],
                        params["enc_norm_b"]).reshape(N, S, E)

    # ----- decoder ----- (memory_mask is None in the reference module)
    g = token_embed_and_pe(y_tok, params["tgt_emb"], params["pos_emb"])  # (N,T,E)
    T = g.shape[1]
    for lp in params["dec_layers"]:
        g = decoder_layer(g, memory, lp, nhead, tgt_mask, tgt_kpm_add, mem_kpm_add)
    dec = layer_norm(g.reshape(N * T, E), params["dec_norm_g"], params["dec_norm_b"])

    # ----- generator ----- (lane-dense vocab)
    logits = dense(dec, params["gen_w"], params["gen_b"])                # (N*T, V)
    return logits.reshape(N, T, -1).transpose(1, 0, 2)                   # (T, N, V)


# ----------------------------------------------------------------------------
# Deterministic parameter initialisation (shapes follow the PyTorch module)
# ----------------------------------------------------------------------------
def _uniform(key, shape, fan_in):
    bound = 1.0 / math.sqrt(fan_in)
    return jax.random.uniform(key, shape, jnp.float32, -bound, bound)


def init_mha(key, E):
    ks = jax.random.split(key, 4)
    return dict(
        in_w=_uniform(ks[0], (3 * E, E), E),
        in_b=_uniform(ks[1], (3 * E,), E),
        out_w=_uniform(ks[2], (E, E), E),
        out_b=_uniform(ks[3], (E,), E),
    )


def init_enc_layer(key, E, F):
    ks = jax.random.split(key, 5)
    return dict(
        self_attn=init_mha(ks[0], E),
        lin1_w=_uniform(ks[1], (F, E), E), lin1_b=_uniform(ks[2], (F,), E),
        lin2_w=_uniform(ks[3], (E, F), F), lin2_b=_uniform(ks[4], (E,), F),
        norm1_g=jnp.ones((E,), jnp.float32), norm1_b=jnp.zeros((E,), jnp.float32),
        norm2_g=jnp.ones((E,), jnp.float32), norm2_b=jnp.zeros((E,), jnp.float32),
    )


def init_dec_layer(key, E, F):
    ks = jax.random.split(key, 6)
    return dict(
        self_attn=init_mha(ks[0], E),
        cross_attn=init_mha(ks[1], E),
        lin1_w=_uniform(ks[2], (F, E), E), lin1_b=_uniform(ks[3], (F,), E),
        lin2_w=_uniform(ks[4], (E, F), F), lin2_b=_uniform(ks[5], (E,), F),
        norm1_g=jnp.ones((E,), jnp.float32), norm1_b=jnp.zeros((E,), jnp.float32),
        norm2_g=jnp.ones((E,), jnp.float32), norm2_b=jnp.zeros((E,), jnp.float32),
        norm3_g=jnp.ones((E,), jnp.float32), norm3_b=jnp.zeros((E,), jnp.float32),
    )


def make_pos_embedding(emb_size, maxlen=64):
    den = jnp.exp(-jnp.arange(0, emb_size, 2, dtype=jnp.float32)
                  * math.log(10000.0) / emb_size)
    pos = jnp.arange(0, maxlen, dtype=jnp.float32).reshape(maxlen, 1)
    pe = jnp.zeros((maxlen, emb_size), jnp.float32)
    pe = pe.at[:, 0::2].set(jnp.sin(pos * den))
    pe = pe.at[:, 1::2].set(jnp.cos(pos * den))
    return pe[:, None, :]  # (maxlen, 1, E)


def init_params(key, src_vocab, tgt_vocab, E, F, n_layers):
    ks = jax.random.split(key, 8)
    enc_keys = jax.random.split(ks[2], n_layers)
    dec_keys = jax.random.split(ks[3], n_layers)
    return dict(
        src_emb=jax.random.normal(ks[0], (src_vocab, E), jnp.float32),
        tgt_emb=jax.random.normal(ks[1], (tgt_vocab, E), jnp.float32),
        pos_emb=make_pos_embedding(E),
        enc_layers=[init_enc_layer(k, E, F) for k in enc_keys],
        dec_layers=[init_dec_layer(k, E, F) for k in dec_keys],
        enc_norm_g=jnp.ones((E,), jnp.float32),
        enc_norm_b=jnp.zeros((E,), jnp.float32),
        dec_norm_g=jnp.ones((E,), jnp.float32),
        dec_norm_b=jnp.zeros((E,), jnp.float32),
        gen_w=_uniform(ks[4], (tgt_vocab, E), E),
        gen_b=_uniform(ks[5], (tgt_vocab,), E),
    )


# ----------------------------------------------------------------------------
if __name__ == "__main__":
    # Small, lane-dense shapes consistent with the module (dim_embeddings,
    # n_heads, ff_dim, n_layers scaled down, dims 128-aligned for the TPU).
    SRC_VOCAB, TGT_VOCAB = 256, 256
    E, H, FF, LAYERS = 128, 4, 256, 2
    S, T, N = 16, 16, 4

    key = jax.random.PRNGKey(0)
    k_par, k_x, k_y = jax.random.split(key, 3)
    params = init_params(k_par, SRC_VOCAB, TGT_VOCAB, E, FF, LAYERS)

    x = jax.random.randint(k_x, (S, N), 0, SRC_VOCAB, dtype=jnp.int32)
    y = jax.random.randint(k_y, (T, N), 0, TGT_VOCAB, dtype=jnp.int32)

    # src_mask: float zeros (no masking). tgt_mask: causal (additive -inf above diag).
    src_mask = jnp.zeros((S, S), jnp.float32)
    tgt_mask = jnp.where(jnp.triu(jnp.ones((T, T), dtype=bool), k=1),
                         NEG_INF, 0.0).astype(jnp.float32)
    # key padding masks (bool, True = ignore): pad the last position of batch 0.
    src_kpm = jnp.zeros((N, S), dtype=bool).at[0, S - 1].set(True)
    tgt_kpm = jnp.zeros((N, T), dtype=bool).at[0, T - 1].set(True)
    mem_kpm = src_kpm

    fwd = jax.jit(functools.partial(seq2seq_forward, nhead=H))
    logits = fwd(params, x, y, src_mask, tgt_mask, src_kpm, tgt_kpm, mem_kpm)
    jax.block_until_ready(logits)
    assert logits.shape == (T, N, TGT_VOCAB)
    assert bool(jnp.isfinite(logits).all())
    print("KERNEL_OK")
</pallas_src>

<mosaic_0001>
module attributes {stable_mosaic.version = 11 : i64} {
  func.func @_self_attn_block_kernel(%arg0: i32, %arg1: memref<1x16x128xf32, #tpu.memory_space<vmem>>, %arg2: memref<3x4x32x128xf32, #tpu.memory_space<vmem>>, %arg3: memref<3x4x1x32xf32, #tpu.memory_space<vmem>>, %arg4: memref<4x128x32xf32, #tpu.memory_space<vmem>>, %arg5: memref<1x128xf32, #tpu.memory_space<vmem>>, %arg6: memref<16x16xf32, #tpu.memory_space<vmem>>, %arg7: memref<1x1x16xf32, #tpu.memory_space<vmem>>, %arg8: memref<1x128xf32, #tpu.memory_space<vmem>>, %arg9: memref<1x128xf32, #tpu.memory_space<vmem>>, %arg10: memref<1x16x128xf32, #tpu.memory_space<vmem>>) attributes {dimension_semantics = [#tpu.dimension_semantics<parallel>], iteration_bounds = array<i64: 4>, scalar_prefetch = 0 : i64, scratch_operands = 0 : i64, tpu.core_type = #tpu.core_type<tc>, window_params = [{transform_indices = @transform_0, window_bounds = array<i64: 1, 16, 128>}, {pipeline_mode = #tpu.pipeline_mode<synchronous>, transform_indices = @transform_1, window_bounds = array<i64: 3, 4, 32, 128>}, {pipeline_mode = #tpu.pipeline_mode<synchronous>, transform_indices = @transform_2, window_bounds = array<i64: 3, 4, 1, 32>}, {pipeline_mode = #tpu.pipeline_mode<synchronous>, transform_indices = @transform_3, window_bounds = array<i64: 4, 128, 32>}, {pipeline_mode = #tpu.pipeline_mode<synchronous>, transform_indices = @transform_4, window_bounds = array<i64: 1, 128>}, {pipeline_mode = #tpu.pipeline_mode<synchronous>, transform_indices = @transform_5, window_bounds = array<i64: 16, 16>}, {transform_indices = @transform_6, window_bounds = array<i64: 1, 1, 16>}, {pipeline_mode = #tpu.pipeline_mode<synchronous>, transform_indices = @transform_7, window_bounds = array<i64: 1, 128>}, {pipeline_mode = #tpu.pipeline_mode<synchronous>, transform_indices = @transform_8, window_bounds = array<i64: 1, 128>}, {transform_indices = @transform_9, window_bounds = array<i64: 1, 16, 128>}]} {
    %c0 = arith.constant 0 : index
    %c0_0 = arith.constant 0 : index
    %c0_1 = arith.constant 0 : index
    %0 = vector.load %arg1[%c0, %c0_0, %c0_1] : memref<1x16x128xf32, #tpu.memory_space<vmem>>, vector<1x16x128xf32>
    %1 = vector.shape_cast %0 : vector<1x16x128xf32> to vector<16x128xf32>
    %2 = arith.truncf %1 : vector<16x128xf32> to vector<16x128xbf16>
    %c0_2 = arith.constant 0 : index
    %c0_3 = arith.constant 0 : index
    %3 = vector.load %arg6[%c0_2, %c0_3] : memref<16x16xf32, #tpu.memory_space<vmem>>, vector<16x16xf32>
    %c0_4 = arith.constant 0 : index
    %c0_5 = arith.constant 0 : index
    %c0_6 = arith.constant 0 : index
    %4 = vector.load %arg7[%c0_4, %c0_5, %c0_6] : memref<1x1x16xf32, #tpu.memory_space<vmem>>, vector<1x1x16xf32>
    %5 = vector.shape_cast %4 : vector<1x1x16xf32> to vector<1x16xf32>
    %6 = vector.broadcast %5 : vector<1x16xf32> to vector<16x16xf32>
    %7 = arith.addf %3, %6 : vector<16x16xf32>
    %c0_7 = arith.constant 0 : index
    %c0_8 = arith.constant 0 : index
    %8 = vector.load %arg5[%c0_7, %c0_8] : memref<1x128xf32, #tpu.memory_space<vmem>>, vector<1x128xf32>
    %9 = vector.broadcast %8 : vector<1x128xf32> to vector<16x128xf32>
    %10 = arith.addf %1, %9 : vector<16x128xf32>
    %c0_9 = arith.constant 0 : index
    %c0_10 = arith.constant 0 : index
    %c0_11 = arith.constant 0 : index
    %c0_12 = arith.constant 0 : index
    %11 = vector.load %arg2[%c0_9, %c0_10, %c0_11, %c0_12] : memref<3x4x32x128xf32, #tpu.memory_space<vmem>>, vector<1x1x32x128xf32>
    %12 = vector.shape_cast %11 : vector<1x1x32x128xf32> to vector<32x128xf32>
    %c0_13 = arith.constant 0 : index
    %c0_14 = arith.constant 0 : index
    %c0_15 = arith.constant 0 : index
    %c0_16 = arith.constant 0 : index
    %13 = vector.load %arg3[%c0_13, %c0_14, %c0_15, %c0_16] : memref<3x4x1x32xf32, #tpu.memory_space<vmem>>, vector<1x1x1x32xf32>
    %14 = vector.shape_cast %13 : vector<1x1x1x32xf32> to vector<1x32xf32>
    %15 = arith.truncf %12 : vector<32x128xf32> to vector<32x128xbf16>
    %cst = arith.constant dense<0.000000e+00> : vector<16x32xf32>
    %16 = tpu.matmul %2, %15, %cst {dimension_numbers = #tpu.dot_dimension_numbers<[1], [1], [0], [0], [0, 0, 1, 0], [], []>} : vector<16x128xbf16>, vector<32x128xbf16>, vector<16x32xf32> -> vector<16x32xf32>
    %17 = vector.broadcast %14 : vector<1x32xf32> to vector<16x32xf32>
    %18 = arith.addf %16, %17 : vector<16x32xf32>
    %c1 = arith.constant 1 : index
    %c0_17 = arith.constant 0 : index
    %c0_18 = arith.constant 0 : index
    %c0_19 = arith.constant 0 : index
    %19 = vector.load %arg2[%c1, %c0_17, %c0_18, %c0_19] : memref<3x4x32x128xf32, #tpu.memory_space<vmem>>, vector<1x1x32x128xf32>
    %20 = vector.shape_cast %19 : vector<1x1x32x128xf32> to vector<32x128xf32>
    %c1_20 = arith.constant 1 : index
    %c0_21 = arith.constant 0 : index
    %c0_22 = arith.constant 0 : index
    %c0_23 = arith.constant 0 : index
    %21 = vector.load %arg3[%c1_20, %c0_21, %c0_22, %c0_23] : memref<3x4x1x32xf32, #tpu.memory_space<vmem>>, vector<1x1x1x32xf32>
    %22 = vector.shape_cast %21 : vector<1x1x1x32xf32> to vector<1x32xf32>
    %23 = arith.truncf %20 : vector<32x128xf32> to vector<32x128xbf16>
    %cst_24 = arith.constant dense<0.000000e+00> : vector<16x32xf32>
    %24 = tpu.matmul %2, %23, %cst_24 {dimension_numbers = #tpu.dot_dimension_numbers<[1], [1], [0], [0], [0, 0, 1, 0], [], []>} : vector<16x128xbf16>, vector<32x128xbf16>, vector<16x32xf32> -> vector<16x32xf32>
    %25 = vector.broadcast %22 : vector<1x32xf32> to vector<16x32xf32>
    %26 = arith.addf %24, %25 : vector<16x32xf32>
    %c2 = arith.constant 2 : index
    %c0_25 = arith.constant 0 : index
    %c0_26 = arith.constant 0 : index
    %c0_27 = arith.constant 0 : index
    %27 = vector.load %arg2[%c2, %c0_25, %c0_26, %c0_27] : memref<3x4x32x128xf32, #tpu.memory_space<vmem>>, vector<1x1x32x128xf32>
    %28 = vector.shape_cast %27 : vector<1x1x32x128xf32> to vector<32x128xf32>
    %c2_28 = arith.constant 2 : index
    %c0_29 = arith.constant 0 : index
    %c0_30 = arith.constant 0 : index
    %c0_31 = arith.constant 0 : index
    %29 = vector.load %arg3[%c2_28, %c0_29, %c0_30, %c0_31] : memref<3x4x1x32xf32, #tpu.memory_space<vmem>>, vector<1x1x1x32xf32>
    %30 = vector.shape_cast %29 : vector<1x1x1x32xf32> to vector<1x32xf32>
    %31 = arith.truncf %28 : vector<32x128xf32> to vector<32x128xbf16>
    %cst_32 = arith.constant dense<0.000000e+00> : vector<16x32xf32>
    %32 = tpu.matmul %2, %31, %cst_32 {dimension_numbers = #tpu.dot_dimension_numbers<[1], [1], [0], [0], [0, 0, 1, 0], [], []>} : vector<16x128xbf16>, vector<32x128xbf16>, vector<16x32xf32> -> vector<16x32xf32>
    %33 = vector.broadcast %30 : vector<1x32xf32> to vector<16x32xf32>
    %34 = arith.addf %32, %33 : vector<16x32xf32>
    %c0_33 = arith.constant 0 : index
    %c0_34 = arith.constant 0 : index
    %c0_35 = arith.constant 0 : index
    %35 = vector.load %arg4[%c0_33, %c0_34, %c0_35] : memref<4x128x32xf32, #tpu.memory_space<vmem>>, vector<1x128x32xf32>
    %36 = vector.shape_cast %35 : vector<1x128x32xf32> to vector<128x32xf32>
    %37 = arith.truncf %18 : vector<16x32xf32> to vector<16x32xbf16>
    %38 = arith.truncf %26 : vector<16x32xf32> to vector<16x32xbf16>
    %cst_36 = arith.constant dense<0.000000e+00> : vector<16x16xf32>
    %39 = tpu.matmul %37, %38, %cst_36 {dimension_numbers = #tpu.dot_dimension_numbers<[1], [1], [0], [0], [0, 0, 1, 0], [], []>} : vector<16x32xbf16>, vector<16x32xbf16>, vector<16x16xf32> -> vector<16x16xf32>
    %cst_37 = arith.constant 0.176776692 : f32
    %40 = vector.broadcast %cst_37 : f32 to vector<16x16xf32>
    %41 = arith.mulf %39, %40 : vector<16x16xf32>
    %42 = arith.addf %41, %7 : vector<16x16xf32>
    %cst_38 = arith.constant dense<0xFF800000> : vector<16xf32>
    %43 = vector.multi_reduction <maximumf>, %42, %cst_38 [1] : vector<16x16xf32> to vector<16xf32>
    %44 = vector.shape_cast %43 : vector<16xf32> to vector<16x1xf32>
    %45 = vector.broadcast %44 : vector<16x1xf32> to vector<16x16xf32>
    %46 = arith.subf %42, %45 : vector<16x16xf32>
    %47 = math.exp %46 : vector<16x16xf32>
    %cst_39 = arith.constant dense<0.000000e+00> : vector<16xf32>
    %48 = vector.multi_reduction <add>, %47, %cst_39 [1] : vector<16x16xf32> to vector<16xf32>
    %49 = vector.shape_cast %48 : vector<16xf32> to vector<16x1xf32>
    %50 = tpu.reciprocal %49 {approx = true} : vector<16x1xf32> -> vector<16x1xf32>
    %51 = vector.broadcast %50 : vector<16x1xf32> to vector<16x16xf32>
    %52 = arith.mulf %47, %51 : vector<16x16xf32>
    %53 = arith.truncf %52 : vector<16x16xf32> to vector<16x16xbf16>
    %54 = arith.truncf %34 : vector<16x32xf32> to vector<16x32xbf16>
    %cst_40 = arith.constant dense<0.000000e+00> : vector<16x32xf32>
    %55 = tpu.matmul %53, %54, %cst_40 {dimension_numbers = #tpu.dot_dimension_numbers<[1], [0], [0], [1], [0, 0, 1, 1], [], []>} : vector<16x16xbf16>, vector<16x32xbf16>, vector<16x32xf32> -> vector<16x32xf32>
    %56 = arith.truncf %55 : vector<16x32xf32> to vector<16x32xbf16>
    %57 = arith.truncf %36 : vector<128x32xf32> to vector<128x32xbf16>
    %cst_41 = arith.constant dense<0.000000e+00> : vector<16x128xf32>
    %58 = tpu.matmul %56, %57, %cst_41 {dimension_numbers = #tpu.dot_dimension_numbers<[1], [1], [0], [0], [0, 0, 1, 0], [], []>} : vector<16x32xbf16>, vector<128x32xbf16>, vector<16x128xf32> -> vector<16x128xf32>
    %59 = arith.addf %10, %58 : vector<16x128xf32>
    %c0_42 = arith.constant 0 : index
    %c1_43 = arith.constant 1 : index
    %c0_44 = arith.constant 0 : index
    %c0_45 = arith.constant 0 : index
    %60 = vector.load %arg2[%c0_42, %c1_43, %c0_44, %c0_45] : memref<3x4x32x128xf32, #tpu.memory_space<vmem>>, vector<1x1x32x128xf32>
    %61 = vector.shape_cast %60 : vector<1x1x32x128xf32> to vector<32x128xf32>
    %c0_46 = arith.constant 0 : index
    %c1_47 = arith.constant 1 : index
    %c0_48 = arith.constant 0 : index
    %c0_49 = arith.constant 0 : index
    %62 = vector.load %arg3[%c0_46, %c1_47, %c0_48, %c0_49] : memref<3x4x1x32xf32, #tpu.memory_space<vmem>>, vector<1x1x1x32xf32>
    %63 = vector.shape_cast %62 : vector<1x1x1x32xf32> to vector<1x32xf32>
    %64 = arith.truncf %61 : vector<32x128xf32> to vector<32x128xbf16>
    %cst_50 = arith.constant dense<0.000000e+00> : vector<16x32xf32>
    %65 = tpu.matmul %2, %64, %cst_50 {dimension_numbers = #tpu.dot_dimension_numbers<[1], [1], [0], [0], [0, 0, 1, 0], [], []>} : vector<16x128xbf16>, vector<32x128xbf16>, vector<16x32xf32> -> vector<16x32xf32>
    %66 = vector.broadcast %63 : vector<1x32xf32> to vector<16x32xf32>
    %67 = arith.addf %65, %66 : vector<16x32xf32>
    %c1_51 = arith.constant 1 : index
    %c1_52 = arith.constant 1 : index
    %c0_53 = arith.constant 0 : index
    %c0_54 = arith.constant 0 : index
    %68 = vector.load %arg2[%c1_51, %c1_52, %c0_53, %c0_54] : memref<3x4x32x128xf32, #tpu.memory_space<vmem>>, vector<1x1x32x128xf32>
    %69 = vector.shape_cast %68 : vector<1x1x32x128xf32> to vector<32x128xf32>
    %c1_55 = arith.constant 1 : index
    %c1_56 = arith.constant 1 : index
    %c0_57 = arith.constant 0 : index
    %c0_58 = arith.constant 0 : index
    %70 = vector.load %arg3[%c1_55, %c1_56, %c0_57, %c0_58] : memref<3x4x1x32xf32, #tpu.memory_space<vmem>>, vector<1x1x1x32xf32>
    %71 = vector.shape_cast %70 : vector<1x1x1x32xf32> to vector<1x32xf32>
    %72 = arith.truncf %69 : vector<32x128xf32> to vector<32x128xbf16>
    %cst_59 = arith.constant dense<0.000000e+00> : vector<16x32xf32>
    %73 = tpu.matmul %2, %72, %cst_59 {dimension_numbers = #tpu.dot_dimension_numbers<[1], [1], [0], [0], [0, 0, 1, 0], [], []>} : vector<16x128xbf16>, vector<32x128xbf16>, vector<16x32xf32> -> vector<16x32xf32>
    %74 = vector.broadcast %71 : vector<1x32xf32> to vector<16x32xf32>
    %75 = arith.addf %73, %74 : vector<16x32xf32>
    %c2_60 = arith.constant 2 : index
    %c1_61 = arith.constant 1 : index
    %c0_62 = arith.constant 0 : index
    %c0_63 = arith.constant 0 : index
    %76 = vector.load %arg2[%c2_60, %c1_61, %c0_62, %c0_63] : memref<3x4x32x128xf32, #tpu.memory_space<vmem>>, vector<1x1x32x128xf32>
    %77 = vector.shape_cast %76 : vector<1x1x32x128xf32> to vector<32x128xf32>
    %c2_64 = arith.constant 2 : index
    %c1_65 = arith.constant 1 : index
    %c0_66 = arith.constant 0 : index
    %c0_67 = arith.constant 0 : index
    %78 = vector.load %arg3[%c2_64, %c1_65, %c0_66, %c0_67] : memref<3x4x1x32xf32, #tpu.memory_space<vmem>>, vector<1x1x1x32xf32>
    %79 = vector.shape_cast %78 : vector<1x1x1x32xf32> to vector<1x32xf32>
    %80 = arith.truncf %77 : vector<32x128xf32> to vector<32x128xbf16>
    %cst_68 = arith.constant dense<0.000000e+00> : vector<16x32xf32>
    %81 = tpu.matmul %2, %80, %cst_68 {dimension_numbers = #tpu.dot_dimension_numbers<[1], [1], [0], [0], [0, 0, 1, 0], [], []>} : vector<16x128xbf16>, vector<32x128xbf16>, vector<16x32xf32> -> vector<16x32xf32>
    %82 = vector.broadcast %79 : vector<1x32xf32> to vector<16x32xf32>
    %83 = arith.addf %81, %82 : vector<16x32xf32>
    %c1_69 = arith.constant 1 : index
    %c0_70 = arith.constant 0 : index
    %c0_71 = arith.constant 0 : index
    %84 = vector.load %arg4[%c1_69, %c0_70, %c0_71] : memref<4x128x32xf32, #tpu.memory_space<vmem>>, vector<1x128x32xf32>
    %85 = vector.shape_cast %84 : vector<1x128x32xf32> to vector<128x32xf32>
    %86 = arith.truncf %67 : vector<16x32xf32> to vector<16x32xbf16>
    %87 = arith.truncf %75 : vector<16x32xf32> to vector<16x32xbf16>
    %cst_72 = arith.constant dense<0.000000e+00> : vector<16x16xf32>
    %88 = tpu.matmul %86, %87, %cst_72 {dimension_numbers = #tpu.dot_dimension_numbers<[1], [1], [0], [0], [0, 0, 1, 0], [], []>} : vector<16x32xbf16>, vector<16x32xbf16>, vector<16x16xf32> -> vector<16x16xf32>
    %cst_73 = arith.constant 0.176776692 : f32
    %89 = vector.broadcast %cst_73 : f32 to vector<16x16xf32>
    %90 = arith.mulf %88, %89 : vector<16x16xf32>
    %91 = arith.addf %90, %7 : vector<16x16xf32>
    %cst_74 = arith.constant dense<0xFF800000> : vector<16xf32>
    %92 = vector.multi_reduction <maximumf>, %91, %cst_74 [1] : vector<16x16xf32> to vector<16xf32>
    %93 = vector.shape_cast %92 : vector<16xf32> to vector<16x1xf32>
    %94 = vector.broadcast %93 : vector<16x1xf32> to vector<16x16xf32>
    %95 = arith.subf %91, %94 : vector<16x16xf32>
    %96 = math.exp %95 : vector<16x16xf32>
    %cst_75 = arith.constant dense<0.000000e+00> : vector<16xf32>
    %97 = vector.multi_reduction <add>, %96, %cst_75 [1] : vector<16x16xf32> to vector<16xf32>
    %98 = vector.shape_cast %97 : vector<16xf32> to vector<16x1xf32>
    %99 = tpu.reciprocal %98 {approx = true} : vector<16x1xf32> -> vector<16x1xf32>
    %100 = vector.broadcast %99 : vector<16x1xf32> to vector<16x16xf32>
    %101 = arith.mulf %96, %100 : vector<16x16xf32>
    %102 = arith.truncf %101 : vector<16x16xf32> to vector<16x16xbf16>
    %103 = arith.truncf %83 : vector<16x32xf32> to vector<16x32xbf16>
    %cst_76 = arith.constant dense<0.000000e+00> : vector<16x32xf32>
    %104 = tpu.matmul %102, %103, %cst_76 {dimension_numbers = #tpu.dot_dimension_numbers<[1], [0], [0], [1], [0, 0, 1, 1], [], []>} : vector<16x16xbf16>, vector<16x32xbf16>, vector<16x32xf32> -> vector<16x32xf32>
    %105 = arith.truncf %104 : vector<16x32xf32> to vector<16x32xbf16>
    %106 = arith.truncf %85 : vector<128x32xf32> to vector<128x32xbf16>
    %cst_77 = arith.constant dense<0.000000e+00> : vector<16x128xf32>
    %107 = tpu.matmul %105, %106, %cst_77 {dimension_numbers = #tpu.dot_dimension_numbers<[1], [1], [0], [0], [0, 0, 1, 0], [], []>} : vector<16x32xbf16>, vector<128x32xbf16>, vector<16x128xf32> -> vector<16x128xf32>
    %108 = arith.addf %59, %107 : vector<16x128xf32>
    %c0_78 = arith.constant 0 : index
    %c2_79 = arith.constant 2 : index
    %c0_80 = arith.constant 0 : index
    %c0_81 = arith.constant 0 : index
    %109 = vector.load %arg2[%c0_78, %c2_79, %c0_80, %c0_81] : memref<3x4x32x128xf32, #tpu.memory_space<vmem>>, vector<1x1x32x128xf32>
    %110 = vector.shape_cast %109 : vector<1x1x32x128xf32> to vector<32x128xf32>
    %c0_82 = arith.constant 0 : index
    %c2_83 = arith.constant 2 : index
    %c0_84 = arith.constant 0 : index
    %c0_85 = arith.constant 0 : index
    %111 = vector.load %arg3[%c0_82, %c2_83, %c0_84, %c0_85] : memref<3x4x1x32xf32, #tpu.memory_space<vmem>>, vector<1x1x1x32xf32>
    %112 = vector.shape_cast %111 : vector<1x1x1x32xf32> to vector<1x32xf32>
    %113 = arith.truncf %110 : vector<32x128xf32> to vector<32x128xbf16>
    %cst_86 = arith.constant dense<0.000000e+00> : vector<16x32xf32>
    %114 = tpu.matmul %2, %113, %cst_86 {dimension_numbers = #tpu.dot_dimension_numbers<[1], [1], [0], [0], [0, 0, 1, 0], [], []>} : vector<16x128xbf16>, vector<32x128xbf16>, vector<16x32xf32> -> vector<16x32xf32>
    %115 = vector.broadcast %112 : vector<1x32xf32> to vector<16x32xf32>
    %116 = arith.addf %114, %115 : vector<16x32xf32>
    %c1_87 = arith.constant 1 : index
    %c2_88 = arith.constant 2 : index
    %c0_89 = arith.constant 0 : index
    %c0_90 = arith.constant 0 : index
    %117 = vector.load %arg2[%c1_87, %c2_88, %c0_89, %c0_90] : memref<3x4x32x128xf32, #tpu.memory_space<vmem>>, vector<1x1x32x128xf32>
    %118 = vector.shape_cast %117 : vector<1x1x32x128xf32> to vector<32x128xf32>
    %c1_91 = arith.constant 1 : index
    %c2_92 = arith.constant 2 : index
    %c0_93 = arith.constant 0 : index
    %c0_94 = arith.constant 0 : index
    %119 = vector.load %arg3[%c1_91, %c2_92, %c0_93, %c0_94] : memref<3x4x1x32xf32, #tpu.memory_space<vmem>>, vector<1x1x1x32xf32>
    %120 = vector.shape_cast %119 : vector<1x1x1x32xf32> to vector<1x32xf32>
    %121 = arith.truncf %118 : vector<32x128xf32> to vector<32x128xbf16>
    %cst_95 = arith.constant dense<0.000000e+00> : vector<16x32xf32>
    %122 = tpu.matmul %2, %121, %cst_95 {dimension_numbers = #tpu.dot_dimension_numbers<[1], [1], [0], [0], [0, 0, 1, 0], [], []>} : vector<16x128xbf16>, vector<32x128xbf16>, vector<16x32xf32> -> vector<16x32xf32>
    %123 = vector.broadcast %120 : vector<1x32xf32> to vector<16x32xf32>
    %124 = arith.addf %122, %123 : vector<16x32xf32>
    %c2_96 = arith.constant 2 : index
    %c2_97 = arith.constant 2 : index
    %c0_98 = arith.constant 0 : index
    %c0_99 = arith.constant 0 : index
    %125 = vector.load %arg2[%c2_96, %c2_97, %c0_98, %c0_99] : memref<3x4x32x128xf32, #tpu.memory_space<vmem>>, vector<1x1x32x128xf32>
    %126 = vector.shape_cast %125 : vector<1x1x32x128xf32> to vector<32x128xf32>
    %c2_100 = arith.constant 2 : index
    %c2_101 = arith.constant 2 : index
    %c0_102 = arith.constant 0 : index
    %c0_103 = arith.constant 0 : index
    %127 = vector.load %arg3[%c2_100, %c2_101, %c0_102, %c0_103] : memref<3x4x1x32xf32, #tpu.memory_space<vmem>>, vector<1x1x1x32xf32>
    %128 = vector.shape_cast %127 : vector<1x1x1x32xf32> to vector<1x32xf32>
    %129 = arith.truncf %126 : vector<32x128xf32> to vector<32x128xbf16>
    %cst_104 = arith.constant dense<0.000000e+00> : vector<16x32xf32>
    %130 = tpu.matmul %2, %129, %cst_104 {dimension_numbers = #tpu.dot_dimension_numbers<[1], [1], [0], [0], [0, 0, 1, 0], [], []>} : vector<16x128xbf16>, vector<32x128xbf16>, vector<16x32xf32> -> vector<16x32xf32>
    %131 = vector.broadcast %128 : vector<1x32xf32> to vector<16x32xf32>
    %132 = arith.addf %130, %131 : vector<16x32xf32>
    %c2_105 = arith.constant 2 : index
    %c0_106 = arith.constant 0 : index
    %c0_107 = arith.constant 0 : index
    %133 = vector.load %arg4[%c2_105, %c0_106, %c0_107] : memref<4x128x32xf32, #tpu.memory_space<vmem>>, vector<1x128x32xf32>
    %134 = vector.shape_cast %133 : vector<1x128x32xf32> to vector<128x32xf32>
    %135 = arith.truncf %116 : vector<16x32xf32> to vector<16x32xbf16>
    %136 = arith.truncf %124 : vector<16x32xf32> to vector<16x32xbf16>
    %cst_108 = arith.constant dense<0.000000e+00> : vector<16x16xf32>
    %137 = tpu.matmul %135, %136, %cst_108 {dimension_numbers = #tpu.dot_dimension_numbers<[1], [1], [0], [0], [0, 0, 1, 0], [], []>} : vector<16x32xbf16>, vector<16x32xbf16>, vector<16x16xf32> -> vector<16x16xf32>
    %cst_109 = arith.constant 0.176776692 : f32
    %138 = vector.broadcast %cst_109 : f32 to vector<16x16xf32>
    %139 = arith.mulf %137, %138 : vector<16x16xf32>
    %140 = arith.addf %139, %7 : vector<16x16xf32>
    %cst_110 = arith.constant dense<0xFF800000> : vector<16xf32>
    %141 = vector.multi_reduction <maximumf>, %140, %cst_110 [1] : vector<16x16xf32> to vector<16xf32>
    %142 = vector.shape_cast %141 : vector<16xf32> to vector<16x1xf32>
    %143 = vector.broadcast %142 : vector<16x1xf32> to vector<16x16xf32>
    %144 = arith.subf %140, %143 : vector<16x16xf32>
    %145 = math.exp %144 : vector<16x16xf32>
    %cst_111 = arith.constant dense<0.000000e+00> : vector<16xf32>
    %146 = vector.multi_reduction <add>, %145, %cst_111 [1] : vector<16x16xf32> to vector<16xf32>
    %147 = vector.shape_cast %146 : vector<16xf32> to vector<16x1xf32>
    %148 = tpu.reciprocal %147 {approx = true} : vector<16x1xf32> -> vector<16x1xf32>
    %149 = vector.broadcast %148 : vector<16x1xf32> to vector<16x16xf32>
    %150 = arith.mulf %145, %149 : vector<16x16xf32>
    %151 = arith.truncf %150 : vector<16x16xf32> to vector<16x16xbf16>
    %152 = arith.truncf %132 : vector<16x32xf32> to vector<16x32xbf16>
    %cst_112 = arith.constant dense<0.000000e+00> : vector<16x32xf32>
    %153 = tpu.matmul %151, %152, %cst_112 {dimension_numbers = #tpu.dot_dimension_numbers<[1], [0], [0], [1], [0, 0, 1, 1], [], []>} : vector<16x16xbf16>, vector<16x32xbf16>, vector<16x32xf32> -> vector<16x32xf32>
    %154 = arith.truncf %153 : vector<16x32xf32> to vector<16x32xbf16>
    %155 = arith.truncf %134 : vector<128x32xf32> to vector<128x32xbf16>
    %cst_113 = arith.constant dense<0.000000e+00> : vector<16x128xf32>
    %156 = tpu.matmul %154, %155, %cst_113 {dimension_numbers = #tpu.dot_dimension_numbers<[1], [1], [0], [0], [0, 0, 1, 0], [], []>} : vector<16x32xbf16>, vector<128x32xbf16>, vector<16x128xf32> -> vector<16x128xf32>
    %157 = arith.addf %108, %156 : vector<16x128xf32>
    %c0_114 = arith.constant 0 : index
    %c3 = arith.constant 3 : index
    %c0_115 = arith.constant 0 : index
    %c0_116 = arith.constant 0 : index
    %158 = vector.load %arg2[%c0_114, %c3, %c0_115, %c0_116] : memref<3x4x32x128xf32, #tpu.memory_space<vmem>>, vector<1x1x32x128xf32>
    %159 = vector.shape_cast %158 : vector<1x1x32x128xf32> to vector<32x128xf32>
    %c0_117 = arith.constant 0 : index
    %c3_118 = arith.constant 3 : index
    %c0_119 = arith.constant 0 : index
    %c0_120 = arith.constant 0 : index
    %160 = vector.load %arg3[%c0_117, %c3_118, %c0_119, %c0_120] : memref<3x4x1x32xf32, #tpu.memory_space<vmem>>, vector<1x1x1x32xf32>
    %161 = vector.shape_cast %160 : vector<1x1x1x32xf32> to vector<1x32xf32>
    %162 = arith.truncf %159 : vector<32x128xf32> to vector<32x128xbf16>
    %cst_121 = arith.constant dense<0.000000e+00> : vector<16x32xf32>
    %163 = tpu.matmul %2, %162, %cst_121 {dimension_numbers = #tpu.dot_dimension_numbers<[1], [1], [0], [0], [0, 0, 1, 0], [], []>} : vector<16x128xbf16>, vector<32x128xbf16>, vector<16x32xf32> -> vector<16x32xf32>
    %164 = vector.broadcast %161 : vector<1x32xf32> to vector<16x32xf32>
    %165 = arith.addf %163, %164 : vector<16x32xf32>
    %c1_122 = arith.constant 1 : index
    %c3_123 = arith.constant 3 : index
    %c0_124 = arith.constant 0 : index
    %c0_125 = arith.constant 0 : index
    %166 = vector.load %arg2[%c1_122, %c3_123, %c0_124, %c0_125] : memref<3x4x32x128xf32, #tpu.memory_space<vmem>>, vector<1x1x32x128xf32>
    %167 = vector.shape_cast %166 : vector<1x1x32x128xf32> to vector<32x128xf32>
    %c1_126 = arith.constant 1 : index
    %c3_127 = arith.constant 3 : index
    %c0_128 = arith.constant 0 : index
    %c0_129 = arith.constant 0 : index
    %168 = vector.load %arg3[%c1_126, %c3_127, %c0_128, %c0_129] : memref<3x4x1x32xf32, #tpu.memory_space<vmem>>, vector<1x1x1x32xf32>
    %169 = vector.shape_cast %168 : vector<1x1x1x32xf32> to vector<1x32xf32>
    %170 = arith.truncf %167 : vector<32x128xf32> to vector<32x128xbf16>
    %cst_130 = arith.constant dense<0.000000e+00> : vector<16x32xf32>
    %171 = tpu.matmul %2, %170, %cst_130 {dimension_numbers = #tpu.dot_dimension_numbers<[1], [1], [0], [0], [0, 0, 1, 0], [], []>} : vector<16x128xbf16>, vector<32x128xbf16>, vector<16x32xf32> -> vector<16x32xf32>
    %172 = vector.broadcast %169 : vector<1x32xf32> to vector<16x32xf32>
    %173 = arith.addf %171, %172 : vector<16x32xf32>
    %c2_131 = arith.constant 2 : index
    %c3_132 = arith.constant 3 : index
    %c0_133 = arith.constant 0 : index
    %c0_134 = arith.constant 0 : index
    %174 = vector.load %arg2[%c2_131, %c3_132, %c0_133, %c0_134] : memref<3x4x32x128xf32, #tpu.memory_space<vmem>>, vector<1x1x32x128xf32>
    %175 = vector.shape_cast %174 : vector<1x1x32x128xf32> to vector<32x128xf32>
    %c2_135 = arith.constant 2 : index
    %c3_136 = arith.constant 3 : index
    %c0_137 = arith.constant 0 : index
    %c0_138 = arith.constant 0 : index
    %176 = vector.load %arg3[%c2_135, %c3_136, %c0_137, %c0_138] : memref<3x4x1x32xf32, #tpu.memory_space<vmem>>, vector<1x1x1x32xf32>
    %177 = vector.shape_cast %176 : vector<1x1x1x32xf32> to vector<1x32xf32>
    %178 = arith.truncf %175 : vector<32x128xf32> to vector<32x128xbf16>
    %cst_139 = arith.constant dense<0.000000e+00> : vector<16x32xf32>
    %179 = tpu.matmul %2, %178, %cst_139 {dimension_numbers = #tpu.dot_dimension_numbers<[1], [1], [0], [0], [0, 0, 1, 0], [], []>} : vector<16x128xbf16>, vector<32x128xbf16>, vector<16x32xf32> -> vector<16x32xf32>
    %180 = vector.broadcast %177 : vector<1x32xf32> to vector<16x32xf32>
    %181 = arith.addf %179, %180 : vector<16x32xf32>
    %c3_140 = arith.constant 3 : index
    %c0_141 = arith.constant 0 : index
    %c0_142 = arith.constant 0 : index
    %182 = vector.load %arg4[%c3_140, %c0_141, %c0_142] : memref<4x128x32xf32, #tpu.memory_space<vmem>>, vector<1x128x32xf32>
    %183 = vector.shape_cast %182 : vector<1x128x32xf32> to vector<128x32xf32>
    %184 = arith.truncf %165 : vector<16x32xf32> to vector<16x32xbf16>
    %185 = arith.truncf %173 : vector<16x32xf32> to vector<16x32xbf16>
    %cst_143 = arith.constant dense<0.000000e+00> : vector<16x16xf32>
    %186 = tpu.matmul %184, %185, %cst_143 {dimension_numbers = #tpu.dot_dimension_numbers<[1], [1], [0], [0], [0, 0, 1, 0], [], []>} : vector<16x32xbf16>, vector<16x32xbf16>, vector<16x16xf32> -> vector<16x16xf32>
    %cst_144 = arith.constant 0.176776692 : f32
    %187 = vector.broadcast %cst_144 : f32 to vector<16x16xf32>
    %188 = arith.mulf %186, %187 : vector<16x16xf32>
    %189 = arith.addf %188, %7 : vector<16x16xf32>
    %cst_145 = arith.constant dense<0xFF800000> : vector<16xf32>
    %190 = vector.multi_reduction <maximumf>, %189, %cst_145 [1] : vector<16x16xf32> to vector<16xf32>
    %191 = vector.shape_cast %190 : vector<16xf32> to vector<16x1xf32>
    %192 = vector.broadcast %191 : vector<16x1xf32> to vector<16x16xf32>
    %193 = arith.subf %189, %192 : vector<16x16xf32>
    %194 = math.exp %193 : vector<16x16xf32>
    %cst_146 = arith.constant dense<0.000000e+00> : vector<16xf32>
    %195 = vector.multi_reduction <add>, %194, %cst_146 [1] : vector<16x16xf32> to vector<16xf32>
    %196 = vector.shape_cast %195 : vector<16xf32> to vector<16x1xf32>
    %197 = tpu.reciprocal %196 {approx = true} : vector<16x1xf32> -> vector<16x1xf32>
    %198 = vector.broadcast %197 : vector<16x1xf32> to vector<16x16xf32>
    %199 = arith.mulf %194, %198 : vector<16x16xf32>
    %200 = arith.truncf %199 : vector<16x16xf32> to vector<16x16xbf16>
    %201 = arith.truncf %181 : vector<16x32xf32> to vector<16x32xbf16>
    %cst_147 = arith.constant dense<0.000000e+00> : vector<16x32xf32>
    %202 = tpu.matmul %200, %201, %cst_147 {dimension_numbers = #tpu.dot_dimension_numbers<[1], [0], [0], [1], [0, 0, 1, 1], [], []>} : vector<16x16xbf16>, vector<16x32xbf16>, vector<16x32xf32> -> vector<16x32xf32>
    %203 = arith.truncf %202 : vector<16x32xf32> to vector<16x32xbf16>
    %204 = arith.truncf %183 : vector<128x32xf32> to vector<128x32xbf16>
    %cst_148 = arith.constant dense<0.000000e+00> : vector<16x128xf32>
    %205 = tpu.matmul %203, %204, %cst_148 {dimension_numbers = #tpu.dot_dimension_numbers<[1], [1], [0], [0], [0, 0, 1, 0], [], []>} : vector<16x32xbf16>, vector<128x32xbf16>, vector<16x128xf32> -> vector<16x128xf32>
    %206 = arith.addf %157, %205 : vector<16x128xf32>
    %c0_149 = arith.constant 0 : index
    %c0_150 = arith.constant 0 : index
    %207 = vector.load %arg8[%c0_149, %c0_150] : memref<1x128xf32, #tpu.memory_space<vmem>>, vector<1x128xf32>
    %c0_151 = arith.constant 0 : index
    %c0_152 = arith.constant 0 : index
    %208 = vector.load %arg9[%c0_151, %c0_152] : memref<1x128xf32, #tpu.memory_space<vmem>>, vector<1x128xf32>
    %cst_153 = arith.constant dense<0.000000e+00> : vector<16xf32>
    %209 = vector.multi_reduction <add>, %206, %cst_153 [1] : vector<16x128xf32> to vector<16xf32>
    %210 = vector.shape_cast %209 : vector<16xf32> to vector<16x1xf32>
    %cst_154 = arith.constant 1.280000e+02 : f32
    %211 = vector.broadcast %cst_154 : f32 to vector<16x1xf32>
    %212 = arith.divf %210, %211 : vector<16x1xf32>
    %213 = vector.broadcast %212 : vector<16x1xf32> to vector<16x128xf32>
    %214 = arith.subf %206, %213 : vector<16x128xf32>
    %215 = arith.mulf %214, %214 : vector<16x128xf32>
    %cst_155 = arith.constant dense<0.000000e+00> : vector<16xf32>
    %216 = vector.multi_reduction <add>, %215, %cst_155 [1] : vector<16x128xf32> to vector<16xf32>
    %217 = vector.shape_cast %216 : vector<16xf32> to vector<16x1xf32>
    %cst_156 = arith.constant 1.280000e+02 : f32
    %218 = vector.broadcast %cst_156 : f32 to vector<16x1xf32>
    %219 = arith.divf %217, %218 : vector<16x1xf32>
    %cst_157 = arith.constant 9.99999974E-6 : f32
    %220 = vector.broadcast %cst_157 : f32 to vector<16x1xf32>
    %221 = arith.addf %219, %220 : vector<16x1xf32>
    %222 = math.rsqrt %221 : vector<16x1xf32>
    %223 = vector.broadcast %222 : vector<16x1xf32> to vector<16x128xf32>
    %224 = arith.mulf %214, %223 : vector<16x128xf32>
    %225 = vector.broadcast %207 : vector<1x128xf32> to vector<16x128xf32>
    %226 = arith.mulf %224, %225 : vector<16x128xf32>
    %227 = vector.broadcast %208 : vector<1x128xf32> to vector<16x128xf32>
    %228 = arith.addf %226, %227 : vector<16x128xf32>
    %c0_158 = arith.constant 0 : index
    %c0_159 = arith.constant 0 : index
    %c0_160 = arith.constant 0 : index
    %229 = vector.load %arg10[%c0_158, %c0_159, %c0_160] : memref<1x16x128xf32, #tpu.memory_space<vmem>>, vector<1x16x128xf32>
    %230 = vector.shape_cast %229 : vector<1x16x128xf32> to vector<16x128xf32>
    %231 = vector.shape_cast %228 : vector<16x128xf32> to vector<1x16x128xf32>
    tpu.vector_store %arg10[%c0_158, %c0_159, %c0_160], %231 {strides = array<i32>} : memref<1x16x128xf32, #tpu.memory_space<vmem>>, vector<1x16x128xf32>,
    return
  }
  func.func @transform_0(%arg0: i32) -> (i32, i32, i32) {
    %c0_i32 = arith.constant 0 : i32
    %c0_i32_0 = arith.constant 0 : i32
    %c0_i32_1 = arith.constant 0 : i32
    return %arg0, %c0_i32, %c0_i32_0 : i32, i32, i32
  }
  func.func @transform_1(%arg0: i32) -> (i32, i32, i32, i32) {
    %c0_i32 = arith.constant 0 : i32
    %c0_i32_0 = arith.constant 0 : i32
    %c0_i32_1 = arith.constant 0 : i32
    %c0_i32_2 = arith.constant 0 : i32
    %c0_i32_3 = arith.constant 0 : i32
    return %c0_i32, %c0_i32_0, %c0_i32_1, %c0_i32_2 : i32, i32, i32, i32
  }
  func.func @transform_2(%arg0: i32) -> (i32, i32, i32, i32) {
    %c0_i32 = arith.constant 0 : i32
    %c0_i32_0 = arith.constant 0 : i32
    %c0_i32_1 = arith.constant 0 : i32
    %c0_i32_2 = arith.constant 0 : i32
    %c0_i32_3 = arith.constant 0 : i32
    return %c0_i32, %c0_i32_0, %c0_i32_1, %c0_i32_2 : i32, i32, i32, i32
  }
  func.func @transform_3(%arg0: i32) -> (i32, i32, i32) {
    %c0_i32 = arith.constant 0 : i32
    %c0_i32_0 = arith.constant 0 : i32
    %c0_i32_1 = arith.constant 0 : i32
    %c0_i32_2 = arith.constant 0 : i32
    return %c0_i32, %c0_i32_0, %c0_i32_1 : i32, i32, i32
  }
  func.func @transform_4(%arg0: i32) -> (i32, i32) {
    %c0_i32 = arith.constant 0 : i32
    %c0_i32_0 = arith.constant 0 : i32
    %c0_i32_1 = arith.constant 0 : i32
    return %c0_i32, %c0_i32_0 : i32, i32
  }
  func.func @transform_5(%arg0: i32) -> (i32, i32) {
    %c0_i32 = arith.constant 0 : i32
    %c0_i32_0 = arith.constant 0 : i32
    %c0_i32_1 = arith.constant 0 : i32
    return %c0_i32, %c0_i32_0 : i32, i32
  }
  func.func @transform_6(%arg0: i32) -> (i32, i32, i32) {
    %c0_i32 = arith.constant 0 : i32
    %c0_i32_0 = arith.constant 0 : i32
    %c0_i32_1 = arith.constant 0 : i32
    return %arg0, %c0_i32, %c0_i32_0 : i32, i32, i32
  }
  func.func @transform_7(%arg0: i32) -> (i32, i32) {
    %c0_i32 = arith.constant 0 : i32
    %c0_i32_0 = arith.constant 0 : i32
    %c0_i32_1 = arith.constant 0 : i32
    return %c0_i32, %c0_i32_0 : i32, i32
  }
  func.func @transform_8(%arg0: i32) -> (i32, i32) {
    %c0_i32 = arith.constant 0 : i32
    %c0_i32_0 = arith.constant 0 : i32
    %c0_i32_1 = arith.constant 0 : i32
    return %c0_i32, %c0_i32_0 : i32, i32
  }
  func.func @transform_9(%arg0: i32) -> (i32, i32, i32) {
    %c0_i32 = arith.constant 0 : i32
    %c0_i32_0 = arith.constant 0 : i32
    %c0_i32_1 = arith.constant 0 : i32
    return %arg0, %c0_i32, %c0_i32_0 : i32, i32, i32
  }
}

module attributes {stable_mosaic.version = 11 : i64} {
  func.func @_ffn_ln_kernel(%arg0: i32, %arg1: memref<64x128xf32, #tpu.memory_space<vmem>>, %arg2: memref<256x128xf32, #tpu.memory_space<vmem>>, %arg3: memref<1x256xf32, #tpu.memory_space<vmem>>, %arg4: memref<128x256xf32, #tpu.memory_space<vmem>>, %arg5: memref<1x128xf32, #tpu.memory_space<vmem>>, %arg6: memref<1x128xf32, #tpu.memory_space<vmem>>, %arg7: memref<1x128xf32, #tpu.memory_space<vmem>>, %arg8: memref<64x128xf32, #tpu.memory_space<vmem>>) attributes {dimension_semantics = [#tpu.dimension_semantics<parallel>], iteration_bounds = array<i64: 1>, scalar_prefetch = 0 : i64, scratch_operands = 0 : i64, tpu.core_type = #tpu.core_type<tc>, window_params = [{transform_indices = @transform_0, window_bounds = array<i64: 64, 128>}, {pipeline_mode = #tpu.pipeline_mode<synchronous>, transform_indices = @transform_1, window_bounds = array<i64: 256, 128>}, {pipeline_mode = #tpu.pipeline_mode<synchronous>, transform_indices = @transform_2, window_bounds = array<i64: 1, 256>}, {pipeline_mode = #tpu.pipeline_mode<synchronous>, transform_indices = @transform_3, window_bounds = array<i64: 128, 256>}, {pipeline_mode = #tpu.pipeline_mode<synchronous>, transform_indices = @transform_4, window_bounds = array<i64: 1, 128>}, {pipeline_mode = #tpu.pipeline_mode<synchronous>, transform_indices = @transform_5, window_bounds = array<i64: 1, 128>}, {pipeline_mode = #tpu.pipeline_mode<synchronous>, transform_indices = @transform_6, window_bounds = array<i64: 1, 128>}, {transform_indices = @transform_7, window_bounds = array<i64: 64, 128>}]} {
    %c0 = arith.constant 0 : index
    %c0_0 = arith.constant 0 : index
    %0 = vector.load %arg1[%c0, %c0_0] : memref<64x128xf32, #tpu.memory_space<vmem>>, vector<64x128xf32>
    %1 = arith.truncf %0 : vector<64x128xf32> to vector<64x128xbf16>
    %c0_1 = arith.constant 0 : index
    %c0_2 = arith.constant 0 : index
    %2 = vector.load %arg2[%c0_1, %c0_2] : memref<256x128xf32, #tpu.memory_space<vmem>>, vector<256x128xf32>
    %3 = arith.truncf %2 : vector<256x128xf32> to vector<256x128xbf16>
    %cst = arith.constant dense<0.000000e+00> : vector<64x256xf32>
    %4 = tpu.matmul %1, %3, %cst {dimension_numbers = #tpu.dot_dimension_numbers<[1], [1], [0], [0], [0, 0, 1, 0], [], []>} : vector<64x128xbf16>, vector<256x128xbf16>, vector<64x256xf32> -> vector<64x256xf32>
    %c0_3 = arith.constant 0 : index
    %c0_4 = arith.constant 0 : index
    %5 = vector.load %arg3[%c0_3, %c0_4] : memref<1x256xf32, #tpu.memory_space<vmem>>, vector<1x256xf32>
    %6 = vector.broadcast %5 : vector<1x256xf32> to vector<64x256xf32>
    %7 = arith.addf %4, %6 : vector<64x256xf32>
    %cst_5 = arith.constant 0.000000e+00 : f32
    %8 = vector.broadcast %cst_5 : f32 to vector<64x256xf32>
    %9 = arith.maximumf %7, %8 : vector<64x256xf32>
    %10 = arith.truncf %9 : vector<64x256xf32> to vector<64x256xbf16>
    %c0_6 = arith.constant 0 : index
    %c0_7 = arith.constant 0 : index
    %11 = vector.load %arg4[%c0_6, %c0_7] : memref<128x256xf32, #tpu.memory_space<vmem>>, vector<128x256xf32>
    %12 = arith.truncf %11 : vector<128x256xf32> to vector<128x256xbf16>
    %cst_8 = arith.constant dense<0.000000e+00> : vector<64x128xf32>
    %13 = tpu.matmul %10, %12, %cst_8 {dimension_numbers = #tpu.dot_dimension_numbers<[1], [1], [0], [0], [0, 0, 1, 0], [], []>} : vector<64x256xbf16>, vector<128x256xbf16>, vector<64x128xf32> -> vector<64x128xf32>
    %14 = arith.addf %0, %13 : vector<64x128xf32>
    %c0_9 = arith.constant 0 : index
    %c0_10 = arith.constant 0 : index
    %15 = vector.load %arg5[%c0_9, %c0_10] : memref<1x128xf32, #tpu.memory_space<vmem>>, vector<1x128xf32>
    %16 = vector.broadcast %15 : vector<1x128xf32> to vector<64x128xf32>
    %17 = arith.addf %14, %16 : vector<64x128xf32>
    %c0_11 = arith.constant 0 : index
    %c0_12 = arith.constant 0 : index
    %18 = vector.load %arg6[%c0_11, %c0_12] : memref<1x128xf32, #tpu.memory_space<vmem>>, vector<1x128xf32>
    %c0_13 = arith.constant 0 : index
    %c0_14 = arith.constant 0 : index
    %19 = vector.load %arg7[%c0_13, %c0_14] : memref<1x128xf32, #tpu.memory_space<vmem>>, vector<1x128xf32>
    %cst_15 = arith.constant dense<0.000000e+00> : vector<64xf32>
    %20 = vector.multi_reduction <add>, %17, %cst_15 [1] : vector<64x128xf32> to vector<64xf32>
    %21 = vector.shape_cast %20 : vector<64xf32> to vector<64x1xf32>
    %cst_16 = arith.constant 1.280000e+02 : f32
    %22 = vector.broadcast %cst_16 : f32 to vector<64x1xf32>
    %23 = arith.divf %21, %22 : vector<64x1xf32>
    %24 = vector.broadcast %23 : vector<64x1xf32> to vector<64x128xf32>
    %25 = arith.subf %17, %24 : vector<64x128xf32>
    %26 = arith.mulf %25, %25 : vector<64x128xf32>
    %cst_17 = arith.constant dense<0.000000e+00> : vector<64xf32>
    %27 = vector.multi_reduction <add>, %26, %cst_17 [1] : vector<64x128xf32> to vector<64xf32>
    %28 = vector.shape_cast %27 : vector<64xf32> to vector<64x1xf32>
    %cst_18 = arith.constant 1.280000e+02 : f32
    %29 = vector.broadcast %cst_18 : f32 to vector<64x1xf32>
    %30 = arith.divf %28, %29 : vector<64x1xf32>
    %cst_19 = arith.constant 9.99999974E-6 : f32
    %31 = vector.broadcast %cst_19 : f32 to vector<64x1xf32>
    %32 = arith.addf %30, %31 : vector<64x1xf32>
    %33 = math.rsqrt %32 : vector<64x1xf32>
    %34 = vector.broadcast %33 : vector<64x1xf32> to vector<64x128xf32>
    %35 = arith.mulf %25, %34 : vector<64x128xf32>
    %36 = vector.broadcast %18 : vector<1x128xf32> to vector<64x128xf32>
    %37 = arith.mulf %35, %36 : vector<64x128xf32>
    %38 = vector.broadcast %19 : vector<1x128xf32> to vector<64x128xf32>
    %39 = arith.addf %37, %38 : vector<64x128xf32>
    %c0_20 = arith.constant 0 : index
    %c0_21 = arith.constant 0 : index
    %40 = vector.load %arg8[%c0_20, %c0_21] : memref<64x128xf32, #tpu.memory_space<vmem>>, vector<64x128xf32>
    tpu.vector_store %arg8[%c0_20, %c0_21], %39 {strides = array<i32>} : memref<64x128xf32, #tpu.memory_space<vmem>>, vector<64x128xf32>,
    return
  }
  func.func @transform_0(%arg0: i32) -> (i32, i32) {
    %c0_i32 = arith.constant 0 : i32
    %c0_i32_0 = arith.constant 0 : i32
    return %arg0, %c0_i32 : i32, i32
  }
  func.func @transform_1(%arg0: i32) -> (i32, i32) {
    %c0_i32 = arith.constant 0 : i32
    %c0_i32_0 = arith.constant 0 : i32
    %c0_i32_1 = arith.constant 0 : i32
    return %c0_i32, %c0_i32_0 : i32, i32
  }
  func.func @transform_2(%arg0: i32) -> (i32, i32) {
    %c0_i32 = arith.constant 0 : i32
    %c0_i32_0 = arith.constant 0 : i32
    %c0_i32_1 = arith.constant 0 : i32
    return %c0_i32, %c0_i32_0 : i32, i32
  }
  func.func @transform_3(%arg0: i32) -> (i32, i32) {
    %c0_i32 = arith.constant 0 : i32
    %c0_i32_0 = arith.constant 0 : i32
    %c0_i32_1 = arith.constant 0 : i32
    return %c0_i32, %c0_i32_0 : i32, i32
  }
  func.func @transform_4(%arg0: i32) -> (i32, i32) {
    %c0_i32 = arith.constant 0 : i32
    %c0_i32_0 = arith.constant 0 : i32
    %c0_i32_1 = arith.constant 0 : i32
    return %c0_i32, %c0_i32_0 : i32, i32
  }
  func.func @transform_5(%arg0: i32) -> (i32, i32) {
    %c0_i32 = arith.constant 0 : i32
    %c0_i32_0 = arith.constant 0 : i32
    %c0_i32_1 = arith.constant 0 : i32
    return %c0_i32, %c0_i32_0 : i32, i32
  }
  func.func @transform_6(%arg0: i32) -> (i32, i32) {
    %c0_i32 = arith.constant 0 : i32
    %c0_i32_0 = arith.constant 0 : i32
    %c0_i32_1 = arith.constant 0 : i32
    return %c0_i32, %c0_i32_0 : i32, i32
  }
  func.func @transform_7(%arg0: i32) -> (i32, i32) {
    %c0_i32 = arith.constant 0 : i32
    %c0_i32_0 = arith.constant 0 : i32
    return %arg0, %c0_i32 : i32, i32
  }
}

module attributes {stable_mosaic.version = 11 : i64} {
  func.func @_ln_kernel(%arg0: i32, %arg1: memref<64x128xf32, #tpu.memory_space<vmem>>, %arg2: memref<1x128xf32, #tpu.memory_space<vmem>>, %arg3: memref<1x128xf32, #tpu.memory_space<vmem>>, %arg4: memref<64x128xf32, #tpu.memory_space<vmem>>) attributes {dimension_semantics = [#tpu.dimension_semantics<parallel>], iteration_bounds = array<i64: 1>, scalar_prefetch = 0 : i64, scratch_operands = 0 : i64, tpu.core_type = #tpu.core_type<tc>, window_params = [{transform_indices = @transform_0, window_bounds = array<i64: 64, 128>}, {pipeline_mode = #tpu.pipeline_mode<synchronous>, transform_indices = @transform_1, window_bounds = array<i64: 1, 128>}, {pipeline_mode = #tpu.pipeline_mode<synchronous>, transform_indices = @transform_2, window_bounds = array<i64: 1, 128>}, {transform_indices = @transform_3, window_bounds = array<i64: 64, 128>}]} {
    %c0 = arith.constant 0 : index
    %c0_0 = arith.constant 0 : index
    %0 = vector.load %arg1[%c0, %c0_0] : memref<64x128xf32, #tpu.memory_space<vmem>>, vector<64x128xf32>
    %c0_1 = arith.constant 0 : index
    %c0_2 = arith.constant 0 : index
    %1 = vector.load %arg2[%c0_1, %c0_2] : memref<1x128xf32, #tpu.memory_space<vmem>>, vector<1x128xf32>
    %c0_3 = arith.constant 0 : index
    %c0_4 = arith.constant 0 : index
    %2 = vector.load %arg3[%c0_3, %c0_4] : memref<1x128xf32, #tpu.memory_space<vmem>>, vector<1x128xf32>
    %cst = arith.constant dense<0.000000e+00> : vector<64xf32>
    %3 = vector.multi_reduction <add>, %0, %cst [1] : vector<64x128xf32> to vector<64xf32>
    %4 = vector.shape_cast %3 : vector<64xf32> to vector<64x1xf32>
    %cst_5 = arith.constant 1.280000e+02 : f32
    %5 = vector.broadcast %cst_5 : f32 to vector<64x1xf32>
    %6 = arith.divf %4, %5 : vector<64x1xf32>
    %7 = vector.broadcast %6 : vector<64x1xf32> to vector<64x128xf32>
    %8 = arith.subf %0, %7 : vector<64x128xf32>
    %9 = arith.mulf %8, %8 : vector<64x128xf32>
    %cst_6 = arith.constant dense<0.000000e+00> : vector<64xf32>
    %10 = vector.multi_reduction <add>, %9, %cst_6 [1] : vector<64x128xf32> to vector<64xf32>
    %11 = vector.shape_cast %10 : vector<64xf32> to vector<64x1xf32>
    %cst_7 = arith.constant 1.280000e+02 : f32
    %12 = vector.broadcast %cst_7 : f32 to vector<64x1xf32>
    %13 = arith.divf %11, %12 : vector<64x1xf32>
    %cst_8 = arith.constant 9.99999974E-6 : f32
    %14 = vector.broadcast %cst_8 : f32 to vector<64x1xf32>
    %15 = arith.addf %13, %14 : vector<64x1xf32>
    %16 = math.rsqrt %15 : vector<64x1xf32>
    %17 = vector.broadcast %16 : vector<64x1xf32> to vector<64x128xf32>
    %18 = arith.mulf %8, %17 : vector<64x128xf32>
    %19 = vector.broadcast %1 : vector<1x128xf32> to vector<64x128xf32>
    %20 = arith.mulf %18, %19 : vector<64x128xf32>
    %21 = vector.broadcast %2 : vector<1x128xf32> to vector<64x128xf32>
    %22 = arith.addf %20, %21 : vector<64x128xf32>
    %c0_9 = arith.constant 0 : index
    %c0_10 = arith.constant 0 : index
    %23 = vector.load %arg4[%c0_9, %c0_10] : memref<64x128xf32, #tpu.memory_space<vmem>>, vector<64x128xf32>
    tpu.vector_store %arg4[%c0_9, %c0_10], %22 {strides = array<i32>} : memref<64x128xf32, #tpu.memory_space<vmem>>, vector<64x128xf32>,
    return
  }
  func.func @transform_0(%arg0: i32) -> (i32, i32) {
    %c0_i32 = arith.constant 0 : i32
    %c0_i32_0 = arith.constant 0 : i32
    return %arg0, %c0_i32 : i32, i32
  }
  func.func @transform_1(%arg0: i32) -> (i32, i32) {
    %c0_i32 = arith.constant 0 : i32
    %c0_i32_0 = arith.constant 0 : i32
    %c0_i32_1 = arith.constant 0 : i32
    return %c0_i32, %c0_i32_0 : i32, i32
  }
  func.func @transform_2(%arg0: i32) -> (i32, i32) {
    %c0_i32 = arith.constant 0 : i32
    %c0_i32_0 = arith.constant 0 : i32
    %c0_i32_1 = arith.constant 0 : i32
    return %c0_i32, %c0_i32_0 : i32, i32
  }
  func.func @transform_3(%arg0: i32) -> (i32, i32) {
    %c0_i32 = arith.constant 0 : i32
    %c0_i32_0 = arith.constant 0 : i32
    return %arg0, %c0_i32 : i32, i32
  }
}

module attributes {stable_mosaic.version = 11 : i64} {
  func.func @_cross_attn_block_kernel(%arg0: i32, %arg1: memref<1x16x128xf32, #tpu.memory_space<vmem>>, %arg2: memref<1x16x128xf32, #tpu.memory_space<vmem>>, %arg3: memref<4x32x128xf32, #tpu.memory_space<vmem>>, %arg4: memref<4x1x32xf32, #tpu.memory_space<vmem>>, %arg5: memref<2x4x32x128xf32, #tpu.memory_space<vmem>>, %arg6: memref<2x4x1x32xf32, #tpu.memory_space<vmem>>, %arg7: memref<4x128x32xf32, #tpu.memory_space<vmem>>, %arg8: memref<1x128xf32, #tpu.memory_space<vmem>>, %arg9: memref<1x1x16xf32, #tpu.memory_space<vmem>>, %arg10: memref<1x128xf32, #tpu.memory_space<vmem>>, %arg11: memref<1x128xf32, #tpu.memory_space<vmem>>, %arg12: memref<1x16x128xf32, #tpu.memory_space<vmem>>) attributes {dimension_semantics = [#tpu.dimension_semantics<parallel>], iteration_bounds = array<i64: 4>, scalar_prefetch = 0 : i64, scratch_operands = 0 : i64, tpu.core_type = #tpu.core_type<tc>, window_params = [{transform_indices = @transform_0, window_bounds = array<i64: 1, 16, 128>}, {transform_indices = @transform_1, window_bounds = array<i64: 1, 16, 128>}, {pipeline_mode = #tpu.pipeline_mode<synchronous>, transform_indices = @transform_2, window_bounds = array<i64: 4, 32, 128>}, {pipeline_mode = #tpu.pipeline_mode<synchronous>, transform_indices = @transform_3, window_bounds = array<i64: 4, 1, 32>}, {pipeline_mode = #tpu.pipeline_mode<synchronous>, transform_indices = @transform_4, window_bounds = array<i64: 2, 4, 32, 128>}, {pipeline_mode = #tpu.pipeline_mode<synchronous>, transform_indices = @transform_5, window_bounds = array<i64: 2, 4, 1, 32>}, {pipeline_mode = #tpu.pipeline_mode<synchronous>, transform_indices = @transform_6, window_bounds = array<i64: 4, 128, 32>}, {pipeline_mode = #tpu.pipeline_mode<synchronous>, transform_indices = @transform_7, window_bounds = array<i64: 1, 128>}, {transform_indices = @transform_8, window_bounds = array<i64: 1, 1, 16>}, {pipeline_mode = #tpu.pipeline_mode<synchronous>, transform_indices = @transform_9, window_bounds = array<i64: 1, 128>}, {pipeline_mode = #tpu.pipeline_mode<synchronous>, transform_indices = @transform_10, window_bounds = array<i64: 1, 128>}, {transform_indices = @transform_11, window_bounds = array<i64: 1, 16, 128>}]} {
    %c0 = arith.constant 0 : index
    %c0_0 = arith.constant 0 : index
    %c0_1 = arith.constant 0 : index
    %0 = vector.load %arg1[%c0, %c0_0, %c0_1] : memref<1x16x128xf32, #tpu.memory_space<vmem>>, vector<1x16x128xf32>
    %1 = vector.shape_cast %0 : vector<1x16x128xf32> to vector<16x128xf32>
    %2 = arith.truncf %1 : vector<16x128xf32> to vector<16x128xbf16>
    %c0_2 = arith.constant 0 : index
    %c0_3 = arith.constant 0 : index
    %c0_4 = arith.constant 0 : index
    %3 = vector.load %arg2[%c0_2, %c0_3, %c0_4] : memref<1x16x128xf32, #tpu.memory_space<vmem>>, vector<1x16x128xf32>
    %4 = vector.shape_cast %3 : vector<1x16x128xf32> to vector<16x128xf32>
    %5 = arith.truncf %4 : vector<16x128xf32> to vector<16x128xbf16>
    %c0_5 = arith.constant 0 : index
    %c0_6 = arith.constant 0 : index
    %c0_7 = arith.constant 0 : index
    %6 = vector.load %arg9[%c0_5, %c0_6, %c0_7] : memref<1x1x16xf32, #tpu.memory_space<vmem>>, vector<1x1x16xf32>
    %7 = vector.shape_cast %6 : vector<1x1x16xf32> to vector<1x16xf32>
    %c0_8 = arith.constant 0 : index
    %c0_9 = arith.constant 0 : index
    %8 = vector.load %arg8[%c0_8, %c0_9] : memref<1x128xf32, #tpu.memory_space<vmem>>, vector<1x128xf32>
    %9 = vector.broadcast %8 : vector<1x128xf32> to vector<16x128xf32>
    %10 = arith.addf %1, %9 : vector<16x128xf32>
    %c0_10 = arith.constant 0 : index
    %c0_11 = arith.constant 0 : index
    %c0_12 = arith.constant 0 : index
    %11 = vector.load %arg3[%c0_10, %c0_11, %c0_12] : memref<4x32x128xf32, #tpu.memory_space<vmem>>, vector<1x32x128xf32>
    %12 = vector.shape_cast %11 : vector<1x32x128xf32> to vector<32x128xf32>
    %c0_13 = arith.constant 0 : index
    %c0_14 = arith.constant 0 : index
    %c0_15 = arith.constant 0 : index
    %13 = vector.load %arg4[%c0_13, %c0_14, %c0_15] : memref<4x1x32xf32, #tpu.memory_space<vmem>>, vector<1x1x32xf32>
    %14 = vector.shape_cast %13 : vector<1x1x32xf32> to vector<1x32xf32>
    %15 = arith.truncf %12 : vector<32x128xf32> to vector<32x128xbf16>
    %cst = arith.constant dense<0.000000e+00> : vector<16x32xf32>
    %16 = tpu.matmul %2, %15, %cst {dimension_numbers = #tpu.dot_dimension_numbers<[1], [1], [0], [0], [0, 0, 1, 0], [], []>} : vector<16x128xbf16>, vector<32x128xbf16>, vector<16x32xf32> -> vector<16x32xf32>
    %17 = vector.broadcast %14 : vector<1x32xf32> to vector<16x32xf32>
    %18 = arith.addf %16, %17 : vector<16x32xf32>
    %c0_16 = arith.constant 0 : index
    %c0_17 = arith.constant 0 : index
    %c0_18 = arith.constant 0 : index
    %c0_19 = arith.constant 0 : index
    %19 = vector.load %arg5[%c0_16, %c0_17, %c0_18, %c0_19] : memref<2x4x32x128xf32, #tpu.memory_space<vmem>>, vector<1x1x32x128xf32>
    %20 = vector.shape_cast %19 : vector<1x1x32x128xf32> to vector<32x128xf32>
    %c0_20 = arith.constant 0 : index
    %c0_21 = arith.constant 0 : index
    %c0_22 = arith.constant 0 : index
    %c0_23 = arith.constant 0 : index
    %21 = vector.load %arg6[%c0_20, %c0_21, %c0_22, %c0_23] : memref<2x4x1x32xf32, #tpu.memory_space<vmem>>, vector<1x1x1x32xf32>
    %22 = vector.shape_cast %21 : vector<1x1x1x32xf32> to vector<1x32xf32>
    %23 = arith.truncf %20 : vector<32x128xf32> to vector<32x128xbf16>
    %cst_24 = arith.constant dense<0.000000e+00> : vector<16x32xf32>
    %24 = tpu.matmul %5, %23, %cst_24 {dimension_numbers = #tpu.dot_dimension_numbers<[1], [1], [0], [0], [0, 0, 1, 0], [], []>} : vector<16x128xbf16>, vector<32x128xbf16>, vector<16x32xf32> -> vector<16x32xf32>
    %25 = vector.broadcast %22 : vector<1x32xf32> to vector<16x32xf32>
    %26 = arith.addf %24, %25 : vector<16x32xf32>
    %c1 = arith.constant 1 : index
    %c0_25 = arith.constant 0 : index
    %c0_26 = arith.constant 0 : index
    %c0_27 = arith.constant 0 : index
    %27 = vector.load %arg5[%c1, %c0_25, %c0_26, %c0_27] : memref<2x4x32x128xf32, #tpu.memory_space<vmem>>, vector<1x1x32x128xf32>
    %28 = vector.shape_cast %27 : vector<1x1x32x128xf32> to vector<32x128xf32>
    %c1_28 = arith.constant 1 : index
    %c0_29 = arith.constant 0 : index
    %c0_30 = arith.constant 0 : index
    %c0_31 = arith.constant 0 : index
    %29 = vector.load %arg6[%c1_28, %c0_29, %c0_30, %c0_31] : memref<2x4x1x32xf32, #tpu.memory_space<vmem>>, vector<1x1x1x32xf32>
    %30 = vector.shape_cast %29 : vector<1x1x1x32xf32> to vector<1x32xf32>
    %31 = arith.truncf %28 : vector<32x128xf32> to vector<32x128xbf16>
    %cst_32 = arith.constant dense<0.000000e+00> : vector<16x32xf32>
    %32 = tpu.matmul %5, %31, %cst_32 {dimension_numbers = #tpu.dot_dimension_numbers<[1], [1], [0], [0], [0, 0, 1, 0], [], []>} : vector<16x128xbf16>, vector<32x128xbf16>, vector<16x32xf32> -> vector<16x32xf32>
    %33 = vector.broadcast %30 : vector<1x32xf32> to vector<16x32xf32>
    %34 = arith.addf %32, %33 : vector<16x32xf32>
    %c0_33 = arith.constant 0 : index
    %c0_34 = arith.constant 0 : index
    %c0_35 = arith.constant 0 : index
    %35 = vector.load %arg7[%c0_33, %c0_34, %c0_35] : memref<4x128x32xf32, #tpu.memory_space<vmem>>, vector<1x128x32xf32>
    %36 = vector.shape_cast %35 : vector<1x128x32xf32> to vector<128x32xf32>
    %37 = arith.truncf %18 : vector<16x32xf32> to vector<16x32xbf16>
    %38 = arith.truncf %26 : vector<16x32xf32> to vector<16x32xbf16>
    %cst_36 = arith.constant dense<0.000000e+00> : vector<16x16xf32>
    %39 = tpu.matmul %37, %38, %cst_36 {dimension_numbers = #tpu.dot_dimension_numbers<[1], [1], [0], [0], [0, 0, 1, 0], [], []>} : vector<16x32xbf16>, vector<16x32xbf16>, vector<16x16xf32> -> vector<16x16xf32>
    %cst_37 = arith.constant 0.176776692 : f32
    %40 = vector.broadcast %cst_37 : f32 to vector<16x16xf32>
    %41 = arith.mulf %39, %40 : vector<16x16xf32>
    %42 = vector.broadcast %7 : vector<1x16xf32> to vector<16x16xf32>
    %43 = arith.addf %41, %42 : vector<16x16xf32>
    %cst_38 = arith.constant dense<0xFF800000> : vector<16xf32>
    %44 = vector.multi_reduction <maximumf>, %43, %cst_38 [1] : vector<16x16xf32> to vector<16xf32>
    %45 = vector.shape_cast %44 : vector<16xf32> to vector<16x1xf32>
    %46 = vector.broadcast %45 : vector<16x1xf32> to vector<16x16xf32>
    %47 = arith.subf %43, %46 : vector<16x16xf32>
    %48 = math.exp %47 : vector<16x16xf32>
    %cst_39 = arith.constant dense<0.000000e+00> : vector<16xf32>
    %49 = vector.multi_reduction <add>, %48, %cst_39 [1] : vector<16x16xf32> to vector<16xf32>
    %50 = vector.shape_cast %49 : vector<16xf32> to vector<16x1xf32>
    %51 = tpu.reciprocal %50 {approx = true} : vector<16x1xf32> -> vector<16x1xf32>
    %52 = vector.broadcast %51 : vector<16x1xf32> to vector<16x16xf32>
    %53 = arith.mulf %48, %52 : vector<16x16xf32>
    %54 = arith.truncf %53 : vector<16x16xf32> to vector<16x16xbf16>
    %55 = arith.truncf %34 : vector<16x32xf32> to vector<16x32xbf16>
    %cst_40 = arith.constant dense<0.000000e+00> : vector<16x32xf32>
    %56 = tpu.matmul %54, %55, %cst_40 {dimension_numbers = #tpu.dot_dimension_numbers<[1], [0], [0], [1], [0, 0, 1, 1], [], []>} : vector<16x16xbf16>, vector<16x32xbf16>, vector<16x32xf32> -> vector<16x32xf32>
    %57 = arith.truncf %56 : vector<16x32xf32> to vector<16x32xbf16>
    %58 = arith.truncf %36 : vector<128x32xf32> to vector<128x32xbf16>
    %cst_41 = arith.constant dense<0.000000e+00> : vector<16x128xf32>
    %59 = tpu.matmul %57, %58, %cst_41 {dimension_numbers = #tpu.dot_dimension_numbers<[1], [1], [0], [0], [0, 0, 1, 0], [], []>} : vector<16x32xbf16>, vector<128x32xbf16>, vector<16x128xf32> -> vector<16x128xf32>
    %60 = arith.addf %10, %59 : vector<16x128xf32>
    %c1_42 = arith.constant 1 : index
    %c0_43 = arith.constant 0 : index
    %c0_44 = arith.constant 0 : index
    %61 = vector.load %arg3[%c1_42, %c0_43, %c0_44] : memref<4x32x128xf32, #tpu.memory_space<vmem>>, vector<1x32x128xf32>
    %62 = vector.shape_cast %61 : vector<1x32x128xf32> to vector<32x128xf32>
    %c1_45 = arith.constant 1 : index
    %c0_46 = arith.constant 0 : index
    %c0_47 = arith.constant 0 : index
    %63 = vector.load %arg4[%c1_45, %c0_46, %c0_47] : memref<4x1x32xf32, #tpu.memory_space<vmem>>, vector<1x1x32xf32>
    %64 = vector.shape_cast %63 : vector<1x1x32xf32> to vector<1x32xf32>
    %65 = arith.truncf %62 : vector<32x128xf32> to vector<32x128xbf16>
    %cst_48 = arith.constant dense<0.000000e+00> : vector<16x32xf32>
    %66 = tpu.matmul %2, %65, %cst_48 {dimension_numbers = #tpu.dot_dimension_numbers<[1], [1], [0], [0], [0, 0, 1, 0], [], []>} : vector<16x128xbf16>, vector<32x128xbf16>, vector<16x32xf32> -> vector<16x32xf32>
    %67 = vector.broadcast %64 : vector<1x32xf32> to vector<16x32xf32>
    %68 = arith.addf %66, %67 : vector<16x32xf32>
    %c0_49 = arith.constant 0 : index
    %c1_50 = arith.constant 1 : index
    %c0_51 = arith.constant 0 : index
    %c0_52 = arith.constant 0 : index
    %69 = vector.load %arg5[%c0_49, %c1_50, %c0_51, %c0_52] : memref<2x4x32x128xf32, #tpu.memory_space<vmem>>, vector<1x1x32x128xf32>
    %70 = vector.shape_cast %69 : vector<1x1x32x128xf32> to vector<32x128xf32>
    %c0_53 = arith.constant 0 : index
    %c1_54 = arith.constant 1 : index
    %c0_55 = arith.constant 0 : index
    %c0_56 = arith.constant 0 : index
    %71 = vector.load %arg6[%c0_53, %c1_54, %c0_55, %c0_56] : memref<2x4x1x32xf32, #tpu.memory_space<vmem>>, vector<1x1x1x32xf32>
    %72 = vector.shape_cast %71 : vector<1x1x1x32xf32> to vector<1x32xf32>
    %73 = arith.truncf %70 : vector<32x128xf32> to vector<32x128xbf16>
    %cst_57 = arith.constant dense<0.000000e+00> : vector<16x32xf32>
    %74 = tpu.matmul %5, %73, %cst_57 {dimension_numbers = #tpu.dot_dimension_numbers<[1], [1], [0], [0], [0, 0, 1, 0], [], []>} : vector<16x128xbf16>, vector<32x128xbf16>, vector<16x32xf32> -> vector<16x32xf32>
    %75 = vector.broadcast %72 : vector<1x32xf32> to vector<16x32xf32>
    %76 = arith.addf %74, %75 : vector<16x32xf32>
    %c1_58 = arith.constant 1 : index
    %c1_59 = arith.constant 1 : index
    %c0_60 = arith.constant 0 : index
    %c0_61 = arith.constant 0 : index
    %77 = vector.load %arg5[%c1_58, %c1_59, %c0_60, %c0_61] : memref<2x4x32x128xf32, #tpu.memory_space<vmem>>, vector<1x1x32x128xf32>
    %78 = vector.shape_cast %77 : vector<1x1x32x128xf32> to vector<32x128xf32>
    %c1_62 = arith.constant 1 : index
    %c1_63 = arith.constant 1 : index
    %c0_64 = arith.constant 0 : index
    %c0_65 = arith.constant 0 : index
    %79 = vector.load %arg6[%c1_62, %c1_63, %c0_64, %c0_65] : memref<2x4x1x32xf32, #tpu.memory_space<vmem>>, vector<1x1x1x32xf32>
    %80 = vector.shape_cast %79 : vector<1x1x1x32xf32> to vector<1x32xf32>
    %81 = arith.truncf %78 : vector<32x128xf32> to vector<32x128xbf16>
    %cst_66 = arith.constant dense<0.000000e+00> : vector<16x32xf32>
    %82 = tpu.matmul %5, %81, %cst_66 {dimension_numbers = #tpu.dot_dimension_numbers<[1], [1], [0], [0], [0, 0, 1, 0], [], []>} : vector<16x128xbf16>, vector<32x128xbf16>, vector<16x32xf32> -> vector<16x32xf32>
    %83 = vector.broadcast %80 : vector<1x32xf32> to vector<16x32xf32>
    %84 = arith.addf %82, %83 : vector<16x32xf32>
    %c1_67 = arith.constant 1 : index
    %c0_68 = arith.constant 0 : index
    %c0_69 = arith.constant 0 : index
    %85 = vector.load %arg7[%c1_67, %c0_68, %c0_69] : memref<4x128x32xf32, #tpu.memory_space<vmem>>, vector<1x128x32xf32>
    %86 = vector.shape_cast %85 : vector<1x128x32xf32> to vector<128x32xf32>
    %87 = arith.truncf %68 : vector<16x32xf32> to vector<16x32xbf16>
    %88 = arith.truncf %76 : vector<16x32xf32> to vector<16x32xbf16>
    %cst_70 = arith.constant dense<0.000000e+00> : vector<16x16xf32>
    %89 = tpu.matmul %87, %88, %cst_70 {dimension_numbers = #tpu.dot_dimension_numbers<[1], [1], [0], [0], [0, 0, 1, 0], [], []>} : vector<16x32xbf16>, vector<16x32xbf16>, vector<16x16xf32> -> vector<16x16xf32>
    %cst_71 = arith.constant 0.176776692 : f32
    %90 = vector.broadcast %cst_71 : f32 to vector<16x16xf32>
    %91 = arith.mulf %89, %90 : vector<16x16xf32>
    %92 = vector.broadcast %7 : vector<1x16xf32> to vector<16x16xf32>
    %93 = arith.addf %91, %92 : vector<16x16xf32>
    %cst_72 = arith.constant dense<0xFF800000> : vector<16xf32>
    %94 = vector.multi_reduction <maximumf>, %93, %cst_72 [1] : vector<16x16xf32> to vector<16xf32>
    %95 = vector.shape_cast %94 : vector<16xf32> to vector<16x1xf32>
    %96 = vector.broadcast %95 : vector<16x1xf32> to vector<16x16xf32>
    %97 = arith.subf %93, %96 : vector<16x16xf32>
    %98 = math.exp %97 : vector<16x16xf32>
    %cst_73 = arith.constant dense<0.000000e+00> : vector<16xf32>
    %99 = vector.multi_reduction <add>, %98, %cst_73 [1] : vector<16x16xf32> to vector<16xf32>
    %100 = vector.shape_cast %99 : vector<16xf32> to vector<16x1xf32>
    %101 = tpu.reciprocal %100 {approx = true} : vector<16x1xf32> -> vector<16x1xf32>
    %102 = vector.broadcast %101 : vector<16x1xf32> to vector<16x16xf32>
    %103 = arith.mulf %98, %102 : vector<16x16xf32>
    %104 = arith.truncf %103 : vector<16x16xf32> to vector<16x16xbf16>
    %105 = arith.truncf %84 : vector<16x32xf32> to vector<16x32xbf16>
    %cst_74 = arith.constant dense<0.000000e+00> : vector<16x32xf32>
    %106 = tpu.matmul %104, %105, %cst_74 {dimension_numbers = #tpu.dot_dimension_numbers<[1], [0], [0], [1], [0, 0, 1, 1], [], []>} : vector<16x16xbf16>, vector<16x32xbf16>, vector<16x32xf32> -> vector<16x32xf32>
    %107 = arith.truncf %106 : vector<16x32xf32> to vector<16x32xbf16>
    %108 = arith.truncf %86 : vector<128x32xf32> to vector<128x32xbf16>
    %cst_75 = arith.constant dense<0.000000e+00> : vector<16x128xf32>
    %109 = tpu.matmul %107, %108, %cst_75 {dimension_numbers = #tpu.dot_dimension_numbers<[1], [1], [0], [0], [0, 0, 1, 0], [], []>} : vector<16x32xbf16>, vector<128x32xbf16>, vector<16x128xf32> -> vector<16x128xf32>
    %110 = arith.addf %60, %109 : vector<16x128xf32>
    %c2 = arith.constant 2 : index
    %c0_76 = arith.constant 0 : index
    %c0_77 = arith.constant 0 : index
    %111 = vector.load %arg3[%c2, %c0_76, %c0_77] : memref<4x32x128xf32, #tpu.memory_space<vmem>>, vector<1x32x128xf32>
    %112 = vector.shape_cast %111 : vector<1x32x128xf32> to vector<32x128xf32>
    %c2_78 = arith.constant 2 : index
    %c0_79 = arith.constant 0 : index
    %c0_80 = arith.constant 0 : index
    %113 = vector.load %arg4[%c2_78, %c0_79, %c0_80] : memref<4x1x32xf32, #tpu.memory_space<vmem>>, vector<1x1x32xf32>
    %114 = vector.shape_cast %113 : vector<1x1x32xf32> to vector<1x32xf32>
    %115 = arith.truncf %112 : vector<32x128xf32> to vector<32x128xbf16>
    %cst_81 = arith.constant dense<0.000000e+00> : vector<16x32xf32>
    %116 = tpu.matmul %2, %115, %cst_81 {dimension_numbers = #tpu.dot_dimension_numbers<[1], [1], [0], [0], [0, 0, 1, 0], [], []>} : vector<16x128xbf16>, vector<32x128xbf16>, vector<16x32xf32> -> vector<16x32xf32>
    %117 = vector.broadcast %114 : vector<1x32xf32> to vector<16x32xf32>
    %118 = arith.addf %116, %117 : vector<16x32xf32>
    %c0_82 = arith.constant 0 : index
    %c2_83 = arith.constant 2 : index
    %c0_84 = arith.constant 0 : index
    %c0_85 = arith.constant 0 : index
    %119 = vector.load %arg5[%c0_82, %c2_83, %c0_84, %c0_85] : memref<2x4x32x128xf32, #tpu.memory_space<vmem>>, vector<1x1x32x128xf32>
    %120 = vector.shape_cast %119 : vector<1x1x32x128xf32> to vector<32x128xf32>
    %c0_86 = arith.constant 0 : index
    %c2_87 = arith.constant 2 : index
    %c0_88 = arith.constant 0 : index
    %c0_89 = arith.constant 0 : index
    %121 = vector.load %arg6[%c0_86, %c2_87, %c0_88, %c0_89] : memref<2x4x1x32xf32, #tpu.memory_space<vmem>>, vector<1x1x1x32xf32>
    %122 = vector.shape_cast %121 : vector<1x1x1x32xf32> to vector<1x32xf32>
    %123 = arith.truncf %120 : vector<32x128xf32> to vector<32x128xbf16>
    %cst_90 = arith.constant dense<0.000000e+00> : vector<16x32xf32>
    %124 = tpu.matmul %5, %123, %cst_90 {dimension_numbers = #tpu.dot_dimension_numbers<[1], [1], [0], [0], [0, 0, 1, 0], [], []>} : vector<16x128xbf16>, vector<32x128xbf16>, vector<16x32xf32> -> vector<16x32xf32>
    %125 = vector.broadcast %122 : vector<1x32xf32> to vector<16x32xf32>
    %126 = arith.addf %124, %125 : vector<16x32xf32>
    %c1_91 = arith.constant 1 : index
    %c2_92 = arith.constant 2 : index
    %c0_93 = arith.constant 0 : index
    %c0_94 = arith.constant 0 : index
    %127 = vector.load %arg5[%c1_91, %c2_92, %c0_93, %c0_94] : memref<2x4x32x128xf32, #tpu.memory_space<vmem>>, vector<1x1x32x128xf32>
    %128 = vector.shape_cast %127 : vector<1x1x32x128xf32> to vector<32x128xf32>
    %c1_95 = arith.constant 1 : index
    %c2_96 = arith.constant 2 : index
    %c0_97 = arith.constant 0 : index
    %c0_98 = arith.constant 0 : index
    %129 = vector.load %arg6[%c1_95, %c2_96, %c0_97, %c0_98] : memref<2x4x1x32xf32, #tpu.memory_space<vmem>>, vector<1x1x1x32xf32>
    %130 = vector.shape_cast %129 : vector<1x1x1x32xf32> to vector<1x32xf32>
    %131 = arith.truncf %128 : vector<32x128xf32> to vector<32x128xbf16>
    %cst_99 = arith.constant dense<0.000000e+00> : vector<16x32xf32>
    %132 = tpu.matmul %5, %131, %cst_99 {dimension_numbers = #tpu.dot_dimension_numbers<[1], [1], [0], [0], [0, 0, 1, 0], [], []>} : vector<16x128xbf16>, vector<32x128xbf16>, vector<16x32xf32> -> vector<16x32xf32>
    %133 = vector.broadcast %130 : vector<1x32xf32> to vector<16x32xf32>
    %134 = arith.addf %132, %133 : vector<16x32xf32>
    %c2_100 = arith.constant 2 : index
    %c0_101 = arith.constant 0 : index
    %c0_102 = arith.constant 0 : index
    %135 = vector.load %arg7[%c2_100, %c0_101, %c0_102] : memref<4x128x32xf32, #tpu.memory_space<vmem>>, vector<1x128x32xf32>
    %136 = vector.shape_cast %135 : vector<1x128x32xf32> to vector<128x32xf32>
    %137 = arith.truncf %118 : vector<16x32xf32> to vector<16x32xbf16>
    %138 = arith.truncf %126 : vector<16x32xf32> to vector<16x32xbf16>
    %cst_103 = arith.constant dense<0.000000e+00> : vector<16x16xf32>
    %139 = tpu.matmul %137, %138, %cst_103 {dimension_numbers = #tpu.dot_dimension_numbers<[1], [1], [0], [0], [0, 0, 1, 0], [], []>} : vector<16x32xbf16>, vector<16x32xbf16>, vector<16x16xf32> -> vector<16x16xf32>
    %cst_104 = arith.constant 0.176776692 : f32
    %140 = vector.broadcast %cst_104 : f32 to vector<16x16xf32>
    %141 = arith.mulf %139, %140 : vector<16x16xf32>
    %142 = vector.broadcast %7 : vector<1x16xf32> to vector<16x16xf32>
    %143 = arith.addf %141, %142 : vector<16x16xf32>
    %cst_105 = arith.constant dense<0xFF800000> : vector<16xf32>
    %144 = vector.multi_reduction <maximumf>, %143, %cst_105 [1] : vector<16x16xf32> to vector<16xf32>
    %145 = vector.shape_cast %144 : vector<16xf32> to vector<16x1xf32>
    %146 = vector.broadcast %145 : vector<16x1xf32> to vector<16x16xf32>
    %147 = arith.subf %143, %146 : vector<16x16xf32>
    %148 = math.exp %147 : vector<16x16xf32>
    %cst_106 = arith.constant dense<0.000000e+00> : vector<16xf32>
    %149 = vector.multi_reduction <add>, %148, %cst_106 [1] : vector<16x16xf32> to vector<16xf32>
    %150 = vector.shape_cast %149 : vector<16xf32> to vector<16x1xf32>
    %151 = tpu.reciprocal %150 {approx = true} : vector<16x1xf32> -> vector<16x1xf32>
    %152 = vector.broadcast %151 : vector<16x1xf32> to vector<16x16xf32>
    %153 = arith.mulf %148, %152 : vector<16x16xf32>
    %154 = arith.truncf %153 : vector<16x16xf32> to vector<16x16xbf16>
    %155 = arith.truncf %134 : vector<16x32xf32> to vector<16x32xbf16>
    %cst_107 = arith.constant dense<0.000000e+00> : vector<16x32xf32>
    %156 = tpu.matmul %154, %155, %cst_107 {dimension_numbers = #tpu.dot_dimension_numbers<[1], [0], [0], [1], [0, 0, 1, 1], [], []>} : vector<16x16xbf16>, vector<16x32xbf16>, vector<16x32xf32> -> vector<16x32xf32>
    %157 = arith.truncf %156 : vector<16x32xf32> to vector<16x32xbf16>
    %158 = arith.truncf %136 : vector<128x32xf32> to vector<128x32xbf16>
    %cst_108 = arith.constant dense<0.000000e+00> : vector<16x128xf32>
    %159 = tpu.matmul %157, %158, %cst_108 {dimension_numbers = #tpu.dot_dimension_numbers<[1], [1], [0], [0], [0, 0, 1, 0], [], []>} : vector<16x32xbf16>, vector<128x32xbf16>, vector<16x128xf32> -> vector<16x128xf32>
    %160 = arith.addf %110, %159 : vector<16x128xf32>
    %c3 = arith.constant 3 : index
    %c0_109 = arith.constant 0 : index
    %c0_110 = arith.constant 0 : index
    %161 = vector.load %arg3[%c3, %c0_109, %c0_110] : memref<4x32x128xf32, #tpu.memory_space<vmem>>, vector<1x32x128xf32>
    %162 = vector.shape_cast %161 : vector<1x32x128xf32> to vector<32x128xf32>
    %c3_111 = arith.constant 3 : index
    %c0_112 = arith.constant 0 : index
    %c0_113 = arith.constant 0 : index
    %163 = vector.load %arg4[%c3_111, %c0_112, %c0_113] : memref<4x1x32xf32, #tpu.memory_space<vmem>>, vector<1x1x32xf32>
    %164 = vector.shape_cast %163 : vector<1x1x32xf32> to vector<1x32xf32>
    %165 = arith.truncf %162 : vector<32x128xf32> to vector<32x128xbf16>
    %cst_114 = arith.constant dense<0.000000e+00> : vector<16x32xf32>
    %166 = tpu.matmul %2, %165, %cst_114 {dimension_numbers = #tpu.dot_dimension_numbers<[1], [1], [0], [0], [0, 0, 1, 0], [], []>} : vector<16x128xbf16>, vector<32x128xbf16>, vector<16x32xf32> -> vector<16x32xf32>
    %167 = vector.broadcast %164 : vector<1x32xf32> to vector<16x32xf32>
    %168 = arith.addf %166, %167 : vector<16x32xf32>
    %c0_115 = arith.constant 0 : index
    %c3_116 = arith.constant 3 : index
    %c0_117 = arith.constant 0 : index
    %c0_118 = arith.constant 0 : index
    %169 = vector.load %arg5[%c0_115, %c3_116, %c0_117, %c0_118] : memref<2x4x32x128xf32, #tpu.memory_space<vmem>>, vector<1x1x32x128xf32>
    %170 = vector.shape_cast %169 : vector<1x1x32x128xf32> to vector<32x128xf32>
    %c0_119 = arith.constant 0 : index
    %c3_120 = arith.constant 3 : index
    %c0_121 = arith.constant 0 : index
    %c0_122 = arith.constant 0 : index
    %171 = vector.load %arg6[%c0_119, %c3_120, %c0_121, %c0_122] : memref<2x4x1x32xf32, #tpu.memory_space<vmem>>, vector<1x1x1x32xf32>
    %172 = vector.shape_cast %171 : vector<1x1x1x32xf32> to vector<1x32xf32>
    %173 = arith.truncf %170 : vector<32x128xf32> to vector<32x128xbf16>
    %cst_123 = arith.constant dense<0.000000e+00> : vector<16x32xf32>
    %174 = tpu.matmul %5, %173, %cst_123 {dimension_numbers = #tpu.dot_dimension_numbers<[1], [1], [0], [0], [0, 0, 1, 0], [], []>} : vector<16x128xbf16>, vector<32x128xbf16>, vector<16x32xf32> -> vector<16x32xf32>
    %175 = vector.broadcast %172 : vector<1x32xf32> to vector<16x32xf32>
    %176 = arith.addf %174, %175 : vector<16x32xf32>
    %c1_124 = arith.constant 1 : index
    %c3_125 = arith.constant 3 : index
    %c0_126 = arith.constant 0 : index
    %c0_127 = arith.constant 0 : index
    %177 = vector.load %arg5[%c1_124, %c3_125, %c0_126, %c0_127] : memref<2x4x32x128xf32, #tpu.memory_space<vmem>>, vector<1x1x32x128xf32>
    %178 = vector.shape_cast %177 : vector<1x1x32x128xf32> to vector<32x128xf32>
    %c1_128 = arith.constant 1 : index
    %c3_129 = arith.constant 3 : index
    %c0_130 = arith.constant 0 : index
    %c0_131 = arith.constant 0 : index
    %179 = vector.load %arg6[%c1_128, %c3_129, %c0_130, %c0_131] : memref<2x4x1x32xf32, #tpu.memory_space<vmem>>, vector<1x1x1x32xf32>
    %180 = vector.shape_cast %179 : vector<1x1x1x32xf32> to vector<1x32xf32>
    %181 = arith.truncf %178 : vector<32x128xf32> to vector<32x128xbf16>
    %cst_132 = arith.constant dense<0.000000e+00> : vector<16x32xf32>
    %182 = tpu.matmul %5, %181, %cst_132 {dimension_numbers = #tpu.dot_dimension_numbers<[1], [1], [0], [0], [0, 0, 1, 0], [], []>} : vector<16x128xbf16>, vector<32x128xbf16>, vector<16x32xf32> -> vector<16x32xf32>
    %183 = vector.broadcast %180 : vector<1x32xf32> to vector<16x32xf32>
    %184 = arith.addf %182, %183 : vector<16x32xf32>
    %c3_133 = arith.constant 3 : index
    %c0_134 = arith.constant 0 : index
    %c0_135 = arith.constant 0 : index
    %185 = vector.load %arg7[%c3_133, %c0_134, %c0_135] : memref<4x128x32xf32, #tpu.memory_space<vmem>>, vector<1x128x32xf32>
    %186 = vector.shape_cast %185 : vector<1x128x32xf32> to vector<128x32xf32>
    %187 = arith.truncf %168 : vector<16x32xf32> to vector<16x32xbf16>
    %188 = arith.truncf %176 : vector<16x32xf32> to vector<16x32xbf16>
    %cst_136 = arith.constant dense<0.000000e+00> : vector<16x16xf32>
    %189 = tpu.matmul %187, %188, %cst_136 {dimension_numbers = #tpu.dot_dimension_numbers<[1], [1], [0], [0], [0, 0, 1, 0], [], []>} : vector<16x32xbf16>, vector<16x32xbf16>, vector<16x16xf32> -> vector<16x16xf32>
    %cst_137 = arith.constant 0.176776692 : f32
    %190 = vector.broadcast %cst_137 : f32 to vector<16x16xf32>
    %191 = arith.mulf %189, %190 : vector<16x16xf32>
    %192 = vector.broadcast %7 : vector<1x16xf32> to vector<16x16xf32>
    %193 = arith.addf %191, %192 : vector<16x16xf32>
    %cst_138 = arith.constant dense<0xFF800000> : vector<16xf32>
    %194 = vector.multi_reduction <maximumf>, %193, %cst_138 [1] : vector<16x16xf32> to vector<16xf32>
    %195 = vector.shape_cast %194 : vector<16xf32> to vector<16x1xf32>
    %196 = vector.broadcast %195 : vector<16x1xf32> to vector<16x16xf32>
    %197 = arith.subf %193, %196 : vector<16x16xf32>
    %198 = math.exp %197 : vector<16x16xf32>
    %cst_139 = arith.constant dense<0.000000e+00> : vector<16xf32>
    %199 = vector.multi_reduction <add>, %198, %cst_139 [1] : vector<16x16xf32> to vector<16xf32>
    %200 = vector.shape_cast %199 : vector<16xf32> to vector<16x1xf32>
    %201 = tpu.reciprocal %200 {approx = true} : vector<16x1xf32> -> vector<16x1xf32>
    %202 = vector.broadcast %201 : vector<16x1xf32> to vector<16x16xf32>
    %203 = arith.mulf %198, %202 : vector<16x16xf32>
    %204 = arith.truncf %203 : vector<16x16xf32> to vector<16x16xbf16>
    %205 = arith.truncf %184 : vector<16x32xf32> to vector<16x32xbf16>
    %cst_140 = arith.constant dense<0.000000e+00> : vector<16x32xf32>
    %206 = tpu.matmul %204, %205, %cst_140 {dimension_numbers = #tpu.dot_dimension_numbers<[1], [0], [0], [1], [0, 0, 1, 1], [], []>} : vector<16x16xbf16>, vector<16x32xbf16>, vector<16x32xf32> -> vector<16x32xf32>
    %207 = arith.truncf %206 : vector<16x32xf32> to vector<16x32xbf16>
    %208 = arith.truncf %186 : vector<128x32xf32> to vector<128x32xbf16>
    %cst_141 = arith.constant dense<0.000000e+00> : vector<16x128xf32>
    %209 = tpu.matmul %207, %208, %cst_141 {dimension_numbers = #tpu.dot_dimension_numbers<[1], [1], [0], [0], [0, 0, 1, 0], [], []>} : vector<16x32xbf16>, vector<128x32xbf16>, vector<16x128xf32> -> vector<16x128xf32>
    %210 = arith.addf %160, %209 : vector<16x128xf32>
    %c0_142 = arith.constant 0 : index
    %c0_143 = arith.constant 0 : index
    %211 = vector.load %arg10[%c0_142, %c0_143] : memref<1x128xf32, #tpu.memory_space<vmem>>, vector<1x128xf32>
    %c0_144 = arith.constant 0 : index
    %c0_145 = arith.constant 0 : index
    %212 = vector.load %arg11[%c0_144, %c0_145] : memref<1x128xf32, #tpu.memory_space<vmem>>, vector<1x128xf32>
    %cst_146 = arith.constant dense<0.000000e+00> : vector<16xf32>
    %213 = vector.multi_reduction <add>, %210, %cst_146 [1] : vector<16x128xf32> to vector<16xf32>
    %214 = vector.shape_cast %213 : vector<16xf32> to vector<16x1xf32>
    %cst_147 = arith.constant 1.280000e+02 : f32
    %215 = vector.broadcast %cst_147 : f32 to vector<16x1xf32>
    %216 = arith.divf %214, %215 : vector<16x1xf32>
    %217 = vector.broadcast %216 : vector<16x1xf32> to vector<16x128xf32>
    %218 = arith.subf %210, %217 : vector<16x128xf32>
    %219 = arith.mulf %218, %218 : vector<16x128xf32>
    %cst_148 = arith.constant dense<0.000000e+00> : vector<16xf32>
    %220 = vector.multi_reduction <add>, %219, %cst_148 [1] : vector<16x128xf32> to vector<16xf32>
    %221 = vector.shape_cast %220 : vector<16xf32> to vector<16x1xf32>
    %cst_149 = arith.constant 1.280000e+02 : f32
    %222 = vector.broadcast %cst_149 : f32 to vector<16x1xf32>
    %223 = arith.divf %221, %222 : vector<16x1xf32>
    %cst_150 = arith.constant 9.99999974E-6 : f32
    %224 = vector.broadcast %cst_150 : f32 to vector<16x1xf32>
    %225 = arith.addf %223, %224 : vector<16x1xf32>
    %226 = math.rsqrt %225 : vector<16x1xf32>
    %227 = vector.broadcast %226 : vector<16x1xf32> to vector<16x128xf32>
    %228 = arith.mulf %218, %227 : vector<16x128xf32>
    %229 = vector.broadcast %211 : vector<1x128xf32> to vector<16x128xf32>
    %230 = arith.mulf %228, %229 : vector<16x128xf32>
    %231 = vector.broadcast %212 : vector<1x128xf32> to vector<16x128xf32>
    %232 = arith.addf %230, %231 : vector<16x128xf32>
    %c0_151 = arith.constant 0 : index
    %c0_152 = arith.constant 0 : index
    %c0_153 = arith.constant 0 : index
    %233 = vector.load %arg12[%c0_151, %c0_152, %c0_153] : memref<1x16x128xf32, #tpu.memory_space<vmem>>, vector<1x16x128xf32>
    %234 = vector.shape_cast %233 : vector<1x16x128xf32> to vector<16x128xf32>
    %235 = vector.shape_cast %232 : vector<16x128xf32> to vector<1x16x128xf32>
    tpu.vector_store %arg12[%c0_151, %c0_152, %c0_153], %235 {strides = array<i32>} : memref<1x16x128xf32, #tpu.memory_space<vmem>>, vector<1x16x128xf32>,
    return
  }
  func.func @transform_0(%arg0: i32) -> (i32, i32, i32) {
    %c0_i32 = arith.constant 0 : i32
    %c0_i32_0 = arith.constant 0 : i32
    %c0_i32_1 = arith.constant 0 : i32
    return %arg0, %c0_i32, %c0_i32_0 : i32, i32, i32
  }
  func.func @transform_1(%arg0: i32) -> (i32, i32, i32) {
    %c0_i32 = arith.constant 0 : i32
    %c0_i32_0 = arith.constant 0 : i32
    %c0_i32_1 = arith.constant 0 : i32
    return %arg0, %c0_i32, %c0_i32_0 : i32, i32, i32
  }
  func.func @transform_2(%arg0: i32) -> (i32, i32, i32) {
    %c0_i32 = arith.constant 0 : i32
    %c0_i32_0 = arith.constant 0 : i32
    %c0_i32_1 = arith.constant 0 : i32
    %c0_i32_2 = arith.constant 0 : i32
    return %c0_i32, %c0_i32_0, %c0_i32_1 : i32, i32, i32
  }
  func.func @transform_3(%arg0: i32) -> (i32, i32, i32) {
    %c0_i32 = arith.constant 0 : i32
    %c0_i32_0 = arith.constant 0 : i32
    %c0_i32_1 = arith.constant 0 : i32
    %c0_i32_2 = arith.constant 0 : i32
    return %c0_i32, %c0_i32_0, %c0_i32_1 : i32, i32, i32
  }
  func.func @transform_4(%arg0: i32) -> (i32, i32, i32, i32) {
    %c0_i32 = arith.constant 0 : i32
    %c0_i32_0 = arith.constant 0 : i32
    %c0_i32_1 = arith.constant 0 : i32
    %c0_i32_2 = arith.constant 0 : i32
    %c0_i32_3 = arith.constant 0 : i32
    return %c0_i32, %c0_i32_0, %c0_i32_1, %c0_i32_2 : i32, i32, i32, i32
  }
  func.func @transform_5(%arg0: i32) -> (i32, i32, i32, i32) {
    %c0_i32 = arith.constant 0 : i32
    %c0_i32_0 = arith.constant 0 : i32
    %c0_i32_1 = arith.constant 0 : i32
    %c0_i32_2 = arith.constant 0 : i32
    %c0_i32_3 = arith.constant 0 : i32
    return %c0_i32, %c0_i32_0, %c0_i32_1, %c0_i32_2 : i32, i32, i32, i32
  }
  func.func @transform_6(%arg0: i32) -> (i32, i32, i32) {
    %c0_i32 = arith.constant 0 : i32
    %c0_i32_0 = arith.constant 0 : i32
    %c0_i32_1 = arith.constant 0 : i32
    %c0_i32_2 = arith.constant 0 : i32
    return %c0_i32, %c0_i32_0, %c0_i32_1 : i32, i32, i32
  }
  func.func @transform_7(%arg0: i32) -> (i32, i32) {
    %c0_i32 = arith.constant 0 : i32
    %c0_i32_0 = arith.constant 0 : i32
    %c0_i32_1 = arith.constant 0 : i32
    return %c0_i32, %c0_i32_0 : i32, i32
  }
  func.func @transform_8(%arg0: i32) -> (i32, i32, i32) {
    %c0_i32 = arith.constant 0 : i32
    %c0_i32_0 = arith.constant 0 : i32
    %c0_i32_1 = arith.constant 0 : i32
    return %arg0, %c0_i32, %c0_i32_0 : i32, i32, i32
  }
  func.func @transform_9(%arg0: i32) -> (i32, i32) {
    %c0_i32 = arith.constant 0 : i32
    %c0_i32_0 = arith.constant 0 : i32
    %c0_i32_1 = arith.constant 0 : i32
    return %c0_i32, %c0_i32_0 : i32, i32
  }
  func.func @transform_10(%arg0: i32) -> (i32, i32) {
    %c0_i32 = arith.constant 0 : i32
    %c0_i32_0 = arith.constant 0 : i32
    %c0_i32_1 = arith.constant 0 : i32
    return %c0_i32, %c0_i32_0 : i32, i32
  }
  func.func @transform_11(%arg0: i32) -> (i32, i32, i32) {
    %c0_i32 = arith.constant 0 : i32
    %c0_i32_0 = arith.constant 0 : i32
    %c0_i32_1 = arith.constant 0 : i32
    return %arg0, %c0_i32, %c0_i32_0 : i32, i32, i32
  }
}

module attributes {stable_mosaic.version = 11 : i64} {
  func.func @_matmul_kernel(%arg0: i32, %arg1: i32, %arg2: i32, %arg3: memref<64x128xf32, #tpu.memory_space<vmem>>, %arg4: memref<256x128xf32, #tpu.memory_space<vmem>>, %arg5: memref<1x256xf32, #tpu.memory_space<vmem>>, %arg6: memref<64x256xf32, #tpu.memory_space<vmem>>, %arg7: memref<64x256xf32, #tpu.memory_space<vmem>>) attributes {dimension_semantics = [#tpu.dimension_semantics<parallel>, #tpu.dimension_semantics<parallel>, #tpu.dimension_semantics<arbitrary>], iteration_bounds = array<i64: 1, 1, 1>, scalar_prefetch = 0 : i64, scratch_operands = 1 : i64, tpu.core_type = #tpu.core_type<tc>, window_params = [{transform_indices = @transform_0, window_bounds = array<i64: 64, 128>}, {transform_indices = @transform_1, window_bounds = array<i64: 256, 128>}, {transform_indices = @transform_2, window_bounds = array<i64: 1, 256>}, {transform_indices = @transform_3, window_bounds = array<i64: 64, 256>}]} {
    %c0_i32 = arith.constant 0 : i32
    %0 = arith.cmpi eq, %arg2, %c0_i32 : i32
    %1 = arith.extui %0 : i1 to i32
    %c0_i32_0 = arith.constant 0 : i32
    %2 = arith.cmpi ne, %1, %c0_i32_0 : i32
    scf.if %2 {
      %cst_10 = arith.constant 0.000000e+00 : f32
      %14 = vector.broadcast %cst_10 : f32 to vector<64x256xf32>
      %c0_11 = arith.constant 0 : index
      %c0_12 = arith.constant 0 : index
      %15 = vector.load %arg7[%c0_11, %c0_12] : memref<64x256xf32, #tpu.memory_space<vmem>>, vector<64x256xf32>
      tpu.vector_store %arg7[%c0_11, %c0_12], %14 {strides = array<i32>} : memref<64x256xf32, #tpu.memory_space<vmem>>, vector<64x256xf32>,
    } else {
    }
    %c0 = arith.constant 0 : index
    %c0_1 = arith.constant 0 : index
    %3 = vector.load %arg7[%c0, %c0_1] : memref<64x256xf32, #tpu.memory_space<vmem>>, vector<64x256xf32>
    %c0_2 = arith.constant 0 : index
    %c0_3 = arith.constant 0 : index
    %4 = vector.load %arg3[%c0_2, %c0_3] : memref<64x128xf32, #tpu.memory_space<vmem>>, vector<64x128xf32>
    %5 = arith.truncf %4 : vector<64x128xf32> to vector<64x128xbf16>
    %c0_4 = arith.constant 0 : index
    %c0_5 = arith.constant 0 : index
    %6 = vector.load %arg4[%c0_4, %c0_5] : memref<256x128xf32, #tpu.memory_space<vmem>>, vector<256x128xf32>
    %7 = arith.truncf %6 : vector<256x128xf32> to vector<256x128xbf16>
    %cst = arith.constant dense<0.000000e+00> : vector<64x256xf32>
    %8 = tpu.matmul %5, %7, %cst {dimension_numbers = #tpu.dot_dimension_numbers<[1], [1], [0], [0], [0, 0, 1, 0], [], []>} : vector<64x128xbf16>, vector<256x128xbf16>, vector<64x256xf32> -> vector<64x256xf32>
    %9 = arith.addf %3, %8 : vector<64x256xf32>
    %c0_6 = arith.constant 0 : index
    %c0_7 = arith.constant 0 : index
    %10 = vector.load %arg7[%c0_6, %c0_7] : memref<64x256xf32, #tpu.memory_space<vmem>>, vector<64x256xf32>
    tpu.vector_store %arg7[%c0_6, %c0_7], %9 {strides = array<i32>} : memref<64x256xf32, #tpu.memory_space<vmem>>, vector<64x256xf32>,
    %c0_i32_8 = arith.constant 0 : i32
    %11 = arith.cmpi eq, %arg2, %c0_i32_8 : i32
    %12 = arith.extui %11 : i1 to i32
    %c0_i32_9 = arith.constant 0 : i32
    %13 = arith.cmpi ne, %12, %c0_i32_9 : i32
    scf.if %13 {
      %c0_10 = arith.constant 0 : index
      %c0_11 = arith.constant 0 : index
      %14 = vector.load %arg7[%c0_10, %c0_11] : memref<64x256xf32, #tpu.memory_space<vmem>>, vector<64x256xf32>
      %c0_12 = arith.constant 0 : index
      %c0_13 = arith.constant 0 : index
      %15 = vector.load %arg5[%c0_12, %c0_13] : memref<1x256xf32, #tpu.memory_space<vmem>>, vector<1x256xf32>
      %16 = vector.broadcast %15 : vector<1x256xf32> to vector<64x256xf32>
      %17 = arith.addf %14, %16 : vector<64x256xf32>
      %c0_14 = arith.constant 0 : index
      %c0_15 = arith.constant 0 : index
      %18 = vector.load %arg6[%c0_14, %c0_15] : memref<64x256xf32, #tpu.memory_space<vmem>>, vector<64x256xf32>
      tpu.vector_store %arg6[%c0_14, %c0_15], %17 {strides = array<i32>} : memref<64x256xf32, #tpu.memory_space<vmem>>, vector<64x256xf32>,
    } else {
    }
    return
  }
  func.func @transform_0(%arg0: i32, %arg1: i32, %arg2: i32) -> (i32, i32) {
    %c0_i32 = arith.constant 0 : i32
    return %arg0, %arg2 : i32, i32
  }
  func.func @transform_1(%arg0: i32, %arg1: i32, %arg2: i32) -> (i32, i32) {
    %c0_i32 = arith.constant 0 : i32
    return %arg1, %arg2 : i32, i32
  }
  func.func @transform_2(%arg0: i32, %arg1: i32, %arg2: i32) -> (i32, i32) {
    %c0_i32 = arith.constant 0 : i32
    %c0_i32_0 = arith.constant 0 : i32
    return %c0_i32, %arg1 : i32, i32
  }
  func.func @transform_3(%arg0: i32, %arg1: i32, %arg2: i32) -> (i32, i32) {
    %c0_i32 = arith.constant 0 : i32
    return %arg0, %arg1 : i32, i32
  }
}

</mosaic_0001>

<bundles_post_ra>
// kernel: seq2seq_forward.17
= control target key start
LH: loop header
LB: loop body
LE: loop exit
PB: predicated region body
PF: predicated region fallthrough
CT: control target
= control target key end

     0   :  { %s285_s0 = inlined_call_operand.vmem [shape: f32[64,128], index: 0, kind: input, shape index: {}]   ;;  %s286_s1 = inlined_call_operand.vmem [shape: f32[1,128], index: 1, kind: input, shape index: {}]   ;;  %s287_s2 = inlined_call_operand.vmem [shape: f32[1,128], index: 2, kind: input, shape index: {}]   ;;  %s288_s3 = inlined_call_operand.vmem [shape: f32[64,128], index: 3, kind: output, shape index: {}]  }
   0x1   :  { %v14_v0 = vld [vmem:[%s285_s0] sm:$0xff]  ;;  %v16_v1 = vld [vmem:[%s285_s0 + $0x10] sm:$0xff]  ;;  %v15_v2 = vld [vmem:[%s285_s0 + $0x8] sm:$0xff] }
   0x2   :  { %24 = vadd.xlane.f32.xlu0 %v14_v0  ;;  %28 = vadd.xlane.f32.xlu1 %v16_v1  ;;  %v17_v3 = vld [vmem:[%s285_s0 + $0x18] sm:$0xff]  ;;  %v18_v4 = vld [vmem:[%s285_s0 + $0x20] sm:$0xff]  ;;  %v19_v5 = vld [vmem:[%s285_s0 + $0x28] sm:$0xff] }
   0x3   :  { %v20_v6 = vld [vmem:[%s285_s0 + $0x30] sm:$0xff]  ;;  %v21_v7 = vld [vmem:[%s285_s0 + $0x38] sm:$0xff]  ;;  %v153_v60 = vld [vmem:[%s286_s1] ss:$0 sm:$0xff] }
   0x6   :  { %26 = vadd.xlane.f32.xlu0 %v15_v2  ;;  %30 = vadd.xlane.f32.xlu1 %v17_v3 }
   0xa   :  { %32 = vadd.xlane.f32.xlu0 %v18_v4  ;;  %34 = vadd.xlane.f32.xlu1 %v19_v5 }
   0xe   :  { %36 = vadd.xlane.f32.xlu0 %v20_v6  ;;  %38 = vadd.xlane.f32.xlu1 %v21_v7 }
  0x8f   :  { %v25_v8 = vpop.xlane.xlu0 %24  ;;  %v29_v9 = vpop.xlane.xlu1 %28 }
  0x90   :  { %v41_v10 = vmul.f32 0.0078125, %v25_v8  ;;  %v43_v11 = vmul.f32 0.0078125, %v29_v9 }
  0x92   :  { %v215_v12 = vsub.f32 %v14_v0, %v41_v10  ;;  %v217_v13 = vsub.f32 %v16_v1, %v43_v11  ;;  %v154_v1 = vld [vmem:[%s287_s2] ss:$0 sm:$0xff] }
  0x93   :  { %v27_v14 = vpop.xlane.xlu0 %26  ;;  %v31_v15 = vpop.xlane.xlu1 %30 }
  0x94   :  { %v42_v16 = vmul.f32 0.0078125, %v27_v14  ;;  %v57_v17 = vmul.f32 %v215_v12, %v215_v12  ;;  %v44_v18 = vmul.f32 0.0078125, %v31_v15  ;;  %v59_v21 = vmul.f32 %v217_v13, %v217_v13 }
  0x96   :  { %v221_v19 = vsub.f32 %v15_v2, %v42_v16  ;;  %65 = vadd.xlane.f32.xlu0 %v57_v17  ;;  %v223_v20 = vsub.f32 %v17_v3, %v44_v18 }
  0x97   :  { %v33_v22 = vpop.xlane.xlu0 %32  ;;  %v35_v23 = vpop.xlane.xlu1 %34 }
  0x98   :  { %v45_v24 = vmul.f32 0.0078125, %v33_v22  ;;  %v58_v25 = vmul.f32 %v221_v19, %v221_v19  ;;  %v46_v26 = vmul.f32 0.0078125, %v35_v23  ;;  %v60_v29 = vmul.f32 %v223_v20, %v223_v20 }
  0x9a   :  { %v229_v27 = vsub.f32 %v18_v4, %v45_v24  ;;  %69 = vadd.xlane.f32.xlu0 %v59_v21  ;;  %67 = vadd.xlane.f32.xlu1 %v58_v25  ;;  %v231_v28 = vsub.f32 %v19_v5, %v46_v26 }
  0x9b   :  { %v37_v30 = vpop.xlane.xlu0 %36  ;;  %v39_v31 = vpop.xlane.xlu1 %38 }
  0x9c   :  { %v47_v32 = vmul.f32 0.0078125, %v37_v30  ;;  %v61_v33 = vmul.f32 %v229_v27, %v229_v27  ;;  %v48_v34 = vmul.f32 0.0078125, %v39_v31  ;;  %v62_v37 = vmul.f32 %v231_v28, %v231_v28 }
  0x9e   :  { %v237_v35 = vsub.f32 %v20_v6, %v47_v32  ;;  %71 = vadd.xlane.f32.xlu1 %v60_v29  ;;  %73 = vadd.xlane.f32.xlu0 %v61_v33  ;;  %v239_v36 = vsub.f32 %v21_v7, %v48_v34 }
  0xa0   :  { %v63_v38 = vmul.f32 %v237_v35, %v237_v35  ;;  %v64_v39 = vmul.f32 %v239_v36, %v239_v36 }
  0xa2   :  { %75 = vadd.xlane.f32.xlu1 %v62_v37  ;;  %77 = vadd.xlane.f32.xlu0 %v63_v38 }
  0xa6   :  { %79 = vadd.xlane.f32.xlu1 %v64_v39 }
 0x123   :  { %v66_v40 = vpop.xlane.xlu0 %65 }
 0x124   :  { %v81_v41 = vmul.f32 0.0078125, %v66_v40 }
 0x126   :  { %v89_v42 = vadd.f32 1e-05, %v81_v41 }
 0x127   :  { %v68_v43 = vpop.xlane.xlu1 %67  ;;  %v70_v44 = vpop.xlane.xlu0 %69 }
 0x128   :  { %155 = vrsqrt.f32 %v89_v42  ;;  %v82_v45 = vmul.f32 0.0078125, %v68_v43  ;;  %v83_v46 = vmul.f32 0.0078125, %v70_v44 }
 0x12a   :  { %v90_v47 = vadd.f32 1e-05, %v82_v45  ;;  %v91_v48 = vadd.f32 1e-05, %v83_v46 }
 0x12b   :  { %v72_v49 = vpop.xlane.xlu1 %71  ;;  %v74_v50 = vpop.xlane.xlu0 %73 }
 0x12c   :  { %157 = vrsqrt.f32 %v90_v47  ;;  %v84_v51 = vmul.f32 0.0078125, %v72_v49  ;;  %v85_v52 = vmul.f32 0.0078125, %v74_v50 }
 0x12d   :  { %159 = vrsqrt.f32 %v91_v48 }
 0x12e   :  { %v92_v53 = vadd.f32 1e-05, %v84_v51  ;;  %v93_v54 = vadd.f32 1e-05, %v85_v52 }
 0x12f   :  { %v76_v55 = vpop.xlane.xlu1 %75  ;;  %v78_v56 = vpop.xlane.xlu0 %77 }
 0x130   :  { %161 = vrsqrt.f32 %v92_v53  ;;  %v86_v57 = vmul.f32 0.0078125, %v76_v55  ;;  %v87_v58 = vmul.f32 0.0078125, %v78_v56 }
 0x131   :  { %163 = vrsqrt.f32 %v93_v54 }
 0x132   :  { %v156_v59 = vpop.eup %155  ;;  %v94_v61 = vadd.f32 1e-05, %v86_v57  ;;  %v95_v62 = vadd.f32 1e-05, %v87_v58 }
 0x133   :  { %v105_v63 = vmul.f32 %v156_v59, %v215_v12  ;;  %v80_v0 = vpop.xlane.xlu1 %79 }
 0x134   :  { %165 = vrsqrt.f32 %v94_v61  ;;  %v88_v2 = vmul.f32 0.0078125, %v80_v0 }
 0x135   :  { %v119_v3 = vmul.f32 %v153_v60, %v105_v63  ;;  %167 = vrsqrt.f32 %v95_v62 }
 0x136   :  { %v158_v4 = vpop.eup %157  ;;  %v96_v5 = vadd.f32 1e-05, %v88_v2 }
 0x137   :  { %v160_v6 = vpop.eup %159  ;;  %v133_v7 = vadd.f32 %v154_v1, %v119_v3  ;;  %v106_v8 = vmul.f32 %v158_v4, %v221_v19 }
 0x138   :  { %v107_v9 = vmul.f32 %v160_v6, %v217_v13  ;;  %169 = vrsqrt.f32 %v96_v5 }
 0x139   :  { %141 = vst [vmem:[%s288_s3] sm:$0xff] %v133_v7  ;;  %v120_v10 = vmul.f32 %v153_v60, %v106_v8 }
 0x13a   :  { %v162_v11 = vpop.eup %161  ;;  %v121_v12 = vmul.f32 %v153_v60, %v107_v9 }
 0x13b   :  { %v164_v14 = vpop.eup %163  ;;  %v134_v15 = vadd.f32 %v154_v1, %v120_v10  ;;  %v108_v16 = vmul.f32 %v162_v11, %v223_v20 }
 0x13c   :  { %v135_v17 = vadd.f32 %v154_v1, %v121_v12  ;;  %v109_v18 = vmul.f32 %v164_v14, %v229_v27 }
 0x13d   :  { %142 = vst [vmem:[%s288_s3 + $0x8] sm:$0xff] %v134_v15  ;;  %v122_v13 = vmul.f32 %v153_v60, %v108_v16 }
 0x13e   :  { %v166_v19 = vpop.eup %165  ;;  %143 = vst [vmem:[%s288_s3 + $0x10] sm:$0xff] %v135_v17  ;;  %v123_v21 = vmul.f32 %v153_v60, %v109_v18 }
 0x13f   :  { %v168_v22 = vpop.eup %167  ;;  %v136_v23 = vadd.f32 %v154_v1, %v122_v13  ;;  %v110_v24 = vmul.f32 %v166_v19, %v231_v28 }
 0x140   :  { %v137_v25 = vadd.f32 %v154_v1, %v123_v21  ;;  %v111_v20 = vmul.f32 %v168_v22, %v237_v35 }
 0x141   :  { %144 = vst [vmem:[%s288_s3 + $0x18] sm:$0xff] %v136_v23  ;;  %v124_v26 = vmul.f32 %v153_v60, %v110_v24 }
 0x142   :  { %v170_v27 = vpop.eup %169  ;;  %145 = vst [vmem:[%s288_s3 + $0x20] sm:$0xff] %v137_v25  ;;  %v125_v29 = vmul.f32 %v153_v60, %v111_v20 }
 0x143   :  { %v138_v30 = vadd.f32 %v154_v1, %v124_v26  ;;  %v112_v31 = vmul.f32 %v170_v27, %v239_v36 }
 0x144   :  { %v139_v32 = vadd.f32 %v154_v1, %v125_v29 }
 0x145   :  { %146 = vst [vmem:[%s288_s3 + $0x28] sm:$0xff] %v138_v30  ;;  %v126_v28 = vmul.f32 %v153_v60, %v112_v31 }
 0x146   :  { %147 = vst [vmem:[%s288_s3 + $0x30] sm:$0xff] %v139_v32 }
 0x147   :  { %v140_v33 = vadd.f32 %v154_v1, %v126_v28 }
 0x149   :  { %148 = vst [vmem:[%s288_s3 + $0x38] sm:$0xff] %v140_v33 }

// kernel: seq2seq_forward.14
= control target key start
LH: loop header
LB: loop body
LE: loop exit
PB: predicated region body
PF: predicated region fallthrough
CT: control target
= control target key end

     0   :  { %s869_s1 = inlined_call_operand.vmem [shape: f32[256,128], index: 1, kind: input, shape index: {}]   ;;  %s870_s0 = inlined_call_operand.vmem [shape: f32[64,128], index: 0, kind: input, shape index: {}]   ;;  %s871_s3 = inlined_call_operand.vmem [shape: f32[128,256], index: 3, kind: input, shape index: {}]   ;;  %s872_s2 = inlined_call_operand.vmem [shape: f32[1,256], index: 2, kind: input, shape index: {}]   ;;  %s873_s4 = inlined_call_operand.vmem [shape: f32[1,128], index: 4, kind: input, shape index: {}]   ;;  %s874_s5 = inlined_call_operand.vmem [shape: f32[1,128], index: 5, kind: input, shape index: {}]   ;;  %s875_s6 = inlined_call_operand.vmem [shape: f32[1,128], index: 6, kind: input, shape index: {}]   ;;  %s876_s7 = inlined_call_operand.vmem [shape: f32[64,128], index: 7, kind: output, shape index: {}]  }
   0x1   :  { %v55_v0 = vld [vmem:[%s869_s1 + $0x80] sm:$0xff]  ;;  %v56_v1 = vld [vmem:[%s869_s1 + $0x88] sm:$0xff]  ;;  %v57_v5 = vld [vmem:[%s869_s1 + $0x90] sm:$0xff] }
   0x2   :  { %v39_v2 = vld [vmem:[%s869_s1] sm:$0xff]  ;;  %v79_v3 = vpack.c.bf16 %v56_v1, %v55_v0  ;;  %v40_v4 = vld [vmem:[%s869_s1 + $0x8] sm:$0xff]  ;;  %v58_v6 = vld [vmem:[%s869_s1 + $0x98] sm:$0xff] }
   0x3   :  { %v71_v7 = vpack.c.bf16 %v40_v4, %v39_v2  ;;  %v80_v8 = vpack.c.bf16 %v58_v6, %v57_v5  ;;  %v41_v9 = vld [vmem:[%s869_s1 + $0x10] sm:$0xff]  ;;  %v42_v10 = vld [vmem:[%s869_s1 + $0x18] sm:$0xff]  ;;  %v59_v11 = vld [vmem:[%s869_s1 + $0xa0] sm:$0xff] }
   0x4   :  { %466 = vmatprep.subr.bf16.mxu0 %v79_v3  ;;  %v60_v12 = vld [vmem:[%s869_s1 + $0xa8] sm:$0xff]  ;;  %v72_v13 = vpack.c.bf16 %v42_v10, %v41_v9  ;;  %v579_v15 = vld [vmem:[%s870_s0] sm:$0xff]  ;;  %v61_v19 = vld [vmem:[%s869_s1 + $0xb0] sm:$0xff] }
   0x5   :  { %467 = vmatpush3.bf16.xpose.msra.mxu0 %v71_v7  ;;  %v81_v14 = vpack.c.bf16 %v60_v12, %v59_v11  ;;  %v584_v16 = vld [vmem:[%s870_s0 + $0x8] sm:$0xff]  ;;  %v43_v17 = vld [vmem:[%s869_s1 + $0x20] sm:$0xff]  ;;  %v62_v21 = vld [vmem:[%s869_s1 + $0xb8] sm:$0xff] }
   0x6   :  { %468 = vmatprep.subr.bf16.mxu0 %v80_v8  ;;  %v44_v18 = vld [vmem:[%s869_s1 + $0x28] sm:$0xff]  ;;  %v597_v20 = vpack.c.bf16 %v584_v16, %v579_v15  ;;  %v199_v23 = vld [vmem:[%s871_s3 + $0x18] sm:$0xff]  ;;  %v196_v25 = vld [vmem:[%s871_s3] sm:$0xff]  ;;  %v82_v32 = vpack.c.bf16 %v62_v21, %v61_v19 }
   0x7   :  { %v197_v22 = vld [vmem:[%s871_s3 + $0x8] sm:$0xff]  ;;  %v198_v26 = vld [vmem:[%s871_s3 + $0x10] sm:$0xff]  ;;  %v203_v29 = vld [vmem:[%s871_s3 + $0x38] sm:$0xff]  ;;  %v73_v30 = vpack.c.bf16 %v44_v18, %v43_v17 }
   0x8   :  { %482 = vmatprep.mubr.bf16.mxu0 %v597_v20  ;;  %v229_v24 = vpack.c.bf16 %v199_v23, %v197_v22  ;;  %v201_v27 = vld [vmem:[%s871_s3 + $0x28] sm:$0xff]  ;;  %v228_v28 = vpack.c.bf16 %v198_v26, %v196_v25  ;;  %v200_v33 = vld [vmem:[%s871_s3 + $0x20] sm:$0xff]  ;;  %v202_v34 = vld [vmem:[%s871_s3 + $0x30] sm:$0xff] }
   0x9   :  { %v231_v31 = vpack.c.bf16 %v203_v29, %v201_v27  ;;  %v205_v35 = vld [vmem:[%s871_s3 + $0x48] sm:$0xff]  ;;  %v207_v36 = vld [vmem:[%s871_s3 + $0x58] sm:$0xff]  ;;  %v45_v37 = vld [vmem:[%s869_s1 + $0x30] sm:$0xff]  ;;  %v230_v39 = vpack.c.bf16 %v202_v34, %v200_v33 }
   0xa   :  { %244 = vmatprep.subr.bf16.mxu1 %v229_v24  ;;  %v46_v38 = vld [vmem:[%s869_s1 + $0x38] sm:$0xff]  ;;  %v63_v40 = vld [vmem:[%s869_s1 + $0xc0] sm:$0xff]  ;;  %v64_v41 = vld [vmem:[%s869_s1 + $0xc8] sm:$0xff]  ;;  %v233_v42 = vpack.c.bf16 %v207_v36, %v205_v35 }
   0xb   :  { %245 = vmatpush1.bf16.xpose.msra.mxu1 %v228_v28  ;;  %v74_v43 = vpack.c.bf16 %v46_v38, %v45_v37  ;;  %v83_v44 = vpack.c.bf16 %v64_v41, %v63_v40  ;;  %v204_v45 = vld [vmem:[%s871_s3 + $0x40] sm:$0xff]  ;;  %v206_v46 = vld [vmem:[%s871_s3 + $0x50] sm:$0xff]  ;;  %v209_v47 = vld [vmem:[%s871_s3 + $0x68] sm:$0xff] }
   0xc   :  { %246 = vmatprep.subr.bf16.mxu1 %v231_v31  ;;  %v211_v48 = vld [vmem:[%s871_s3 + $0x78] sm:$0xff]  ;;  %v47_v49 = vld [vmem:[%s869_s1 + $0x40] sm:$0xff]  ;;  %v48_v50 = vld [vmem:[%s869_s1 + $0x48] sm:$0xff]  ;;  %v232_v51 = vpack.c.bf16 %v206_v46, %v204_v45  ;;  %v89_v46 = vlaneseq }
   0xd   :  { %469 = vmatpush3.bf16.xpose.msra.mxu0 %v72_v13  ;;  %v65_v52 = vld [vmem:[%s869_s1 + $0xd0] sm:$0xff]  ;;  %v66_v53 = vld [vmem:[%s869_s1 + $0xd8] sm:$0xff]  ;;  %v235_v54 = vpack.c.bf16 %v211_v48, %v209_v47  ;;  %v75_v55 = vpack.c.bf16 %v48_v50, %v47_v49  ;;  %v208_v57 = vld [vmem:[%s871_s3 + $0x60] sm:$0xff] }
   0xe   :  { %470 = vmatprep.subr.bf16.mxu0 %v81_v14  ;;  %v84_v56 = vpack.c.bf16 %v66_v53, %v65_v52  ;;  %v210_v58 = vld [vmem:[%s871_s3 + $0x70] sm:$0xff]  ;;  %v213_v59 = vld [vmem:[%s871_s3 + $0x88] sm:$0xff]  ;;  %v215_v60 = vld [vmem:[%s871_s3 + $0x98] sm:$0xff]  ;;  %v90_v47 = vshrl.u32 %v89_v46, 7 }
   0xf   :  { %v49_v61 = vld [vmem:[%s869_s1 + $0x50] sm:$0xff]  ;;  %v50_v62 = vld [vmem:[%s869_s1 + $0x58] sm:$0xff]  ;;  %v234_v63 = vpack.c.bf16 %v210_v58, %v208_v57  ;;  %v67_v0 = vld [vmem:[%s869_s1 + $0xe0] sm:$0xff]  ;;  %v237_v2 = vpack.c.bf16 %v215_v60, %v213_v59 }
  0x10   :  { %v68_v1 = vld [vmem:[%s869_s1 + $0xe8] sm:$0xff]  ;;  %v76_v3 = vpack.c.bf16 %v50_v62, %v49_v61  ;;  %v212_v5 = vld [vmem:[%s871_s3 + $0x80] sm:$0xff]  ;;  %v214_v6 = vld [vmem:[%s871_s3 + $0x90] sm:$0xff]  ;;  %v91_v48 = vsub.s32 0, %v90_v47  ;;  %v95_v50 = vsub.s32 1, %v90_v47 }
  0x11   :  { %v85_v4 = vpack.c.bf16 %v68_v1, %v67_v0  ;;  %v217_v7 = vld [vmem:[%s871_s3 + $0xa8] sm:$0xff]  ;;  %v219_v8 = vld [vmem:[%s871_s3 + $0xb8] sm:$0xff]  ;;  %v51_v9 = vld [vmem:[%s869_s1 + $0x60] sm:$0xff]  ;;  %v236_v11 = vpack.c.bf16 %v214_v6, %v212_v5 }
  0x12   :  { %v52_v10 = vld [vmem:[%s869_s1 + $0x68] sm:$0xff]  ;;  %v69_v12 = vld [vmem:[%s869_s1 + $0xf0] sm:$0xff]  ;;  %v70_v13 = vld [vmem:[%s869_s1 + $0xf8] sm:$0xff]  ;;  %v239_v14 = vpack.c.bf16 %v219_v8, %v217_v7 }
  0x13   :  { %247 = vmatpush1.bf16.xpose.msra.mxu1 %v230_v39  ;;  %v77_v17 = vpack.c.bf16 %v52_v10, %v51_v9  ;;  %v86_v18 = vpack.c.bf16 %v70_v13, %v69_v12  ;;  %v216_v19 = vld [vmem:[%s871_s3 + $0xa0] sm:$0xff]  ;;  %v218_v21 = vld [vmem:[%s871_s3 + $0xb0] sm:$0xff]  ;;  %v221_v22 = vld [vmem:[%s871_s3 + $0xc8] sm:$0xff] }
  0x14   :  { %248 = vmatprep.subr.bf16.mxu1 %v233_v42  ;;  %v223_v23 = vld [vmem:[%s871_s3 + $0xd8] sm:$0xff]  ;;  %v53_v24 = vld [vmem:[%s869_s1 + $0x70] sm:$0xff]  ;;  %v238_v26 = vpack.c.bf16 %v218_v21, %v216_v19  ;;  %v220_v29 = vld [vmem:[%s871_s3 + $0xc0] sm:$0xff] }
  0x15   :  { %471 = vmatpush3.bf16.xpose.msra.mxu0 %v73_v30  ;;  %v54_v25 = vld [vmem:[%s869_s1 + $0x78] sm:$0xff]  ;;  %v241_v27 = vpack.c.bf16 %v223_v23, %v221_v22  ;;  %v222_v30 = vld [vmem:[%s871_s3 + $0xd0] sm:$0xff]  ;;  %v757_v35 = vld [vmem:[%s870_s0 + $0x20] sm:$0xff] }
  0x16   :  { %472 = vmatprep.subr.bf16.mxu0 %v82_v32  ;;  %v78_v28 = vpack.c.bf16 %v54_v25, %v53_v24  ;;  %v744_v31 = vld [vmem:[%s870_s0 + $0x10] sm:$0xff]  ;;  %v749_v32 = vld [vmem:[%s870_s0 + $0x18] sm:$0xff]  ;;  %v240_v33 = vpack.c.bf16 %v222_v30, %v220_v29  ;;  %v762_v36 = vld [vmem:[%s870_s0 + $0x28] sm:$0xff] }
  0x17   :  { %v36_v34 = vpack.c.bf16 %v749_v32, %v744_v31  ;;  %v37_v37 = vpack.c.bf16 %v762_v36, %v757_v35  ;;  %v774_v38 = vld [vmem:[%s870_s0 + $0x38] sm:$0xff]  ;;  %v225_v40 = vld [vmem:[%s871_s3 + $0xe8] sm:$0xff]  ;;  %v87_v49 = vld [vmem:[%s872_s2] sm:$0x3] }
  0x18   :  { %v227_v41 = vld [vmem:[%s871_s3 + $0xf8] sm:$0xff]  ;;  %v96_v52 = vrot.slane %v87_v49, %v95_v50 }
  0x19   :  { %v243_v42 = vpack.c.bf16 %v227_v41, %v225_v40 }
  0x1b   :  { %249 = vmatpush1.bf16.xpose.msra.mxu1 %v232_v51  ;;  %v92_v51 = vrot.slane %v87_v49, %v91_v48 }
  0x1c   :  { %250 = vmatprep.subr.bf16.mxu1 %v235_v54 }
  0x1d   :  { %473 = vmatpush3.bf16.xpose.msra.mxu0 %v74_v43  ;;  %v224_v43 = vld [vmem:[%s871_s3 + $0xe0] sm:$0xff] }
  0x1e   :  { %474 = vmatprep.subr.bf16.mxu0 %v83_v44  ;;  %v226_v44 = vld [vmem:[%s871_s3 + $0xf0] sm:$0xff] }
  0x1f   :  { %v242_v45 = vpack.c.bf16 %v226_v44, %v224_v43 }
  0x23   :  { %251 = vmatpush1.bf16.xpose.msra.mxu1 %v234_v63 }
  0x24   :  { %252 = vmatprep.subr.bf16.mxu1 %v237_v2 }
  0x25   :  { %475 = vmatpush3.bf16.xpose.msra.mxu0 %v75_v55 }
  0x26   :  { %476 = vmatprep.subr.bf16.mxu0 %v84_v56 }
  0x2b   :  { %253 = vmatpush1.bf16.xpose.msra.mxu1 %v236_v11 }
  0x2c   :  { %254 = vmatprep.subr.bf16.mxu1 %v239_v14 }
  0x2d   :  { %477 = vmatpush3.bf16.xpose.msra.mxu0 %v76_v3 }
  0x2e   :  { %478 = vmatprep.subr.bf16.mxu0 %v85_v4 }
  0x33   :  { %255 = vmatpush1.bf16.xpose.msra.mxu1 %v238_v26 }
  0x34   :  { %256 = vmatprep.subr.bf16.mxu1 %v241_v27 }
  0x35   :  { %479 = vmatpush3.bf16.xpose.msra.mxu0 %v77_v17 }
  0x36   :  { %480 = vmatprep.subr.bf16.mxu0 %v86_v18 }
  0x3b   :  { %257 = vmatpush1.bf16.xpose.msra.mxu1 %v240_v33 }
  0x3c   :  { %258 = vmatprep.subr.bf16.mxu1 %v243_v42 }
  0x3d   :  { %481 = vmatpush3.bf16.xpose.msra.mxu0 %v78_v28 }
  0x43   :  { %259 = vmatpush1.bf16.xpose.msra.mxu1 %v242_v45 }
  0x44   :  { %483 = vmatmul.mubr.bf16.vlgmr.msra.gmra.mrb[0].mxu0 %v597_v20  ;;  %v769_v20 = vld [vmem:[%s870_s0 + $0x30] sm:$0xff] }
  0x45   :  { %484 = vmatprep.mubr.bf16.mxu0 %v36_v34  ;;  %v38_v39 = vpack.c.bf16 %v774_v38, %v769_v20 }
  0x4c   :  { %485 = vmatmul.mubr.bf16.gmra.mrb[4].mxu0 %v36_v34 }
  0x4d   :  { %486 = vmatprep.mubr.bf16.mxu0 %v37_v37 }
  0x54   :  { %487 = vmatmul.mubr.bf16.gmra.mrb[8].mxu0 %v37_v37 }
  0x55   :  { %488 = vmatprep.mubr.bf16.mxu0 %v38_v39 }
  0x5c   :  { %489 = vmatmul.mubr.bf16.gmra.mrb[12].mxu0 %v38_v39 }
 0x117   :  { %v133_v53 = vpop.f32.mrb[0].mxu0 }
 0x118   :  { %v134_v54 = vadd.f32 %v133_v53, %v92_v51  ;;  %v135_v55 = vpop.f32.mrb[1].mxu0 }
 0x119   :  { %v136_v56 = vadd.f32 %v135_v55, %v96_v52  ;;  %v137_v57 = vpop.f32.mrb[2].mxu0 }
 0x11a   :  { %v138_v58 = vadd.f32 %v137_v57, %v92_v51  ;;  %v139_v59 = vpop.f32.mrb[3].mxu0  ;;  %v172_v61 = vmax.f32 %v134_v54, 0.0 }
 0x11b   :  { %v140_v60 = vadd.f32 %v139_v59, %v96_v52  ;;  %v173_v63 = vmax.f32 %v136_v56, 0.0  ;;  %v463_v56 = vld [vmem:[%s873_s4] ss:$0 sm:$0xff] }
 0x11c   :  { %v174_v62 = vmax.f32 %v138_v58, 0.0 }
 0x11d   :  { %v175_v0 = vmax.f32 %v140_v60, 0.0 }
 0x11e   :  { %v188_v1 = vpack.c.bf16 %v174_v62, %v172_v61 }
 0x11f   :  { %v143_v2 = vpop.f32.mrb[4].mxu0  ;;  %v189_v3 = vpack.c.bf16 %v175_v0, %v173_v63 }
 0x120   :  { %v144_v4 = vadd.f32 %v143_v2, %v92_v51  ;;  %v145_v5 = vpop.f32.mrb[5].mxu0 }
 0x121   :  { %v146_v6 = vadd.f32 %v145_v5, %v96_v52  ;;  %v147_v7 = vpop.f32.mrb[6].mxu0  ;;  %276 = vmatprep.mubr.bf16.mxu1 %v189_v3 }
 0x122   :  { %v148_v8 = vadd.f32 %v147_v7, %v92_v51  ;;  %v149_v9 = vpop.f32.mrb[7].mxu0  ;;  %277 = vmatmul.mubr.bf16.vlgmr.msra.gmra.mrb[0].mxu1 %v188_v1  ;;  %v176_v11 = vmax.f32 %v144_v4, 0.0 }
 0x123   :  { %v150_v10 = vadd.f32 %v149_v9, %v96_v52  ;;  %v177_v13 = vmax.f32 %v146_v6, 0.0 }
 0x124   :  { %v178_v12 = vmax.f32 %v148_v8, 0.0 }
 0x125   :  { %v179_v14 = vmax.f32 %v150_v10, 0.0 }
 0x126   :  { %v190_v17 = vpack.c.bf16 %v178_v12, %v176_v11 }
 0x127   :  { %v191_v18 = vpack.c.bf16 %v179_v14, %v177_v13  ;;  %v153_v19 = vpop.f32.mrb[8].mxu0 }
 0x128   :  { %v154_v21 = vadd.f32 %v153_v19, %v92_v51  ;;  %v155_v22 = vpop.f32.mrb[9].mxu0 }
 0x129   :  { %v156_v23 = vadd.f32 %v155_v22, %v96_v52  ;;  %v157_v24 = vpop.f32.mrb[10].mxu0  ;;  %284 = vmatprep.mubr.bf16.mxu1 %v191_v18 }
 0x12a   :  { %v158_v25 = vadd.f32 %v157_v24, %v92_v51  ;;  %v159_v26 = vpop.f32.mrb[11].mxu0  ;;  %285 = vmatmul.mubr.bf16.gmra.mrb[4].mxu1 %v190_v17  ;;  %v180_v28 = vmax.f32 %v154_v21, 0.0 }
 0x12b   :  { %v160_v27 = vadd.f32 %v159_v26, %v96_v52  ;;  %v181_v30 = vmax.f32 %v156_v23, 0.0 }
 0x12c   :  { %v182_v29 = vmax.f32 %v158_v25, 0.0 }
 0x12d   :  { %v183_v33 = vmax.f32 %v160_v27, 0.0 }
 0x12e   :  { %v192_v34 = vpack.c.bf16 %v182_v29, %v180_v28 }
 0x12f   :  { %v193_v37 = vpack.c.bf16 %v183_v33, %v181_v30  ;;  %v163_v39 = vpop.f32.mrb[12].mxu0 }
 0x130   :  { %v164_v40 = vadd.f32 %v163_v39, %v92_v51  ;;  %v165_v41 = vpop.f32.mrb[13].mxu0 }
 0x131   :  { %v166_v42 = vadd.f32 %v165_v41, %v96_v52  ;;  %v167_v43 = vpop.f32.mrb[14].mxu0  ;;  %292 = vmatprep.mubr.bf16.mxu1 %v193_v37 }
 0x132   :  { %v168_v44 = vadd.f32 %v167_v43, %v92_v51  ;;  %v169_v45 = vpop.f32.mrb[15].mxu0  ;;  %293 = vmatmul.mubr.bf16.gmra.mrb[8].mxu1 %v192_v34  ;;  %v184_v47 = vmax.f32 %v164_v40, 0.0 }
 0x133   :  { %v170_v46 = vadd.f32 %v169_v45, %v96_v52  ;;  %v185_v49 = vmax.f32 %v166_v42, 0.0 }
 0x134   :  { %v186_v48 = vmax.f32 %v168_v44, 0.0 }
 0x135   :  { %v187_v50 = vmax.f32 %v170_v46, 0.0 }
 0x136   :  { %v194_v53 = vpack.c.bf16 %v186_v48, %v184_v47 }
 0x137   :  { %v195_v54 = vpack.c.bf16 %v187_v50, %v185_v49 }
 0x139   :  { %300 = vmatprep.mubr.bf16.mxu1 %v195_v54 }
 0x13a   :  { %301 = vmatmul.mubr.bf16.gmra.mrb[12].mxu1 %v194_v53 }
 0x1f5   :  { %v278_v55 = vpop.f32.mrb[0].mxu1 }
 0x1f6   :  { %v309_v57 = vadd.f32 %v278_v55, %v579_v15  ;;  %v280_v58 = vpop.f32.mrb[1].mxu1 }
 0x1f7   :  { %v281_v51 = vpop.f32.mrb[2].mxu1 }
 0x1f8   :  { %v310_v59 = vadd.f32 %v281_v51, %v584_v16  ;;  %v283_v52 = vpop.f32.mrb[3].mxu1  ;;  %v324_v60 = vadd.f32 %v463_v56, %v309_v57 }
 0x1fa   :  { %334 = vadd.xlane.f32.xlu0 %v324_v60  ;;  %v325_v61 = vadd.f32 %v463_v56, %v310_v59 }
 0x1fd   :  { %v286_v62 = vpop.f32.mrb[4].mxu1 }
 0x1fe   :  { %v311_v63 = vadd.f32 %v286_v62, %v744_v31  ;;  %336 = vadd.xlane.f32.xlu0 %v325_v61  ;;  %v288_v0 = vpop.f32.mrb[5].mxu1 }
 0x1ff   :  { %v289_v1 = vpop.f32.mrb[6].mxu1 }
 0x200   :  { %v312_v2 = vadd.f32 %v289_v1, %v749_v32  ;;  %v291_v3 = vpop.f32.mrb[7].mxu1  ;;  %v326_v4 = vadd.f32 %v463_v56, %v311_v63 }
 0x202   :  { %338 = vadd.xlane.f32.xlu1 %v326_v4  ;;  %v327_v15 = vadd.f32 %v463_v56, %v312_v2  ;;  %v464_v2 = vld [vmem:[%s874_s5] ss:$0 sm:$0xff] }
 0x205   :  { %v294_v5 = vpop.f32.mrb[8].mxu1 }
 0x206   :  { %v313_v6 = vadd.f32 %v294_v5, %v757_v35  ;;  %340 = vadd.xlane.f32.xlu1 %v327_v15  ;;  %v296_v16 = vpop.f32.mrb[9].mxu1  ;;  %v465_v5 = vld [vmem:[%s875_s6] ss:$0 sm:$0xff] }
 0x207   :  { %v297_v7 = vpop.f32.mrb[10].mxu1 }
 0x208   :  { %v314_v8 = vadd.f32 %v297_v7, %v762_v36  ;;  %v299_v9 = vpop.f32.mrb[11].mxu1  ;;  %v328_v10 = vadd.f32 %v463_v56, %v313_v6 }
 0x20a   :  { %342 = vadd.xlane.f32.xlu0 %v328_v10  ;;  %v329_v31 = vadd.f32 %v463_v56, %v314_v8 }
 0x20c   :  { %344 = vadd.xlane.f32.xlu1 %v329_v31 }
 0x20d   :  { %v302_v11 = vpop.f32.mrb[12].mxu1 }
 0x20e   :  { %v315_v32 = vadd.f32 %v302_v11, %v769_v20  ;;  %v304_v12 = vpop.f32.mrb[13].mxu1 }
 0x20f   :  { %v305_v13 = vpop.f32.mrb[14].mxu1 }
 0x210   :  { %v316_v14 = vadd.f32 %v305_v13, %v774_v38  ;;  %v307_v17 = vpop.f32.mrb[15].mxu1  ;;  %v330_v18 = vadd.f32 %v463_v56, %v315_v32 }
 0x212   :  { %346 = vadd.xlane.f32.xlu0 %v330_v18  ;;  %v331_v35 = vadd.f32 %v463_v56, %v316_v14 }
 0x214   :  { %348 = vadd.xlane.f32.xlu1 %v331_v35 }
 0x287   :  { %v335_v19 = vpop.xlane.xlu0 %334 }
 0x288   :  { %v351_v21 = vmul.f32 0.0078125, %v335_v19 }
 0x28a   :  { %v359_v36 = vsub.f32 %v324_v60, %v351_v21 }
 0x28b   :  { %v337_v22 = vpop.xlane.xlu0 %336 }
 0x28c   :  { %v352_v23 = vmul.f32 0.0078125, %v337_v22  ;;  %v367_v24 = vmul.f32 %v359_v36, %v359_v36 }
 0x28e   :  { %v804_v25 = vsub.f32 %v325_v61, %v352_v23  ;;  %375 = vadd.xlane.f32.xlu0 %v367_v24 }
 0x28f   :  { %v339_v26 = vpop.xlane.xlu1 %338 }
 0x290   :  { %v353_v20 = vmul.f32 0.0078125, %v339_v26  ;;  %v368_v27 = vmul.f32 %v804_v25, %v804_v25 }
 0x292   :  { %v808_v38 = vsub.f32 %v326_v4, %v353_v20  ;;  %377 = vadd.xlane.f32.xlu1 %v368_v27 }
 0x293   :  { %v341_v28 = vpop.xlane.xlu1 %340 }
 0x294   :  { %v354_v29 = vmul.f32 0.0078125, %v341_v28  ;;  %v369_v30 = vmul.f32 %v808_v38, %v808_v38 }
 0x296   :  { %v812_v33 = vsub.f32 %v327_v15, %v354_v29  ;;  %379 = vadd.xlane.f32.xlu0 %v369_v30 }
 0x297   :  { %v343_v34 = vpop.xlane.xlu0 %342 }
 0x298   :  { %v355_v37 = vmul.f32 0.0078125, %v343_v34  ;;  %v370_v39 = vmul.f32 %v812_v33, %v812_v33 }
 0x299   :  { %v345_v40 = vpop.xlane.xlu1 %344 }
 0x29a   :  { %v816_v41 = vsub.f32 %v328_v10, %v355_v37  ;;  %v356_v42 = vmul.f32 0.0078125, %v345_v40  ;;  %381 = vadd.xlane.f32.xlu1 %v370_v39 }
 0x29c   :  { %v818_v43 = vsub.f32 %v329_v31, %v356_v42  ;;  %v371_v44 = vmul.f32 %v816_v41, %v816_v41 }
 0x29e   :  { %383 = vadd.xlane.f32.xlu0 %v371_v44  ;;  %v372_v45 = vmul.f32 %v818_v43, %v818_v43 }
 0x29f   :  { %v347_v46 = vpop.xlane.xlu0 %346 }
 0x2a0   :  { %v357_v47 = vmul.f32 0.0078125, %v347_v46  ;;  %385 = vadd.xlane.f32.xlu1 %v372_v45 }
 0x2a1   :  { %v349_v48 = vpop.xlane.xlu1 %348 }
 0x2a2   :  { %v824_v49 = vsub.f32 %v330_v18, %v357_v47  ;;  %v358_v50 = vmul.f32 0.0078125, %v349_v48 }
 0x2a4   :  { %v826_v53 = vsub.f32 %v331_v35, %v358_v50  ;;  %v373_v54 = vmul.f32 %v824_v49, %v824_v49 }
 0x2a6   :  { %387 = vadd.xlane.f32.xlu0 %v373_v54  ;;  %v374_v55 = vmul.f32 %v826_v53, %v826_v53 }
 0x2a8   :  { %389 = vadd.xlane.f32.xlu1 %v374_v55 }
 0x31b   :  { %v376_v56 = vpop.xlane.xlu0 %375 }
 0x31c   :  { %v391_v57 = vmul.f32 0.0078125, %v376_v56 }
 0x31e   :  { %v399_v58 = vadd.f32 1e-05, %v391_v57 }
 0x31f   :  { %v378_v51 = vpop.xlane.xlu1 %377 }
 0x320   :  { %490 = vrsqrt.f32 %v399_v58  ;;  %v392_v59 = vmul.f32 0.0078125, %v378_v51 }
 0x322   :  { %v400_v52 = vadd.f32 1e-05, %v392_v59 }
 0x323   :  { %v380_v60 = vpop.xlane.xlu0 %379 }
 0x324   :  { %492 = vrsqrt.f32 %v400_v52  ;;  %v393_v61 = vmul.f32 0.0078125, %v380_v60 }
 0x326   :  { %v401_v62 = vadd.f32 1e-05, %v393_v61 }
 0x327   :  { %v382_v63 = vpop.xlane.xlu1 %381 }
 0x328   :  { %494 = vrsqrt.f32 %v401_v62  ;;  %v394_v0 = vmul.f32 0.0078125, %v382_v63 }
 0x32a   :  { %v491_v1 = vpop.eup %490  ;;  %v402_v3 = vadd.f32 1e-05, %v394_v0 }
 0x32b   :  { %v415_v4 = vmul.f32 %v491_v1, %v359_v36  ;;  %v384_v15 = vpop.xlane.xlu0 %383 }
 0x32c   :  { %496 = vrsqrt.f32 %v402_v3  ;;  %v395_v6 = vmul.f32 0.0078125, %v384_v15 }
 0x32d   :  { %v429_v16 = vmul.f32 %v464_v2, %v415_v4  ;;  %v386_v7 = vpop.xlane.xlu1 %385 }
 0x32e   :  { %v493_v8 = vpop.eup %492  ;;  %v403_v9 = vadd.f32 1e-05, %v395_v6  ;;  %v396_v10 = vmul.f32 0.0078125, %v386_v7 }
 0x32f   :  { %v443_v31 = vadd.f32 %v465_v5, %v429_v16  ;;  %v416_v11 = vmul.f32 %v493_v8, %v804_v25 }
 0x330   :  { %498 = vrsqrt.f32 %v403_v9  ;;  %v404_v32 = vadd.f32 1e-05, %v396_v10 }
 0x331   :  { %451 = vst [vmem:[%s876_s7] sm:$0xff] %v443_v31  ;;  %v430_v12 = vmul.f32 %v464_v2, %v416_v11 }
 0x332   :  { %v495_v13 = vpop.eup %494  ;;  %500 = vrsqrt.f32 %v404_v32 }
 0x333   :  { %v444_v14 = vadd.f32 %v465_v5, %v430_v12  ;;  %v417_v17 = vmul.f32 %v495_v13, %v808_v38  ;;  %v388_v18 = vpop.xlane.xlu0 %387 }
 0x334   :  { %v397_v35 = vmul.f32 0.0078125, %v388_v18 }
 0x335   :  { %452 = vst [vmem:[%s876_s7 + $0x8] sm:$0xff] %v444_v14  ;;  %v431_v19 = vmul.f32 %v464_v2, %v417_v17  ;;  %v390_v21 = vpop.xlane.xlu1 %389 }
 0x336   :  { %v497_v36 = vpop.eup %496  ;;  %v405_v22 = vadd.f32 1e-05, %v397_v35  ;;  %v398_v23 = vmul.f32 0.0078125, %v390_v21 }
 0x337   :  { %v445_v24 = vadd.f32 %v465_v5, %v431_v19  ;;  %v418_v25 = vmul.f32 %v497_v36, %v812_v33 }
 0x338   :  { %502 = vrsqrt.f32 %v405_v22  ;;  %v406_v26 = vadd.f32 1e-05, %v398_v23 }
 0x339   :  { %453 = vst [vmem:[%s876_s7 + $0x10] sm:$0xff] %v445_v24  ;;  %v432_v20 = vmul.f32 %v464_v2, %v418_v25 }
 0x33a   :  { %v499_v27 = vpop.eup %498  ;;  %504 = vrsqrt.f32 %v406_v26 }
 0x33b   :  { %v446_v38 = vadd.f32 %v465_v5, %v432_v20  ;;  %v419_v28 = vmul.f32 %v499_v27, %v816_v41 }
 0x33c   :  { %v501_v29 = vpop.eup %500 }
 0x33d   :  { %454 = vst [vmem:[%s876_s7 + $0x18] sm:$0xff] %v446_v38  ;;  %v433_v30 = vmul.f32 %v464_v2, %v419_v28  ;;  %v420_v33 = vmul.f32 %v501_v29, %v818_v43 }
 0x33f   :  { %v447_v34 = vadd.f32 %v465_v5, %v433_v30  ;;  %v434_v37 = vmul.f32 %v464_v2, %v420_v33 }
 0x341   :  { %455 = vst [vmem:[%s876_s7 + $0x20] sm:$0xff] %v447_v34  ;;  %v448_v39 = vadd.f32 %v465_v5, %v434_v37 }
 0x342   :  { %v503_v40 = vpop.eup %502 }
 0x343   :  { %456 = vst [vmem:[%s876_s7 + $0x28] sm:$0xff] %v448_v39  ;;  %v421_v41 = vmul.f32 %v503_v40, %v824_v49 }
 0x344   :  { %v505_v42 = vpop.eup %504 }
 0x345   :  { %v435_v44 = vmul.f32 %v464_v2, %v421_v41  ;;  %v422_v45 = vmul.f32 %v505_v42, %v826_v53 }
 0x347   :  { %v449_v46 = vadd.f32 %v465_v5, %v435_v44  ;;  %v436_v43 = vmul.f32 %v464_v2, %v422_v45 }
 0x349   :  { %457 = vst [vmem:[%s876_s7 + $0x30] sm:$0xff] %v449_v46  ;;  %v450_v47 = vadd.f32 %v465_v5, %v436_v43 }
 0x34b   :  { %458 = vst [vmem:[%s876_s7 + $0x38] sm:$0xff] %v450_v47 }

// kernel: seq2seq_forward.19
= control target key start
LH: loop header
LB: loop body
LE: loop exit
PB: predicated region body
PF: predicated region fallthrough
CT: control target
= control target key end

     0   :  { %s2686_s17 = smov 0   ;;  %s3307_s0 = inlined_call_operand.vmem [shape: f32[4,16,128], index: 0, kind: input, shape index: {}]   ;;  %s3308_s1 = inlined_call_operand.vmem [shape: f32[4,16,128], index: 1, kind: input, shape index: {}]   ;;  %s3309_s2 = inlined_call_operand.vmem [shape: f32[4,32,128], index: 2, kind: input, shape index: {}]   ;;  %s3310_s3 = inlined_call_operand.vmem [shape: f32[4,1,32], index: 3, kind: input, shape index: {}]   ;;  %s3311_s4 = inlined_call_operand.vmem [shape: f32[2,4,32,128], index: 4, kind: input, shape index: {}]   ;;  %s3312_s5 = inlined_call_operand.vmem [shape: f32[2,4,1,32], index: 5, kind: input, shape index: {}]   ;;  %s3313_s6 = inlined_call_operand.vmem [shape: f32[4,128,32], index: 6, kind: input, shape index: {}]   ;;  %s3314_s7 = inlined_call_operand.vmem [shape: f32[1,128], index: 7, kind: input, shape index: {}]   ;;  %s3315_s8 = inlined_call_operand.vmem [shape: f32[4,1,16], index: 8, kind: input, shape index: {}]   ;;  %s3316_s9 = inlined_call_operand.vmem [shape: f32[1,128], index: 9, kind: input, shape index: {}]   ;;  %s3317_s10 = inlined_call_operand.vmem [shape: f32[1,128], index: 10, kind: input, shape index: {}]   ;;  %s3318_s11 = inlined_call_operand.vmem [shape: f32[4,16,128], index: 11, kind: output, shape index: {}]  }
   0x1 LB: > { %s2100_s18 = sadd.s32 4294967295, %s2622_s17   ;;  %p2104_p0 = scmp.ge.s32.totalorder %s2622_s17, 1  ;;  %s2622_s17 = sphi %s2686_s17, %s21_s17  }
   0x2   : > { %p355_p1 = scmp.lt.s32.totalorder %s2622_s17, 5 }
   0x4   : > { %p356_p2 = pnand %p2104_p0, %p355_p1 }
   0x5   : > { %v438_v0 = vld [vmem:[%s3309_s2] sm:$0xff] (!%p356_p2)  ;;  %v439_v1 = vld [vmem:[%s3309_s2 + $0x8] sm:$0xff] (!%p356_p2)  ;;  %p403_p3 = scmp.lt.s32.totalorder (!%p356_p2), %s2100_s18, 3  ;;  %v2624_v2 = vmov (!%p356_p2), 0.0   ;;  %vm2625_vm0 = vmmov (!%p356_p2), 0   ;;  %v440_v4 = vld [vmem:[%s3309_s2 + $0x10] sm:$0xff] (!%p356_p2) }
   0x6   : > { %359 = sbr.rel (%p356_p2) target bundleno = 3921 (0xf51), region = 64  ;;  %2330 = vmatprep.subr.bf16.mxu1 (!%p356_p2), %v2624_v2  ;;  %v443_v3 = vpack.c.bf16 (!%p356_p2), %v439_v1, %v438_v0  ;;  %2334 = vmatprep.mubr.msk.bf16.mxu1 (!%p356_p2), %vm2625_vm0, %v2624_v2  ;;  %v441_v5 = vld [vmem:[%s3309_s2 + $0x18] sm:$0xff] (!%p356_p2)  ;;  %v492_v9 = vld [vmem:[%s3311_s4] sm:$0xff] (!%p356_p2)  ;;  %v493_v10 = vld [vmem:[%s3311_s4 + $0x8] sm:$0xff] (!%p356_p2)  ;;  %vm620_vm1 = vcmask (!%p356_p2), 261120   ;;  %vm678_vm2 = vcmask (!%p356_p2), 130048  }
   0x7   : > { %2366 = vmatprep.subr.bf16.mxu0 (!%p356_p2), %v2624_v2  ;;  %2382 = vmatprep.mubr.msk.bf16.mxu0 (!%p356_p2), %vm2625_vm0, %v2624_v2  ;;  %v444_v6 = vpack.c.bf16 (!%p356_p2), %v441_v5, %v440_v4  ;;  %v497_v12 = vpack.c.bf16 (!%p356_p2), %v493_v10, %v492_v9  ;;  %v494_v13 = vld [vmem:[%s3311_s4 + $0x10] sm:$0xff] (!%p356_p2)  ;;  %v495_v14 = vld [vmem:[%s3311_s4 + $0x18] sm:$0xff] (!%p356_p2)  ;;  %v2114_v19 = vld [vmem:[%s3311_s4 + $0x80] sm:$0xff] (!%p356_p2) }
   0x8   : > { %2331 = vmatpush3.bf16.xpose.msra.mxu1 (!%p356_p2), %v443_v3  ;;  %v498_v15 = vpack.c.bf16 (!%p356_p2), %v495_v14, %v494_v13  ;;  %v2115_v20 = vld [vmem:[%s3311_s4 + $0x88] sm:$0xff] (!%p356_p2)  ;;  %v2116_v22 = vld [vmem:[%s3311_s4 + $0x90] sm:$0xff] (!%p356_p2)  ;;  %v2117_v23 = vld [vmem:[%s3311_s4 + $0x98] sm:$0xff] (!%p356_p2) }
   0x9   : > { %2332 = vmatprep.subr.bf16.mxu1 (!%p356_p2), %v2624_v2  ;;  %v553_v21 = vpack.c.bf16 (!%p356_p2), %v2115_v20, %v2114_v19  ;;  %v554_v24 = vpack.c.bf16 (!%p356_p2), %v2117_v23, %v2116_v22  ;;  %v2112_v25 = vld [vmem:[%s3310_s3] ss:$0 sm:$0xff] (!%p356_p2)  ;;  %v2119_v42 = vld [vmem:[%s3312_s5 + $0x4] ss:$0 sm:$0xff] (!%p356_p2)  ;;  %v603_v9 = vld [vmem:[%s3313_s6 + $0x8] sm:$0xff] (!%p356_p2) }
   0xa   : > { %v2113_v33 = vld [vmem:[%s3312_s5] ss:$0 sm:$0xff] (!%p356_p2)  ;;  %v605_v13 = vld [vmem:[%s3313_s6 + $0x18] sm:$0xff] (!%p356_p2)  ;;  %v607_v19 = vld [vmem:[%s3313_s6 + $0x28] sm:$0xff] (!%p356_p2) }
   0xb   : > { %v608_v22 = vld [vmem:[%s3313_s6 + $0x30] sm:$0xff] (!%p356_p2)  ;;  %v609_v23 = vld [vmem:[%s3313_s6 + $0x38] sm:$0xff] (!%p356_p2) }
   0xd   : > { %s3320_s18 = smov (!%p403_p3, %s2100_s18), 3 }
   0xe   : > { %s2716_s27 = sshll.u32 %s3320_s18, 4  ;;  %s415_s26 = scalar_lea.vmem %s3315_s8, %s3320_s18 }
   0xf   : > { %s2722_s30 = scalar_lea.vmem %s3307_s0, %s2716_s27  ;;  %s412_s24 = scalar_lea.vmem %s3308_s1, %s2716_s27  ;;  %v2791_v50 = vld [vmem:[%s415_s26] ss:$0 sm:$0xff] }
  0x10   : > { %2333 = vmatpush3.bf16.xpose.msra.mxu1 %v444_v6  ;;  %v422_v7 = vld [vmem:[%s2722_s30] sm:$0xff]  ;;  %v423_v8 = vld [vmem:[%s2722_s30 + $0x8] sm:$0xff]  ;;  %s420_s28 = scalar_lea.vmem %s3318_s11, %s2716_s27 }
  0x11   : > { %2338 = vmatprep.subr.bf16.mxu1 %v2624_v2  ;;  %v2733_v11 = vpack.c.bf16 %v423_v8, %v422_v7  ;;  %v425_v16 = vld [vmem:[%s412_s24] sm:$0xff]  ;;  %v426_v17 = vld [vmem:[%s412_s24 + $0x8] sm:$0xff] }
  0x12   : > { %v2750_v18 = vpack.c.bf16 %v426_v17, %v425_v16  ;;  %v602_v8 = vld [vmem:[%s3313_s6] sm:$0xff] }
  0x13   : > { %v748_v10 = vpack.c.bf16 %v603_v9, %v602_v8  ;;  %v606_v17 = vld [vmem:[%s3313_s6 + $0x20] sm:$0xff] }
  0x14   : > { %v750_v20 = vpack.c.bf16 %v607_v19, %v606_v17 }
  0x15   : > { %v760_v14 = vsel %vm620_vm1, %v748_v10, 0  ;;  %v2129_v10 = vld [vmem:[%s3310_s3 + $0x1] ss:$0 sm:$0xff] }
  0x16   : > { %2367 = vmatpush3.bf16.xpose.msra.mxu0 %v760_v14 }
  0x17   : > { %2335 = vmatmul.mubr.bf16.vlgmr.msra.gmra.mrb[0].mxu1 %v2733_v11  ;;  %2368 = vmatprep.subr.bf16.mxu0 %v2624_v2 }
  0x18   : > { %2339 = vmatpush3.bf16.xpose.msra.mxu1 %v497_v12  ;;  %2342 = vmatprep.mubr.msk.bf16.mxu1 %vm2625_vm0, %v2624_v2  ;;  %v604_v12 = vld [vmem:[%s3313_s6 + $0x10] sm:$0xff] }
  0x19   : > { %2340 = vmatprep.subr.bf16.mxu1 %v2624_v2 }
  0x20   : > { %2341 = vmatpush3.bf16.xpose.msra.mxu1 %v498_v15  ;;  %v749_v15 = vpack.c.bf16 %v605_v13, %v604_v12 }
  0x21   : > { %2346 = vmatprep.subr.bf16.mxu1 %v2624_v2 }
  0x22   : > { %v763_v16 = vsel %vm620_vm1, %v749_v15, 0 }
  0x23   : > { %2369 = vmatpush3.bf16.xpose.msra.mxu0 %v763_v16 }
  0x24   : > { %2370 = vmatprep.subr.bf16.mxu0 %v2624_v2 }
  0x27   : > { %2343 = vmatmul.mubr.bf16.vlgmr.msra.gmra.mrb[4].mxu1 %v2750_v18 }
  0x28   : > { %2350 = vmatprep.mubr.msk.bf16.mxu1 %vm2625_vm0, %v2624_v2  ;;  %2347 = vmatpush3.bf16.xpose.msra.mxu1 %v553_v21  ;;  %v766_v21 = vsel %vm620_vm1, %v750_v20, 0  ;;  %v2135_v20 = vld [vmem:[%s3312_s5 + $0x1] ss:$0 sm:$0xff] }
  0x29   : > { %2348 = vmatprep.subr.bf16.mxu1 %v2624_v2 }
  0x2b   : > { %2371 = vmatpush3.bf16.xpose.msra.mxu0 %v766_v21 }
  0x2c   : > { %2372 = vmatprep.subr.bf16.mxu0 %v2624_v2 }
  0x30   : > { %2349 = vmatpush3.bf16.xpose.msra.mxu1 %v554_v24  ;;  %v751_v24 = vpack.c.bf16 %v609_v23, %v608_v22 }
  0x31   : > { %2354 = vmatprep.subr.bf16.mxu1 %v2624_v2 }
  0x37   : > { %2351 = vmatmul.mubr.bf16.vlgmr.msra.gmra.mrb[8].mxu1 %v2750_v18 }
  0x38   : > { %2356 = vmatprep.mubr.msk.bf16.mxu1 %vm2625_vm0, %v2624_v2 }
  0xea   : > { %v485_v26 = vpop.f32.mrb[0].mxu1 }
  0xeb   : > { %v486_v27 = vadd.f32 %v2112_v25, %v485_v26  ;;  %v2336_v28 = vpop.f32.mrb[1].mxu1  ;;  %v610_v26 = vld [vmem:[%s3313_s6 + $0x40] sm:$0xff] }
  0xec   : > { %v488_v29 = vpop.f32.mrb[2].mxu1 }
  0xed   : > { %v489_v30 = vadd.f32 %v2112_v25, %v488_v29  ;;  %v2337_v31 = vpop.f32.mrb[3].mxu1  ;;  %v769_v25 = vsel %vm620_vm1, %v751_v24, 0 }
  0xee   : > { %2373 = vmatpush3.bf16.xpose.msra.mxu0 %v769_v25  ;;  %v613_v31 = vld [vmem:[%s3313_s6 + $0x58] sm:$0xff] }
  0xef   : > { %v618_v32 = vpack.c.bf16 %v489_v30, %v486_v27  ;;  %v611_v27 = vld [vmem:[%s3313_s6 + $0x48] sm:$0xff]  ;;  %2374 = vmatprep.subr.bf16.mxu0 %v2624_v2  ;;  %v612_v30 = vld [vmem:[%s3313_s6 + $0x50] sm:$0xff] }
  0xf0   : > { %v752_v28 = vpack.c.bf16 %v611_v27, %v610_v26 }
  0xf2   : > { %v772_v29 = vsel %vm620_vm1, %v752_v28, 0 }
  0xf6   : > { %2375 = vmatpush3.bf16.xpose.msra.mxu0 %v772_v29  ;;  %v2141_v29 = vld [vmem:[%s3312_s5 + $0x5] ss:$0 sm:$0xff] }
  0xf7   : > { %2376 = vmatprep.subr.bf16.mxu0 %v2624_v2 }
  0xfa   : > { %v539_v34 = vpop.f32.mrb[4].mxu1 }
  0xfb   : > { %v2344_v35 = vpop.f32.mrb[5].mxu1  ;;  %v540_v37 = vadd.f32 %v2113_v33, %v539_v34  ;;  %v614_v34 = vld [vmem:[%s3313_s6 + $0x60] sm:$0xff] }
  0xfc   : > { %v542_v36 = vpop.f32.mrb[6].mxu1  ;;  %v615_v35 = vld [vmem:[%s3313_s6 + $0x68] sm:$0xff] }
  0xfd   : > { %v543_v38 = vadd.f32 %v2113_v33, %v542_v36  ;;  %v2345_v39 = vpop.f32.mrb[7].mxu1  ;;  %v754_v36 = vpack.c.bf16 %v615_v35, %v614_v34 }
  0xfe   : > { %v617_v39 = vld [vmem:[%s3313_s6 + $0x78] sm:$0xff] }
  0xff   : > { %v619_v40 = vpack.c.bf16 %v543_v38, %v540_v37  ;;  %v778_v37 = vsel %vm620_vm1, %v754_v36, 0  ;;  %v616_v38 = vld [vmem:[%s3313_s6 + $0x70] sm:$0xff] }
 0x101   : > { %v625_v41 = vsel %vm620_vm1, %v619_v40, 0  ;;  %v755_v40 = vpack.c.bf16 %v617_v39, %v616_v38 }
 0x102   : > { %2355 = vmatpush3.bf16.xpose.msra.mxu1 %v625_v41 }
 0x103   : > { %2360 = vmatprep.subr.bf16.mxu1 %v2624_v2  ;;  %v781_v41 = vsel %vm620_vm1, %v755_v40, 0 }
 0x109   : > { %2357 = vmatmul.mubr.msk.bf16.vlgmr.msra.gmra.mrb[12].mxu1 %vm620_vm1, %v618_v32  ;;  %v753_v32 = vpack.c.bf16 %v613_v31, %v612_v30 }
 0x10a   : > { %2362 = vmatprep.mubr.msk.bf16.mxu1 %vm2625_vm0, %v2624_v2  ;;  %v595_v43 = vpop.f32.mrb[8].mxu1 }
 0x10b   : > { %v596_v44 = vadd.f32 %v2119_v42, %v595_v43  ;;  %v2352_v45 = vpop.f32.mrb[9].mxu1  ;;  %v775_v33 = vsel %vm620_vm1, %v753_v32, 0 }
 0x10c   : > { %v598_v46 = vpop.f32.mrb[10].mxu1  ;;  %2377 = vmatpush3.bf16.xpose.msra.mxu0 %v775_v33  ;;  %v2124_v45 = vld [vmem:[%s3309_s2 + $0x20] sm:$0xff] }
 0x10d   : > { %v599_v47 = vadd.f32 %v2119_v42, %v598_v46  ;;  %v2353_v48 = vpop.f32.mrb[11].mxu1  ;;  %2378 = vmatprep.subr.bf16.mxu0 %v2624_v2  ;;  %v2125_v46 = vld [vmem:[%s3309_s2 + $0x28] sm:$0xff] }
 0x10f   : > { %v702_v49 = vpack.c.bf16 %v599_v47, %v596_v44 }
 0x111   : > { %2361 = vmatpush3.bf16.msra.mxu1 %v702_v49 }
 0x112   : > { %2386 = vmatprep.subr.bf16.mxu1 %v2624_v2 }
 0x114   : > { %2379 = vmatpush3.bf16.xpose.msra.mxu0 %v778_v37 }
 0x115   : > { %2380 = vmatprep.subr.bf16.mxu0 %v2624_v2 }
 0x11c   : > { %2381 = vmatpush3.bf16.xpose.msra.mxu0 %v781_v41 }
 0x11d   : > { %2422 = vmatprep.subr.bf16.mxu0 %v2624_v2 }
 0x1dc   : > { %v661_v51 = vpop.f32.mrb[12].mxu1 }
 0x1dd   : > { %v668_v52 = vmul.f32 0.17677669, %v661_v51  ;;  %v2358_v53 = vpop.f32.mrb[13].mxu1  ;;  %v833_v51 = vpack.c.bf16 %v2125_v46, %v2124_v45 }
 0x1de   : > { %v664_v54 = vpop.f32.mrb[14].mxu1  ;;  %v2126_v53 = vld [vmem:[%s3309_s2 + $0x30] sm:$0xff] }
 0x1df   : > { %v669_v55 = vmul.f32 0.17677669, %v664_v54  ;;  %v2359_v56 = vpop.f32.mrb[15].mxu1  ;;  %v676_v57 = vadd.f32 %v2791_v50, %v668_v52  ;;  %v2127_v54 = vld [vmem:[%s3309_s2 + $0x38] sm:$0xff] }
 0x1e0   : > { %v2130_v56 = vld [vmem:[%s3311_s4 + $0x20] sm:$0xff] }
 0x1e1   : > { %v679_v58 = vsel %vm678_vm2, %v676_v57, -inf  ;;  %v677_v59 = vadd.f32 %v2791_v50, %v669_v55  ;;  %v834_v55 = vpack.c.bf16 %v2127_v54, %v2126_v53 }
 0x1e2   : > { %680 = vmax.xlane.f32.xlu0 %v679_v58 }
 0x1e3   : > { %v682_v60 = vsel %vm678_vm2, %v677_v59, -inf }
 0x1e6   : > { %683 = vmax.xlane.f32.xlu0 %v682_v60  ;;  %v2133_v60 = vld [vmem:[%s3311_s4 + $0x38] sm:$0xff] }
 0x26f   : > { %v681_v61 = vpop.xlane.xlu0 %680 }
 0x270   : > { %v685_v62 = vsub.f32 %v676_v57, %v681_v61  ;;  %v2131_v57 = vld [vmem:[%s3311_s4 + $0x28] sm:$0xff] }
 0x271   : > { %v889_v58 = vpack.c.bf16 %v2131_v57, %v2130_v56 }
 0x272   : > { %v687_v63 = vmul.f32 1.442695, %v685_v62  ;;  %v2136_v62 = vld [vmem:[%s3311_s4 + $0xa0] sm:$0xff] }
 0x273   : > { %v684_v0 = vpop.xlane.xlu0 %683 }
 0x274   : > { %2578 = vpow2.f32 %v687_v63  ;;  %v686_v1 = vsub.f32 %v677_v59, %v684_v0  ;;  %v2132_v59 = vld [vmem:[%s3311_s4 + $0x30] sm:$0xff]  ;;  %v2137_v63 = vld [vmem:[%s3311_s4 + $0xa8] sm:$0xff] }
 0x275   : > { %v890_v61 = vpack.c.bf16 %v2133_v60, %v2132_v59  ;;  %v945_v0 = vpack.c.bf16 %v2137_v63, %v2136_v62  ;;  %v2143_v59 = vld [vmem:[%s3313_s6 + $0x88] sm:$0xff]  ;;  %v2145_v62 = vld [vmem:[%s3313_s6 + $0x98] sm:$0xff] }
 0x276   : > { %v689_v3 = vmul.f32 1.442695, %v686_v1  ;;  %v2138_v1 = vld [vmem:[%s3311_s4 + $0xb0] sm:$0xff] }
 0x278   : > { %2580 = vpow2.f32 %v689_v3  ;;  %v2139_v3 = vld [vmem:[%s3311_s4 + $0xb8] sm:$0xff] }
 0x27e   : > { %v2579_v4 = vpop.eup %2578 }
 0x27f   : > { %v691_v5 = vsel %vm678_vm2, %v2579_v4, 0.0 }
 0x280   : > { %692 = vadd.xlane.f32.xlu1 %v691_v5 }
 0x282   : > { %v2581_v6 = vpop.eup %2580 }
 0x283   : > { %v694_v7 = vsel %vm678_vm2, %v2581_v6, 0.0 }
 0x284   : > { %695 = vadd.xlane.f32.xlu1 %v694_v7 }
 0x30d   : > { %v693_v42 = vpop.xlane.xlu1 %692 }
 0x30e   : > { %2582 = vrcp.f32 %v693_v42 }
 0x311   : > { %v696_v43 = vpop.xlane.xlu1 %695 }
 0x312   : > { %2584 = vrcp.f32 %v696_v43 }
 0x318   : > { %v2583_v44 = vpop.eup %2582 }
 0x319   : > { %v699_v48 = vmul.f32 %v2583_v44, %v2579_v4  ;;  %v946_v4 = vpack.c.bf16 %v2139_v3, %v2138_v1  ;;  %v2146_v3 = vld [vmem:[%s3313_s6 + $0xa0] sm:$0xff] }
 0x31c   : > { %v2585_v47 = vpop.eup %2584 }
 0x31d   : > { %v700_v49 = vmul.f32 %v2585_v47, %v2581_v6 }
 0x31f   : > { %v701_v52 = vpack.c.bf16 %v700_v49, %v699_v48 }
 0x321   : > { %2363 = vmatmul.mubr.msk.bf16.vlgmr.msra.gmra.mrb[16].mxu1 %vm678_vm2, %v701_v52 }
 0x322   : > { %2387 = vmatpush3.bf16.xpose.msra.mxu1 %v833_v51  ;;  %2390 = vmatprep.mubr.msk.bf16.mxu1 %vm2625_vm0, %v2624_v2 }
 0x323   : > { %2388 = vmatprep.subr.bf16.mxu1 %v2624_v2 }
 0x32a   : > { %2389 = vmatpush3.bf16.xpose.msra.mxu1 %v834_v55 }
 0x32b   : > { %2394 = vmatprep.subr.bf16.mxu1 %v2624_v2 }
 0x331   : > { %2391 = vmatmul.mubr.bf16.vlgmr.msra.gmra.mrb[20].mxu1 %v2733_v11 }
 0x332   : > { %2395 = vmatpush3.bf16.xpose.msra.mxu1 %v889_v58  ;;  %2398 = vmatprep.mubr.msk.bf16.mxu1 %vm2625_vm0, %v2624_v2  ;;  %v2142_v58 = vld [vmem:[%s3313_s6 + $0x80] sm:$0xff] }
 0x333   : > { %2396 = vmatprep.subr.bf16.mxu1 %v2624_v2  ;;  %v1133_v60 = vpack.c.bf16 %v2143_v59, %v2142_v58 }
 0x335   : > { %v1145_v63 = vsel %vm620_vm1, %v1133_v60, 0  ;;  %v2166_v60 = vld [vmem:[%s3310_s3 + $0x2] ss:$0 sm:$0xff] }
 0x33a   : > { %2397 = vmatpush3.bf16.xpose.msra.mxu1 %v890_v61  ;;  %v2144_v61 = vld [vmem:[%s3313_s6 + $0x90] sm:$0xff] }
 0x33b   : > { %2402 = vmatprep.subr.bf16.mxu1 %v2624_v2 }
 0x341   : > { %2399 = vmatmul.mubr.bf16.vlgmr.msra.gmra.mrb[24].mxu1 %v2750_v18 }
 0x342   : > { %2406 = vmatprep.mubr.msk.bf16.mxu1 %vm2625_vm0, %v2624_v2  ;;  %2403 = vmatpush3.bf16.xpose.msra.mxu1 %v945_v0  ;;  %v1134_v0 = vpack.c.bf16 %v2145_v62, %v2144_v61 }
 0x343   : > { %2404 = vmatprep.subr.bf16.mxu1 %v2624_v2 }
 0x344   : > { %v1148_v1 = vsel %vm620_vm1, %v1134_v0, 0 }
 0x34a   : > { %2405 = vmatpush3.bf16.xpose.msra.mxu1 %v946_v4  ;;  %v2147_v4 = vld [vmem:[%s3313_s6 + $0xa8] sm:$0xff] }
 0x34b   : > { %2410 = vmatprep.subr.bf16.mxu1 %v2624_v2 }
 0x351   : > { %2407 = vmatmul.mubr.bf16.vlgmr.msra.gmra.mrb[28].mxu1 %v2750_v18 }
 0x352   : > { %2412 = vmatprep.mubr.msk.bf16.mxu1 %vm2625_vm0, %v2624_v2 }
 0x3f4   : > { %v740_v5 = vpop.f32.mrb[16].mxu1 }
 0x3f5   : > { %v2364_v6 = vpop.f32.mrb[17].mxu1 }
 0x3f6   : > { %v743_v7 = vpop.f32.mrb[18].mxu1 }
 0x3f7   : > { %v747_v8 = vpack.c.bf16 %v743_v7, %v740_v5  ;;  %v2365_v9 = vpop.f32.mrb[19].mxu1  ;;  %v1135_v5 = vpack.c.bf16 %v2147_v4, %v2146_v3  ;;  %v2148_v7 = vld [vmem:[%s3313_s6 + $0xb0] sm:$0xff] }
 0x3f9   : > { %2383 = vmatmul.mubr.msk.bf16.vlgmr.msra.gmra.mrb[0].mxu0 %vm620_vm1, %v747_v8  ;;  %v1151_v6 = vsel %vm620_vm1, %v1135_v5, 0  ;;  %v2149_v8 = vld [vmem:[%s3313_s6 + $0xb8] sm:$0xff]  ;;  %v2172_v5 = vld [vmem:[%s3312_s5 + $0x2] ss:$0 sm:$0xff] }
 0x3fa   : > { %2438 = vmatprep.mubr.msk.bf16.mxu0 %vm2625_vm0, %v2624_v2  ;;  %2423 = vmatpush3.bf16.xpose.msra.mxu0 %v1145_v63  ;;  %v1136_v9 = vpack.c.bf16 %v2149_v8, %v2148_v7 }
 0x3fb   : > { %2424 = vmatprep.subr.bf16.mxu0 %v2624_v2 }
 0x402   : > { %2425 = vmatpush3.bf16.xpose.msra.mxu0 %v1148_v1 }
 0x403   : > { %2426 = vmatprep.subr.bf16.mxu0 %v2624_v2 }
 0x404   : > { %v875_v12 = vpop.f32.mrb[20].mxu1 }
 0x405   : > { %v876_v13 = vadd.f32 %v2129_v10, %v875_v12  ;;  %v2392_v14 = vpop.f32.mrb[21].mxu1  ;;  %v2150_v12 = vld [vmem:[%s3313_s6 + $0xc0] sm:$0xff] }
 0x406   : > { %v878_v15 = vpop.f32.mrb[22].mxu1 }
 0x407   : > { %v879_v16 = vadd.f32 %v2129_v10, %v878_v15  ;;  %v2393_v17 = vpop.f32.mrb[23].mxu1  ;;  %v1154_v10 = vsel %vm620_vm1, %v1136_v9, 0 }
 0x408   : > { %v2153_v17 = vld [vmem:[%s3313_s6 + $0xd8] sm:$0xff] }
 0x409   : > { %v1011_v19 = vpack.c.bf16 %v879_v16, %v876_v13  ;;  %v2151_v13 = vld [vmem:[%s3313_s6 + $0xc8] sm:$0xff]  ;;  %v2152_v16 = vld [vmem:[%s3313_s6 + $0xd0] sm:$0xff] }
 0x40a   : > { %2427 = vmatpush3.bf16.xpose.msra.mxu0 %v1151_v6  ;;  %v1137_v14 = vpack.c.bf16 %v2151_v13, %v2150_v12 }
 0x40b   : > { %2428 = vmatprep.subr.bf16.mxu0 %v2624_v2 }
 0x40c   : > { %v1157_v15 = vsel %vm620_vm1, %v1137_v14, 0 }
 0x412   : > { %2429 = vmatpush3.bf16.xpose.msra.mxu0 %v1154_v10 }
 0x413   : > { %2430 = vmatprep.subr.bf16.mxu0 %v2624_v2 }
 0x414   : > { %v931_v21 = vpop.f32.mrb[24].mxu1 }
 0x415   : > { %v2400_v22 = vpop.f32.mrb[25].mxu1  ;;  %v932_v24 = vadd.f32 %v2135_v20, %v931_v21  ;;  %v2154_v21 = vld [vmem:[%s3313_s6 + $0xe0] sm:$0xff] }
 0x416   : > { %v934_v23 = vpop.f32.mrb[26].mxu1  ;;  %v2155_v22 = vld [vmem:[%s3313_s6 + $0xe8] sm:$0xff] }
 0x417   : > { %v935_v25 = vadd.f32 %v2135_v20, %v934_v23  ;;  %v2401_v26 = vpop.f32.mrb[27].mxu1  ;;  %v1139_v23 = vpack.c.bf16 %v2155_v22, %v2154_v21 }
 0x418   : > { %v2157_v26 = vld [vmem:[%s3313_s6 + $0xf8] sm:$0xff] }
 0x419   : > { %v1012_v27 = vpack.c.bf16 %v935_v25, %v932_v24  ;;  %v1163_v24 = vsel %vm620_vm1, %v1139_v23, 0  ;;  %v2156_v25 = vld [vmem:[%s3313_s6 + $0xf0] sm:$0xff] }
 0x41a   : > { %2431 = vmatpush3.bf16.xpose.msra.mxu0 %v1157_v15  ;;  %v2178_v15 = vld [vmem:[%s3312_s5 + $0x6] ss:$0 sm:$0xff] }
 0x41b   : > { %v1017_v28 = vsel %vm620_vm1, %v1012_v27, 0  ;;  %2432 = vmatprep.subr.bf16.mxu0 %v2624_v2  ;;  %v1140_v27 = vpack.c.bf16 %v2157_v26, %v2156_v25 }
 0x41c   : > { %2411 = vmatpush3.bf16.xpose.msra.mxu1 %v1017_v28 }
 0x41d   : > { %2416 = vmatprep.subr.bf16.mxu1 %v2624_v2  ;;  %v1166_v28 = vsel %vm620_vm1, %v1140_v27, 0 }
 0x423   : > { %2413 = vmatmul.mubr.msk.bf16.vlgmr.msra.gmra.mrb[32].mxu1 %vm620_vm1, %v1011_v19  ;;  %v1138_v19 = vpack.c.bf16 %v2153_v17, %v2152_v16 }
 0x424   : > { %2418 = vmatprep.mubr.msk.bf16.mxu1 %vm2625_vm0, %v2624_v2  ;;  %v987_v30 = vpop.f32.mrb[28].mxu1 }
 0x425   : > { %v988_v31 = vadd.f32 %v2141_v29, %v987_v30  ;;  %v2408_v32 = vpop.f32.mrb[29].mxu1  ;;  %v1160_v20 = vsel %vm620_vm1, %v1138_v19, 0 }
 0x426   : > { %v990_v33 = vpop.f32.mrb[30].mxu1  ;;  %2433 = vmatpush3.bf16.xpose.msra.mxu0 %v1160_v20  ;;  %v2161_v32 = vld [vmem:[%s3309_s2 + $0x40] sm:$0xff] }
 0x427   : > { %v991_v34 = vadd.f32 %v2141_v29, %v990_v33  ;;  %v2409_v35 = vpop.f32.mrb[31].mxu1  ;;  %2434 = vmatprep.subr.bf16.mxu0 %v2624_v2  ;;  %v2162_v33 = vld [vmem:[%s3309_s2 + $0x48] sm:$0xff] }
 0x429   : > { %v1087_v36 = vpack.c.bf16 %v991_v34, %v988_v31 }
 0x42b   : > { %2417 = vmatpush3.bf16.msra.mxu1 %v1087_v36 }
 0x42c   : > { %2442 = vmatprep.subr.bf16.mxu1 %v2624_v2 }
 0x42e   : > { %2435 = vmatpush3.bf16.xpose.msra.mxu0 %v1163_v24 }
 0x42f   : > { %2436 = vmatprep.subr.bf16.mxu0 %v2624_v2 }
 0x436   : > { %2437 = vmatpush3.bf16.xpose.msra.mxu0 %v1166_v28 }
 0x437   : > { %2478 = vmatprep.subr.bf16.mxu0 %v2624_v2 }
 0x4f6   : > { %v1053_v37 = vpop.f32.mrb[32].mxu1 }
 0x4f7   : > { %v1060_v38 = vmul.f32 0.17677669, %v1053_v37  ;;  %v2414_v39 = vpop.f32.mrb[33].mxu1  ;;  %v1218_v37 = vpack.c.bf16 %v2162_v33, %v2161_v32 }
 0x4f8   : > { %v1056_v40 = vpop.f32.mrb[34].mxu1  ;;  %v2163_v39 = vld [vmem:[%s3309_s2 + $0x50] sm:$0xff] }
 0x4f9   : > { %v1061_v41 = vmul.f32 0.17677669, %v1056_v40  ;;  %v2415_v42 = vpop.f32.mrb[35].mxu1  ;;  %v1062_v43 = vadd.f32 %v2791_v50, %v1060_v38  ;;  %v2164_v40 = vld [vmem:[%s3309_s2 + $0x58] sm:$0xff] }
 0x4fa   : > { %v2167_v42 = vld [vmem:[%s3311_s4 + $0x40] sm:$0xff] }
 0x4fb   : > { %v1064_v44 = vsel %vm678_vm2, %v1062_v43, -inf  ;;  %v1063_v45 = vadd.f32 %v2791_v50, %v1061_v41  ;;  %v1219_v41 = vpack.c.bf16 %v2164_v40, %v2163_v39 }
 0x4fc   : > { %1065 = vmax.xlane.f32.xlu0 %v1064_v44 }
 0x4fd   : > { %v1067_v46 = vsel %vm678_vm2, %v1063_v45, -inf }
 0x4fe   : > { %1068 = vmax.xlane.f32.xlu1 %v1067_v46  ;;  %v2170_v46 = vld [vmem:[%s3311_s4 + $0x58] sm:$0xff] }
 0x589   : > { %v1066_v47 = vpop.xlane.xlu0 %1065 }
 0x58a   : > { %v1070_v48 = vsub.f32 %v1062_v43, %v1066_v47  ;;  %v2168_v43 = vld [vmem:[%s3311_s4 + $0x48] sm:$0xff] }
 0x58b   : > { %v1069_v49 = vpop.xlane.xlu1 %1068  ;;  %v1274_v44 = vpack.c.bf16 %v2168_v43, %v2167_v42 }
 0x58c   : > { %v1072_v51 = vmul.f32 1.442695, %v1070_v48  ;;  %v1071_v52 = vsub.f32 %v1063_v45, %v1069_v49  ;;  %v2169_v45 = vld [vmem:[%s3311_s4 + $0x50] sm:$0xff]  ;;  %v2173_v48 = vld [vmem:[%s3311_s4 + $0xc0] sm:$0xff]  ;;  %v2174_v49 = vld [vmem:[%s3311_s4 + $0xc8] sm:$0xff] }
 0x58d   : > { %v1275_v47 = vpack.c.bf16 %v2170_v46, %v2169_v45  ;;  %v2180_v45 = vld [vmem:[%s3313_s6 + $0x108] sm:$0xff] }
 0x58e   : > { %2586 = vpow2.f32 %v1072_v51  ;;  %v1074_v53 = vmul.f32 1.442695, %v1071_v52  ;;  %v1330_v51 = vpack.c.bf16 %v2174_v49, %v2173_v48  ;;  %v2175_v52 = vld [vmem:[%s3311_s4 + $0xd0] sm:$0xff]  ;;  %v2182_v48 = vld [vmem:[%s3313_s6 + $0x118] sm:$0xff] }
 0x590   : > { %2588 = vpow2.f32 %v1074_v53  ;;  %v2176_v53 = vld [vmem:[%s3311_s4 + $0xd8] sm:$0xff] }
 0x598   : > { %v2587_v54 = vpop.eup %2586 }
 0x599   : > { %v1076_v55 = vsel %vm678_vm2, %v2587_v54, 0.0 }
 0x59a   : > { %v2589_v56 = vpop.eup %2588  ;;  %1077 = vadd.xlane.f32.xlu0 %v1076_v55 }
 0x59b   : > { %v1079_v57 = vsel %vm678_vm2, %v2589_v56, 0.0 }
 0x59c   : > { %1080 = vadd.xlane.f32.xlu1 %v1079_v57 }
 0x627   : > { %v1078_v29 = vpop.xlane.xlu0 %1077 }
 0x628   : > { %2590 = vrcp.f32 %v1078_v29 }
 0x629   : > { %v1081_v30 = vpop.xlane.xlu1 %1080 }
 0x62a   : > { %2592 = vrcp.f32 %v1081_v30 }
 0x632   : > { %v2591_v31 = vpop.eup %2590 }
 0x633   : > { %v1084_v35 = vmul.f32 %v2591_v31, %v2587_v54  ;;  %v1331_v54 = vpack.c.bf16 %v2176_v53, %v2175_v52  ;;  %v2183_v53 = vld [vmem:[%s3313_s6 + $0x120] sm:$0xff] }
 0x634   : > { %v2593_v34 = vpop.eup %2592 }
 0x635   : > { %v1085_v36 = vmul.f32 %v2593_v34, %v2589_v56 }
 0x637   : > { %v1086_v38 = vpack.c.bf16 %v1085_v36, %v1084_v35 }
 0x639   : > { %2419 = vmatmul.mubr.msk.bf16.vlgmr.msra.gmra.mrb[36].mxu1 %vm678_vm2, %v1086_v38 }
 0x63a   : > { %2443 = vmatpush3.bf16.xpose.msra.mxu1 %v1218_v37  ;;  %2446 = vmatprep.mubr.msk.bf16.mxu1 %vm2625_vm0, %v2624_v2 }
 0x63b   : > { %2444 = vmatprep.subr.bf16.mxu1 %v2624_v2 }
 0x642   : > { %2445 = vmatpush3.bf16.xpose.msra.mxu1 %v1219_v41 }
 0x643   : > { %2450 = vmatprep.subr.bf16.mxu1 %v2624_v2 }
 0x649   : > { %2447 = vmatmul.mubr.bf16.vlgmr.msra.gmra.mrb[40].mxu1 %v2733_v11 }
 0x64a   : > { %2451 = vmatpush3.bf16.xpose.msra.mxu1 %v1274_v44  ;;  %2454 = vmatprep.mubr.msk.bf16.mxu1 %vm2625_vm0, %v2624_v2  ;;  %v2179_v44 = vld [vmem:[%s3313_s6 + $0x100] sm:$0xff] }
 0x64b   : > { %2452 = vmatprep.subr.bf16.mxu1 %v2624_v2  ;;  %v1518_v46 = vpack.c.bf16 %v2180_v45, %v2179_v44  ;;  %v2203_v45 = vld [vmem:[%s3310_s3 + $0x3] ss:$0 sm:$0xff] }
 0x64d   : > { %v1530_v49 = vsel %vm620_vm1, %v1518_v46, 0 }
 0x652   : > { %2453 = vmatpush3.bf16.xpose.msra.mxu1 %v1275_v47  ;;  %v2181_v47 = vld [vmem:[%s3313_s6 + $0x110] sm:$0xff] }
 0x653   : > { %2458 = vmatprep.subr.bf16.mxu1 %v2624_v2 }
 0x659   : > { %2455 = vmatmul.mubr.bf16.vlgmr.msra.gmra.mrb[44].mxu1 %v2750_v18 }
 0x65a   : > { %2462 = vmatprep.mubr.msk.bf16.mxu1 %vm2625_vm0, %v2624_v2  ;;  %2459 = vmatpush3.bf16.xpose.msra.mxu1 %v1330_v51  ;;  %v1519_v51 = vpack.c.bf16 %v2182_v48, %v2181_v47 }
 0x65b   : > { %2460 = vmatprep.subr.bf16.mxu1 %v2624_v2 }
 0x65c   : > { %v1533_v52 = vsel %vm620_vm1, %v1519_v51, 0 }
 0x662   : > { %2461 = vmatpush3.bf16.xpose.msra.mxu1 %v1331_v54  ;;  %v2184_v54 = vld [vmem:[%s3313_s6 + $0x128] sm:$0xff] }
 0x663   : > { %2466 = vmatprep.subr.bf16.mxu1 %v2624_v2 }
 0x669   : > { %2463 = vmatmul.mubr.bf16.vlgmr.msra.gmra.mrb[48].mxu1 %v2750_v18 }
 0x66a   : > { %2468 = vmatprep.mubr.msk.bf16.mxu1 %vm2625_vm0, %v2624_v2 }
 0x70c   : > { %v1125_v55 = vpop.f32.mrb[36].mxu1 }
 0x70d   : > { %v2420_v56 = vpop.f32.mrb[37].mxu1 }
 0x70e   : > { %v1128_v57 = vpop.f32.mrb[38].mxu1 }
 0x70f   : > { %v1132_v58 = vpack.c.bf16 %v1128_v57, %v1125_v55  ;;  %v2421_v59 = vpop.f32.mrb[39].mxu1  ;;  %v1520_v55 = vpack.c.bf16 %v2184_v54, %v2183_v53  ;;  %v2185_v57 = vld [vmem:[%s3313_s6 + $0x130] sm:$0xff]  ;;  %v2209_v53 = vld [vmem:[%s3312_s5 + $0x3] ss:$0 sm:$0xff] }
 0x711   : > { %2439 = vmatmul.mubr.msk.bf16.vlgmr.msra.gmra.mrb[0].mxu0 %vm620_vm1, %v1132_v58  ;;  %v1536_v56 = vsel %vm620_vm1, %v1520_v55, 0  ;;  %v2186_v58 = vld [vmem:[%s3313_s6 + $0x138] sm:$0xff] }
 0x712   : > { %2494 = vmatprep.mubr.msk.bf16.mxu0 %vm2625_vm0, %v2624_v2  ;;  %2479 = vmatpush3.bf16.xpose.msra.mxu0 %v1530_v49  ;;  %v1521_v59 = vpack.c.bf16 %v2186_v58, %v2185_v57 }
 0x713   : > { %2480 = vmatprep.subr.bf16.mxu0 %v2624_v2 }
 0x71a   : > { %2481 = vmatpush3.bf16.xpose.msra.mxu0 %v1533_v52 }
 0x71b   : > { %2482 = vmatprep.subr.bf16.mxu0 %v2624_v2 }
 0x71c   : > { %v1260_v61 = vpop.f32.mrb[40].mxu1 }
 0x71d   : > { %v1261_v62 = vadd.f32 %v2166_v60, %v1260_v61  ;;  %v2448_v63 = vpop.f32.mrb[41].mxu1  ;;  %v2187_v61 = vld [vmem:[%s3313_s6 + $0x140] sm:$0xff] }
 0x71e   : > { %v1263_v0 = vpop.f32.mrb[42].mxu1 }
 0x71f   : > { %v1264_v1 = vadd.f32 %v2166_v60, %v1263_v0  ;;  %v2449_v3 = vpop.f32.mrb[43].mxu1  ;;  %v1539_v60 = vsel %vm620_vm1, %v1521_v59, 0 }
 0x720   : > { %v2190_v3 = vld [vmem:[%s3313_s6 + $0x158] sm:$0xff] }
 0x721   : > { %v1396_v4 = vpack.c.bf16 %v1264_v1, %v1261_v62  ;;  %v2188_v62 = vld [vmem:[%s3313_s6 + $0x148] sm:$0xff]  ;;  %v2189_v1 = vld [vmem:[%s3313_s6 + $0x150] sm:$0xff] }
 0x722   : > { %2483 = vmatpush3.bf16.xpose.msra.mxu0 %v1536_v56  ;;  %v1522_v63 = vpack.c.bf16 %v2188_v62, %v2187_v61  ;;  %v2215_v62 = vld [vmem:[%s3312_s5 + $0x7] ss:$0 sm:$0xff] }
 0x723   : > { %2484 = vmatprep.subr.bf16.mxu0 %v2624_v2 }
 0x724   : > { %v1542_v0 = vsel %vm620_vm1, %v1522_v63, 0 }
 0x72a   : > { %2485 = vmatpush3.bf16.xpose.msra.mxu0 %v1539_v60 }
 0x72b   : > { %2486 = vmatprep.subr.bf16.mxu0 %v2624_v2 }
 0x72c   : > { %v1316_v6 = vpop.f32.mrb[44].mxu1 }
 0x72d   : > { %v2456_v7 = vpop.f32.mrb[45].mxu1  ;;  %v1317_v9 = vadd.f32 %v2172_v5, %v1316_v6  ;;  %v2191_v6 = vld [vmem:[%s3313_s6 + $0x160] sm:$0xff] }
 0x72e   : > { %v1319_v8 = vpop.f32.mrb[46].mxu1  ;;  %v2192_v7 = vld [vmem:[%s3313_s6 + $0x168] sm:$0xff] }
 0x72f   : > { %v1320_v10 = vadd.f32 %v2172_v5, %v1319_v8  ;;  %v2457_v12 = vpop.f32.mrb[47].mxu1  ;;  %v1524_v8 = vpack.c.bf16 %v2192_v7, %v2191_v6 }
 0x730   : > { %v2194_v12 = vld [vmem:[%s3313_s6 + $0x178] sm:$0xff] }
 0x731   : > { %v1397_v13 = vpack.c.bf16 %v1320_v10, %v1317_v9  ;;  %v1548_v9 = vsel %vm620_vm1, %v1524_v8, 0  ;;  %v2193_v10 = vld [vmem:[%s3313_s6 + $0x170] sm:$0xff] }
 0x732   : > { %2487 = vmatpush3.bf16.xpose.msra.mxu0 %v1542_v0 }
 0x733   : > { %v1402_v14 = vsel %vm620_vm1, %v1397_v13, 0  ;;  %2488 = vmatprep.subr.bf16.mxu0 %v2624_v2  ;;  %v1525_v13 = vpack.c.bf16 %v2194_v12, %v2193_v10 }
 0x734   : > { %2467 = vmatpush3.bf16.xpose.msra.mxu1 %v1402_v14 }
 0x735   : > { %2472 = vmatprep.subr.bf16.mxu1 %v2624_v2  ;;  %v1551_v14 = vsel %vm620_vm1, %v1525_v13, 0 }
 0x73b   : > { %2469 = vmatmul.mubr.msk.bf16.vlgmr.msra.gmra.mrb[52].mxu1 %vm620_vm1, %v1396_v4  ;;  %v1523_v4 = vpack.c.bf16 %v2190_v3, %v2189_v1 }
 0x73c   : > { %2474 = vmatprep.mubr.msk.bf16.mxu1 %vm2625_vm0, %v2624_v2  ;;  %v1372_v16 = vpop.f32.mrb[48].mxu1 }
 0x73d   : > { %v1373_v17 = vadd.f32 %v2178_v15, %v1372_v16  ;;  %v2464_v19 = vpop.f32.mrb[49].mxu1  ;;  %v1545_v5 = vsel %vm620_vm1, %v1523_v4, 0 }
 0x73e   : > { %v1375_v20 = vpop.f32.mrb[50].mxu1  ;;  %2489 = vmatpush3.bf16.xpose.msra.mxu0 %v1545_v5  ;;  %v2198_v19 = vld [vmem:[%s3309_s2 + $0x60] sm:$0xff] }
 0x73f   : > { %v1376_v21 = vadd.f32 %v2178_v15, %v1375_v20  ;;  %v2465_v22 = vpop.f32.mrb[51].mxu1  ;;  %2490 = vmatprep.subr.bf16.mxu0 %v2624_v2  ;;  %v2199_v20 = vld [vmem:[%s3309_s2 + $0x68] sm:$0xff] }
 0x741   : > { %v1472_v23 = vpack.c.bf16 %v1376_v21, %v1373_v17 }
 0x743   : > { %2473 = vmatpush3.bf16.msra.mxu1 %v1472_v23 }
 0x744   : > { %2498 = vmatprep.subr.bf16.mxu1 %v2624_v2 }
 0x746   : > { %2491 = vmatpush3.bf16.xpose.msra.mxu0 %v1548_v9 }
 0x747   : > { %2492 = vmatprep.subr.bf16.mxu0 %v2624_v2 }
 0x74e   : > { %2493 = vmatpush3.bf16.xpose.msra.mxu0 %v1551_v14 }
 0x74f   : > { %2534 = vmatprep.subr.bf16.mxu0 %v2624_v2 }
 0x80e   : > { %v1438_v24 = vpop.f32.mrb[52].mxu1 }
 0x80f   : > { %v1445_v25 = vmul.f32 0.17677669, %v1438_v24  ;;  %v2470_v26 = vpop.f32.mrb[53].mxu1  ;;  %v1603_v24 = vpack.c.bf16 %v2199_v20, %v2198_v19 }
 0x810   : > { %v1441_v27 = vpop.f32.mrb[54].mxu1  ;;  %v2200_v26 = vld [vmem:[%s3309_s2 + $0x70] sm:$0xff] }
 0x811   : > { %v1446_v28 = vmul.f32 0.17677669, %v1441_v27  ;;  %v2471_v29 = vpop.f32.mrb[55].mxu1  ;;  %v1447_v30 = vadd.f32 %v2791_v50, %v1445_v25  ;;  %v2201_v27 = vld [vmem:[%s3309_s2 + $0x78] sm:$0xff] }
 0x812   : > { %v2204_v29 = vld [vmem:[%s3311_s4 + $0x60] sm:$0xff] }
 0x813   : > { %v1449_v31 = vsel %vm678_vm2, %v1447_v30, -inf  ;;  %v1448_v32 = vadd.f32 %v2791_v50, %v1446_v28  ;;  %v1604_v28 = vpack.c.bf16 %v2201_v27, %v2200_v26 }
 0x814   : > { %1450 = vmax.xlane.f32.xlu0 %v1449_v31 }
 0x815   : > { %v1452_v33 = vsel %vm678_vm2, %v1448_v32, -inf }
 0x816   : > { %1453 = vmax.xlane.f32.xlu1 %v1452_v33  ;;  %v2207_v33 = vld [vmem:[%s3311_s4 + $0x78] sm:$0xff] }
 0x8a1   : > { %v1451_v34 = vpop.xlane.xlu0 %1450 }
 0x8a2   : > { %v1455_v35 = vsub.f32 %v1447_v30, %v1451_v34  ;;  %v2205_v30 = vld [vmem:[%s3311_s4 + $0x68] sm:$0xff] }
 0x8a3   : > { %v1454_v36 = vpop.xlane.xlu1 %1453  ;;  %v1659_v31 = vpack.c.bf16 %v2205_v30, %v2204_v29  ;;  %v2217_v29 = vld [vmem:[%s3313_s6 + $0x188] sm:$0xff] }
 0x8a4   : > { %v1457_v37 = vmul.f32 1.442695, %v1455_v35  ;;  %v1456_v38 = vsub.f32 %v1448_v32, %v1454_v36  ;;  %v2206_v32 = vld [vmem:[%s3311_s4 + $0x70] sm:$0xff]  ;;  %v2211_v35 = vld [vmem:[%s3311_s4 + $0xe8] sm:$0xff] }
 0x8a5   : > { %v1660_v34 = vpack.c.bf16 %v2207_v33, %v2206_v32  ;;  %v2219_v32 = vld [vmem:[%s3313_s6 + $0x198] sm:$0xff] }
 0x8a6   : > { %2594 = vpow2.f32 %v1457_v37  ;;  %v1459_v39 = vmul.f32 1.442695, %v1456_v38  ;;  %v2212_v37 = vld [vmem:[%s3311_s4 + $0xf0] sm:$0xff]  ;;  %v2213_v38 = vld [vmem:[%s3311_s4 + $0xf8] sm:$0xff] }
 0x8a8   : > { %2596 = vpow2.f32 %v1459_v39  ;;  %v1716_v39 = vpack.c.bf16 %v2213_v38, %v2212_v37 }
 0x8b0   : > { %v2595_v40 = vpop.eup %2594 }
 0x8b1   : > { %v1461_v41 = vsel %vm678_vm2, %v2595_v40, 0.0 }
 0x8b2   : > { %v2597_v42 = vpop.eup %2596  ;;  %1462 = vadd.xlane.f32.xlu0 %v1461_v41 }
 0x8b3   : > { %v1464_v43 = vsel %vm678_vm2, %v2597_v42, 0.0 }
 0x8b4   : > { %1465 = vadd.xlane.f32.xlu1 %v1464_v43 }
 0x93f   : > { %v1463_v15 = vpop.xlane.xlu0 %1462 }
 0x940   : > { %2598 = vrcp.f32 %v1463_v15 }
 0x941   : > { %v1466_v16 = vpop.xlane.xlu1 %1465 }
 0x942   : > { %2600 = vrcp.f32 %v1466_v16 }
 0x94a   : > { %v2599_v17 = vpop.eup %2598 }
 0x94b   : > { %v1469_v22 = vmul.f32 %v2599_v17, %v2595_v40 }
 0x94c   : > { %v2601_v21 = vpop.eup %2600 }
 0x94d   : > { %v1470_v23 = vmul.f32 %v2601_v21, %v2597_v42 }
 0x94f   : > { %v1471_v25 = vpack.c.bf16 %v1470_v23, %v1469_v22 }
 0x951   : > { %2475 = vmatmul.mubr.msk.bf16.vlgmr.msra.gmra.mrb[56].mxu1 %vm678_vm2, %v1471_v25 }
 0x952   : > { %2499 = vmatpush3.bf16.xpose.msra.mxu1 %v1603_v24  ;;  %2502 = vmatprep.mubr.msk.bf16.mxu1 %vm2625_vm0, %v2624_v2 }
 0x953   : > { %2500 = vmatprep.subr.bf16.mxu1 %v2624_v2 }
 0x95a   : > { %2501 = vmatpush3.bf16.xpose.msra.mxu1 %v1604_v28 }
 0x95b   : > { %2506 = vmatprep.subr.bf16.mxu1 %v2624_v2 }
 0x961   : > { %2503 = vmatmul.mubr.bf16.vlgmr.msra.gmra.mrb[60].mxu1 %v2733_v11  ;;  %v2210_v11 = vld [vmem:[%s3311_s4 + $0xe0] sm:$0xff] }
 0x962   : > { %2507 = vmatpush3.bf16.xpose.msra.mxu1 %v1659_v31  ;;  %2510 = vmatprep.mubr.msk.bf16.mxu1 %vm2625_vm0, %v2624_v2  ;;  %v1715_v36 = vpack.c.bf16 %v2211_v35, %v2210_v11  ;;  %v2218_v31 = vld [vmem:[%s3313_s6 + $0x190] sm:$0xff]  ;;  %v2220_v35 = vld [vmem:[%s3313_s6 + $0x1a0] sm:$0xff] }
 0x963   : > { %2508 = vmatprep.subr.bf16.mxu1 %v2624_v2 }
 0x96a   : > { %2509 = vmatpush3.bf16.xpose.msra.mxu1 %v1660_v34  ;;  %v1904_v34 = vpack.c.bf16 %v2219_v32, %v2218_v31 }
 0x96b   : > { %2514 = vmatprep.subr.bf16.mxu1 %v2624_v2 }
 0x96c   : > { %v1918_v11 = vsel %vm620_vm1, %v1904_v34, 0  ;;  %v2235_v34 = vld [vmem:[%s3316_s9] ss:$0 sm:$0xff] }
 0x971   : > { %2511 = vmatmul.mubr.bf16.vlgmr.msra.gmra.mrb[64].mxu1 %v2750_v18 }
 0x972   : > { %2518 = vmatprep.mubr.msk.bf16.mxu1 %vm2625_vm0, %v2624_v2  ;;  %2515 = vmatpush3.bf16.xpose.msra.mxu1 %v1715_v36  ;;  %v2221_v36 = vld [vmem:[%s3313_s6 + $0x1a8] sm:$0xff] }
 0x973   : > { %2516 = vmatprep.subr.bf16.mxu1 %v2624_v2  ;;  %v1905_v37 = vpack.c.bf16 %v2221_v36, %v2220_v35  ;;  %v2236_v36 = vld [vmem:[%s3317_s10] ss:$0 sm:$0xff] }
 0x975   : > { %v1921_v38 = vsel %vm620_vm1, %v1905_v37, 0 }
 0x97a   : > { %2517 = vmatpush3.bf16.xpose.msra.mxu1 %v1716_v39  ;;  %v2222_v39 = vld [vmem:[%s3313_s6 + $0x1b0] sm:$0xff] }
 0x97b   : > { %2522 = vmatprep.subr.bf16.mxu1 %v2624_v2 }
 0x981   : > { %2519 = vmatmul.mubr.bf16.vlgmr.msra.gmra.mrb[68].mxu1 %v2750_v18 }
 0x982   : > { %2524 = vmatprep.mubr.msk.bf16.mxu1 %vm2625_vm0, %v2624_v2 }
 0xa24   : > { %v1510_v40 = vpop.f32.mrb[56].mxu1 }
 0xa25   : > { %v2476_v41 = vpop.f32.mrb[57].mxu1 }
 0xa26   : > { %v1513_v42 = vpop.f32.mrb[58].mxu1 }
 0xa27   : > { %v1517_v43 = vpack.c.bf16 %v1513_v42, %v1510_v40  ;;  %v2477_v44 = vpop.f32.mrb[59].mxu1  ;;  %v2223_v40 = vld [vmem:[%s3313_s6 + $0x1b8] sm:$0xff] }
 0xa28   : > { %v1906_v41 = vpack.c.bf16 %v2223_v40, %v2222_v39  ;;  %v2225_v44 = vld [vmem:[%s3313_s6 + $0x1c8] sm:$0xff] }
 0xa29   : > { %2495 = vmatmul.mubr.msk.bf16.vlgmr.msra.gmra.mrb[0].mxu0 %vm620_vm1, %v1517_v43  ;;  %v2224_v43 = vld [vmem:[%s3313_s6 + $0x1c0] sm:$0xff] }
 0xa2a   : > { %2550 = vmatprep.mubr.msk.bf16.mxu0 %vm2625_vm0, %v2624_v2  ;;  %v1924_v42 = vsel %vm620_vm1, %v1906_v41, 0 }
 0xa34   : > { %v1645_v46 = vpop.f32.mrb[60].mxu1 }
 0xa35   : > { %v1646_v47 = vadd.f32 %v2203_v45, %v1645_v46  ;;  %v2504_v18 = vpop.f32.mrb[61].mxu1 }
 0xa36   : > { %v1648_v48 = vpop.f32.mrb[62].mxu1  ;;  %v2227_v18 = vld [vmem:[%s3313_s6 + $0x1d8] sm:$0xff] }
 0xa37   : > { %v1649_v49 = vadd.f32 %v2203_v45, %v1648_v48  ;;  %v2505_v51 = vpop.f32.mrb[63].mxu1  ;;  %v1907_v45 = vpack.c.bf16 %v2225_v44, %v2224_v43 }
 0xa38   : > { %v2228_v51 = vld [vmem:[%s3313_s6 + $0x1e0] sm:$0xff] }
 0xa39   : > { %v1781_v52 = vpack.c.bf16 %v1649_v49, %v1646_v47  ;;  %v1927_v46 = vsel %vm620_vm1, %v1907_v45, 0  ;;  %v2226_v47 = vld [vmem:[%s3313_s6 + $0x1d0] sm:$0xff] }
 0xa3a   : > { %v1908_v48 = vpack.c.bf16 %v2227_v18, %v2226_v47 }
 0xa3c   : > { %v1930_v49 = vsel %vm620_vm1, %v1908_v48, 0 }
 0xa44   : > { %v1701_v54 = vpop.f32.mrb[64].mxu1 }
 0xa45   : > { %v2512_v55 = vpop.f32.mrb[65].mxu1  ;;  %v1702_v57 = vadd.f32 %v2209_v53, %v1701_v54 }
 0xa46   : > { %v1704_v56 = vpop.f32.mrb[66].mxu1  ;;  %v2230_v55 = vld [vmem:[%s3313_s6 + $0x1f0] sm:$0xff] }
 0xa47   : > { %v1705_v58 = vadd.f32 %v2209_v53, %v1704_v56  ;;  %v2513_v59 = vpop.f32.mrb[67].mxu1  ;;  %v2231_v56 = vld [vmem:[%s3313_s6 + $0x1f8] sm:$0xff] }
 0xa49   : > { %v1782_v60 = vpack.c.bf16 %v1705_v58, %v1702_v57  ;;  %v1910_v57 = vpack.c.bf16 %v2231_v56, %v2230_v55 }
 0xa4b   : > { %v1787_v61 = vsel %vm620_vm1, %v1782_v60, 0  ;;  %v1936_v58 = vsel %vm620_vm1, %v1910_v57, 0 }
 0xa4c   : > { %2523 = vmatpush3.bf16.xpose.msra.mxu1 %v1787_v61 }
 0xa4d   : > { %2528 = vmatprep.subr.bf16.mxu1 %v2624_v2 }
 0xa53   : > { %2525 = vmatmul.mubr.msk.bf16.vlgmr.msra.gmra.mrb[72].mxu1 %vm620_vm1, %v1781_v52  ;;  %v2229_v52 = vld [vmem:[%s3313_s6 + $0x1e8] sm:$0xff] }
 0xa54   : > { %2530 = vmatprep.mubr.msk.bf16.mxu1 %vm2625_vm0, %v2624_v2  ;;  %v1757_v63 = vpop.f32.mrb[68].mxu1  ;;  %v1909_v53 = vpack.c.bf16 %v2229_v52, %v2228_v51 }
 0xa55   : > { %v1758_v0 = vadd.f32 %v2215_v62, %v1757_v63  ;;  %v2520_v1 = vpop.f32.mrb[69].mxu1 }
 0xa56   : > { %v1760_v3 = vpop.f32.mrb[70].mxu1  ;;  %v1933_v54 = vsel %vm620_vm1, %v1909_v53, 0 }
 0xa57   : > { %v1761_v4 = vadd.f32 %v2215_v62, %v1760_v3  ;;  %v2521_v5 = vpop.f32.mrb[71].mxu1 }
 0xa59   : > { %v1857_v6 = vpack.c.bf16 %v1761_v4, %v1758_v0 }
 0xa5b   : > { %2529 = vmatpush3.bf16.msra.mxu1 %v1857_v6 }
 0xb26   : > { %v1823_v7 = vpop.f32.mrb[72].mxu1 }
 0xb27   : > { %v1830_v8 = vmul.f32 0.17677669, %v1823_v7  ;;  %v2526_v9 = vpop.f32.mrb[73].mxu1  ;;  %v2111_v7 = vld [vmem:[%s3314_s7] ss:$0 sm:$0xff] }
 0xb28   : > { %v1826_v10 = vpop.f32.mrb[74].mxu1 }
 0xb29   : > { %v1831_v12 = vmul.f32 0.17677669, %v1826_v10  ;;  %v2527_v13 = vpop.f32.mrb[75].mxu1  ;;  %v1832_v14 = vadd.f32 %v2791_v50, %v1830_v8  ;;  %v2614_v8 = vld [vmem:[%s2722_s30] sm:$0xff]  ;;  %v2615_v10 = vld [vmem:[%s2722_s30 + $0x8] sm:$0xff] }
 0xb2a   : > { %v436_v9 = vadd.f32 %v2614_v8, %v2111_v7 }
 0xb2b   : > { %v1834_v15 = vsel %vm678_vm2, %v1832_v14, -inf  ;;  %v1833_v16 = vadd.f32 %v2791_v50, %v1831_v12  ;;  %v2216_v50 = vld [vmem:[%s3313_s6 + $0x180] sm:$0xff]  ;;  %v437_v12 = vadd.f32 %v2615_v10, %v2111_v7 }
 0xb2c   : > { %1835 = vmax.xlane.f32.xlu0 %v1834_v15  ;;  %v1903_v30 = vpack.c.bf16 %v2217_v29, %v2216_v50 }
 0xb2d   : > { %v1837_v17 = vsel %vm678_vm2, %v1833_v16, -inf }
 0xb2e   : > { %1838 = vmax.xlane.f32.xlu1 %v1837_v17  ;;  %v1915_v33 = vsel %vm620_vm1, %v1903_v30, 0 }
 0xb2f   : > { %2535 = vmatpush3.bf16.xpose.msra.mxu0 %v1915_v33 }
 0xb30   : > { %2536 = vmatprep.subr.bf16.mxu0 %v2624_v2 }
 0xb37   : > { %2537 = vmatpush3.bf16.xpose.msra.mxu0 %v1918_v11 }
 0xb38   : > { %2538 = vmatprep.subr.bf16.mxu0 %v2624_v2 }
 0xb3f   : > { %2539 = vmatpush3.bf16.xpose.msra.mxu0 %v1921_v38 }
 0xb40   : > { %2540 = vmatprep.subr.bf16.mxu0 %v2624_v2 }
 0xb47   : > { %2541 = vmatpush3.bf16.xpose.msra.mxu0 %v1924_v42 }
 0xb48   : > { %2542 = vmatprep.subr.bf16.mxu0 %v2624_v2 }
 0xb4f   : > { %2543 = vmatpush3.bf16.xpose.msra.mxu0 %v1927_v46 }
 0xb50   : > { %2544 = vmatprep.subr.bf16.mxu0 %v2624_v2 }
 0xb57   : > { %2545 = vmatpush3.bf16.xpose.msra.mxu0 %v1930_v49 }
 0xb58   : > { %2546 = vmatprep.subr.bf16.mxu0 %v2624_v2 }
 0xb5f   : > { %2547 = vmatpush3.bf16.xpose.msra.mxu0 %v1933_v54 }
 0xb60   : > { %2548 = vmatprep.subr.bf16.mxu0 %v2624_v2 }
 0xb67   : > { %2549 = vmatpush3.bf16.xpose.msra.mxu0 %v1936_v58 }
 0xbb9   : > { %v1836_v19 = vpop.xlane.xlu0 %1835 }
 0xbba   : > { %v1840_v20 = vsub.f32 %v1832_v14, %v1836_v19 }
 0xbbb   : > { %v1839_v21 = vpop.xlane.xlu1 %1838 }
 0xbbc   : > { %v1842_v22 = vmul.f32 1.442695, %v1840_v20  ;;  %v1841_v23 = vsub.f32 %v1833_v16, %v1839_v21 }
 0xbbe   : > { %2602 = vpow2.f32 %v1842_v22  ;;  %v1844_v24 = vmul.f32 1.442695, %v1841_v23 }
 0xbc0   : > { %2604 = vpow2.f32 %v1844_v24 }
 0xbc8   : > { %v2603_v25 = vpop.eup %2602 }
 0xbc9   : > { %v1846_v26 = vsel %vm678_vm2, %v2603_v25, 0.0 }
 0xbca   : > { %v2605_v27 = vpop.eup %2604  ;;  %1847 = vadd.xlane.f32.xlu0 %v1846_v26 }
 0xbcb   : > { %v1849_v28 = vsel %vm678_vm2, %v2605_v27, 0.0 }
 0xbcc   : > { %1850 = vadd.xlane.f32.xlu1 %v1849_v28 }
 0xc57   : > { %v1848_v59 = vpop.xlane.xlu0 %1847 }
 0xc58   : > { %2606 = vrcp.f32 %v1848_v59 }
 0xc59   : > { %v1851_v60 = vpop.xlane.xlu1 %1850 }
 0xc5a   : > { %2608 = vrcp.f32 %v1851_v60 }
 0xc62   : > { %v2607_v61 = vpop.eup %2606 }
 0xc63   : > { %v1854_v63 = vmul.f32 %v2607_v61, %v2603_v25 }
 0xc64   : > { %v2609_v62 = vpop.eup %2608 }
 0xc65   : > { %v1855_v0 = vmul.f32 %v2609_v62, %v2605_v27 }
 0xc67   : > { %v1856_v1 = vpack.c.bf16 %v1855_v0, %v1854_v63 }
 0xc69   : > { %2531 = vmatmul.mubr.msk.bf16.vlgmr.msra.gmra.mrb[76].mxu1 %vm678_vm2, %v1856_v1 }
 0xd3c   : > { %v1895_v3 = vpop.f32.mrb[76].mxu1 }
 0xd3d   : > { %v2532_v4 = vpop.f32.mrb[77].mxu1 }
 0xd3e   : > { %v1898_v2 = vpop.f32.mrb[78].mxu1 }
 0xd3f   : > { %v1902_v5 = vpack.c.bf16 %v1898_v2, %v1895_v3  ;;  %v2533_v6 = vpop.f32.mrb[79].mxu1 }
 0xd41   : > { %2551 = vmatmul.mubr.msk.bf16.vlgmr.msra.gmra.mrb[0].mxu0 %vm620_vm1, %v1902_v5 }
 0xe14   : > { %v1972_v13 = vpop.f32.mrb[0].mxu0 }
 0xe15   : > { %v2554_v14 = vadd.f32 %v1972_v13, %v436_v9  ;;  %v2552_v15 = vpop.f32.mrb[1].mxu0 }
 0xe16   : > { %v1975_v16 = vpop.f32.mrb[2].mxu0 }
 0xe17   : > { %v2555_v17 = vadd.f32 %v1975_v16, %v437_v12  ;;  %1983 = vadd.xlane.f32.xlu0 %v2554_v14  ;;  %v2553_v19 = vpop.f32.mrb[3].mxu0 }
 0xe19   : > { %1985 = vadd.xlane.f32.xlu1 %v2555_v17 }
 0xea4   : > { %v1984_v20 = vpop.xlane.xlu0 %1983 }
 0xea5   : > { %v1988_v21 = vmul.f32 0.0078125, %v1984_v20 }
 0xea6   : > { %v1986_v22 = vpop.xlane.xlu1 %1985 }
 0xea7   : > { %v1990_v23 = vsub.f32 %v2554_v14, %v1988_v21  ;;  %v1989_v24 = vmul.f32 0.0078125, %v1986_v22 }
 0xea9   : > { %v1991_v25 = vsub.f32 %v2555_v17, %v1989_v24  ;;  %v1992_v26 = vmul.f32 %v1990_v23, %v1990_v23 }
 0xeab   : > { %1994 = vadd.xlane.f32.xlu0 %v1992_v26  ;;  %v1993_v27 = vmul.f32 %v1991_v25, %v1991_v25 }
 0xead   : > { %1996 = vadd.xlane.f32.xlu1 %v1993_v27 }
 0xf38   : > { %v1995_v28 = vpop.xlane.xlu0 %1994 }
 0xf39   : > { %v1998_v50 = vmul.f32 0.0078125, %v1995_v28 }
 0xf3a   : > { %v1997_v29 = vpop.xlane.xlu1 %1996 }
 0xf3b   : > { %v2000_v30 = vadd.f32 1e-05, %v1998_v50  ;;  %v1999_v31 = vmul.f32 0.0078125, %v1997_v29 }
 0xf3d   : > { %2610 = vrsqrt.f32 %v2000_v30  ;;  %v2001_v32 = vadd.f32 1e-05, %v1999_v31 }
 0xf3f   : > { %2612 = vrsqrt.f32 %v2001_v32 }
 0xf47   : > { %v2611_v33 = vpop.eup %2610 }
 0xf48   : > { %v2004_v11 = vmul.f32 %v2611_v33, %v1990_v23 }
 0xf49   : > { %v2613_v35 = vpop.eup %2612 }
 0xf4a   : > { %v2012_v37 = vmul.f32 %v2235_v34, %v2004_v11  ;;  %v2005_v38 = vmul.f32 %v2613_v35, %v1991_v25 }
 0xf4c   : > { %v2020_v39 = vadd.f32 %v2236_v36, %v2012_v37  ;;  %v2013_v40 = vmul.f32 %v2235_v34, %v2005_v38 }
 0xf4e   : > { %2022 = vst [vmem:[%s420_s28] sm:$0xff] %v2020_v39  ;;  %v2021_v41 = vadd.f32 %v2236_v36, %v2013_v40 }
 0xf50   : > { %2023 = vst [vmem:[%s420_s28 + $0x8] sm:$0xff] %v2021_v41 }
 0xf51 PF: > { %s21_s17 = sadd.s32 1, %s2622_s17  }
 0xf52   : > { %p18_p4 = scmp.ge.s32.totalorder %s21_s17, 6  }
 0xf54   :  { %20 = sbr.rel (!%p18_p4) target bundleno = 1 (0x1), region = 123 }

// kernel: seq2seq_forward.13
= control target key start
LH: loop header
LB: loop body
LE: loop exit
PB: predicated region body
PF: predicated region fallthrough
CT: control target
= control target key end

     0   :  { %s2595_s30 = smov 0   ;;  %s3218_s0 = inlined_call_operand.vmem [shape: f32[4,16,128], index: 0, kind: input, shape index: {}]   ;;  %s3219_s1 = inlined_call_operand.vmem [shape: f32[3,4,32,128], index: 1, kind: input, shape index: {}]   ;;  %s3220_s2 = inlined_call_operand.vmem [shape: f32[3,4,1,32], index: 2, kind: input, shape index: {}]   ;;  %s3221_s3 = inlined_call_operand.vmem [shape: f32[4,128,32], index: 3, kind: input, shape index: {}]   ;;  %s3222_s4 = inlined_call_operand.vmem [shape: f32[1,128], index: 4, kind: input, shape index: {}]   ;;  %s3223_s5 = inlined_call_operand.vmem [shape: f32[16,16], index: 5, kind: input, shape index: {}]   ;;  %s3224_s6 = inlined_call_operand.vmem [shape: f32[4,1,16], index: 6, kind: input, shape index: {}]   ;;  %s3225_s7 = inlined_call_operand.vmem [shape: f32[1,128], index: 7, kind: input, shape index: {}]   ;;  %s3226_s8 = inlined_call_operand.vmem [shape: f32[1,128], index: 8, kind: input, shape index: {}]   ;;  %s3227_s9 = inlined_call_operand.vmem [shape: f32[4,16,128], index: 9, kind: output, shape index: {}]  }
   0x1 LB: > { %s2017_s10 = sadd.s32 4294967295, %s2541_s30   ;;  %p2021_p0 = scmp.ge.s32.totalorder %s2541_s30, 1  ;;  %s2541_s30 = sphi %s2595_s30, %s19_s30  }
   0x2   : > { %p295_p1 = scmp.lt.s32.totalorder %s2541_s30, 5 }
   0x4   : > { %p296_p2 = pnand %p2021_p0, %p295_p1 }
   0x5   : > { %v371_v0 = vld [vmem:[%s3219_s1] sm:$0xff] (!%p296_p2)  ;;  %v372_v1 = vld [vmem:[%s3219_s1 + $0x8] sm:$0xff] (!%p296_p2)  ;;  %p334_p3 = scmp.lt.s32.totalorder (!%p296_p2), %s2017_s10, 3  ;;  %v2543_v2 = vmov (!%p296_p2), 0.0   ;;  %vm2544_vm0 = vmmov (!%p296_p2), 0   ;;  %v373_v4 = vld [vmem:[%s3219_s1 + $0x10] sm:$0xff] (!%p296_p2) }
   0x6   : > { %299 = sbr.rel (%p296_p2) target bundleno = 3921 (0xf51), region = 56  ;;  %2249 = vmatprep.subr.bf16.mxu1 (!%p296_p2), %v2543_v2  ;;  %v376_v3 = vpack.c.bf16 (!%p296_p2), %v372_v1, %v371_v0  ;;  %2253 = vmatprep.mubr.msk.bf16.mxu1 (!%p296_p2), %vm2544_vm0, %v2543_v2  ;;  %v374_v5 = vld [vmem:[%s3219_s1 + $0x18] sm:$0xff] (!%p296_p2)  ;;  %v2029_v9 = vld [vmem:[%s3219_s1 + $0x80] sm:$0xff] (!%p296_p2)  ;;  %v2030_v10 = vld [vmem:[%s3219_s1 + $0x88] sm:$0xff] (!%p296_p2)  ;;  %vm555_vm1 = vcmask (!%p296_p2), 261120   ;;  %vm607_vm2 = vcmask (!%p296_p2), 130048  }
   0x7   : > { %2285 = vmatprep.subr.bf16.mxu0 (!%p296_p2), %v2543_v2  ;;  %2301 = vmatprep.mubr.msk.bf16.mxu0 (!%p296_p2), %vm2544_vm0, %v2543_v2  ;;  %v377_v6 = vpack.c.bf16 (!%p296_p2), %v374_v5, %v373_v4  ;;  %v432_v12 = vpack.c.bf16 (!%p296_p2), %v2030_v10, %v2029_v9  ;;  %v2031_v13 = vld [vmem:[%s3219_s1 + $0x90] sm:$0xff] (!%p296_p2)  ;;  %v2032_v14 = vld [vmem:[%s3219_s1 + $0x98] sm:$0xff] (!%p296_p2)  ;;  %v2035_v16 = vld [vmem:[%s3219_s1 + $0x100] sm:$0xff] (!%p296_p2) }
   0x8   : > { %2250 = vmatpush3.bf16.xpose.msra.mxu1 (!%p296_p2), %v376_v3  ;;  %v433_v15 = vpack.c.bf16 (!%p296_p2), %v2032_v14, %v2031_v13  ;;  %v2036_v17 = vld [vmem:[%s3219_s1 + $0x108] sm:$0xff] (!%p296_p2)  ;;  %v2037_v19 = vld [vmem:[%s3219_s1 + $0x110] sm:$0xff] (!%p296_p2)  ;;  %v2038_v20 = vld [vmem:[%s3219_s1 + $0x118] sm:$0xff] (!%p296_p2) }
   0x9   : > { %2251 = vmatprep.subr.bf16.mxu1 (!%p296_p2), %v2543_v2  ;;  %v488_v18 = vpack.c.bf16 (!%p296_p2), %v2036_v17, %v2035_v16  ;;  %v489_v21 = vpack.c.bf16 (!%p296_p2), %v2038_v20, %v2037_v19  ;;  %v2028_v22 = vld [vmem:[%s3220_s2] ss:$0 sm:$0xff] (!%p296_p2)  ;;  %v2034_v30 = vld [vmem:[%s3220_s2 + $0x4] ss:$0 sm:$0xff] (!%p296_p2)  ;;  %v2040_v39 = vld [vmem:[%s3220_s2 + $0x8] ss:$0 sm:$0xff] (!%p296_p2) }
   0xa   : > { %v351_v47 = vld [vmem:[%s3223_s5] sm:$0xff] (!%p296_p2)  ;;  %v352_v49 = vld [vmem:[%s3223_s5 + $0x8] sm:$0xff] (!%p296_p2)  ;;  %v539_v13 = vld [vmem:[%s3221_s3 + $0x10] sm:$0xff] (!%p296_p2) }
   0xb   : > { %v537_v9 = vld [vmem:[%s3221_s3] sm:$0xff] (!%p296_p2)  ;;  %v538_v10 = vld [vmem:[%s3221_s3 + $0x8] sm:$0xff] (!%p296_p2)  ;;  %v540_v14 = vld [vmem:[%s3221_s3 + $0x18] sm:$0xff] (!%p296_p2) }
   0xc   : > { %v678_v16 = vpack.c.bf16 (!%p296_p2), %v540_v14, %v539_v13  ;;  %v542_v19 = vld [vmem:[%s3221_s3 + $0x28] sm:$0xff] (!%p296_p2) }
   0xd   : > { %s3229_s10 = smov (!%p334_p3, %s2017_s10), 3 }
   0xe   : > { %s2159_s19 = sshll.u32 %s3229_s10, 4  ;;  %s341_s11 = scalar_lea.vmem %s3224_s6, %s3229_s10  ;;  %v692_v17 = vsel %vm555_vm1, %v678_v16, 0 }
   0xf   : > { %s2630_s22 = scalar_lea.vmem %s3218_s0, %s2159_s19  ;;  %v2026_v48 = vld [vmem:[%s341_s11] ss:$0 sm:$0xff]  ;;  %s346_s21 = scalar_lea.vmem %s3227_s9, %s2159_s19 }
  0x10   : > { %2252 = vmatpush3.bf16.xpose.msra.mxu1 %v377_v6  ;;  %v348_v7 = vld [vmem:[%s2630_s22] sm:$0xff]  ;;  %v349_v8 = vld [vmem:[%s2630_s22 + $0x8] sm:$0xff]  ;;  %v2699_v50 = vadd.f32 %v2026_v48, %v351_v47  ;;  %v2701_v54 = vadd.f32 %v2026_v48, %v352_v49 }
  0x11   : > { %2257 = vmatprep.subr.bf16.mxu1 %v2543_v2  ;;  %v2641_v11 = vpack.c.bf16 %v349_v8, %v348_v7 }
  0x17   : > { %2254 = vmatmul.mubr.bf16.vlgmr.msra.gmra.mrb[0].mxu1 %v2641_v11 }
  0x18   : > { %2258 = vmatpush3.bf16.xpose.msra.mxu1 %v432_v12  ;;  %2261 = vmatprep.mubr.msk.bf16.mxu1 %vm2544_vm0, %v2543_v2  ;;  %v677_v12 = vpack.c.bf16 %v538_v10, %v537_v9 }
  0x19   : > { %2259 = vmatprep.subr.bf16.mxu1 %v2543_v2 }
  0x20   : > { %2260 = vmatpush3.bf16.xpose.msra.mxu1 %v433_v15  ;;  %v689_v15 = vsel %vm555_vm1, %v677_v12, 0  ;;  %v2049_v12 = vld [vmem:[%s3220_s2 + $0x1] ss:$0 sm:$0xff] }
  0x21   : > { %2265 = vmatprep.subr.bf16.mxu1 %v2543_v2  ;;  %2286 = vmatpush3.bf16.xpose.msra.mxu0 %v689_v15 }
  0x22   : > { %2287 = vmatprep.subr.bf16.mxu0 %v2543_v2 }
  0x27   : > { %2262 = vmatmul.mubr.bf16.vlgmr.msra.gmra.mrb[4].mxu1 %v2641_v11 }
  0x28   : > { %2269 = vmatprep.mubr.msk.bf16.mxu1 %vm2544_vm0, %v2543_v2  ;;  %2266 = vmatpush3.bf16.xpose.msra.mxu1 %v488_v18  ;;  %v541_v18 = vld [vmem:[%s3221_s3 + $0x20] sm:$0xff] }
  0x29   : > { %2267 = vmatprep.subr.bf16.mxu1 %v2543_v2  ;;  %2288 = vmatpush3.bf16.xpose.msra.mxu0 %v692_v17  ;;  %v679_v20 = vpack.c.bf16 %v542_v19, %v541_v18 }
  0x2a   : > { %2289 = vmatprep.subr.bf16.mxu0 %v2543_v2 }
  0x30   : > { %2268 = vmatpush3.bf16.xpose.msra.mxu1 %v489_v21  ;;  %v695_v21 = vsel %vm555_vm1, %v679_v20, 0  ;;  %v2055_v20 = vld [vmem:[%s3220_s2 + $0x5] ss:$0 sm:$0xff] }
  0x31   : > { %2273 = vmatprep.subr.bf16.mxu1 %v2543_v2  ;;  %2290 = vmatpush3.bf16.xpose.msra.mxu0 %v695_v21 }
  0x32   : > { %2291 = vmatprep.subr.bf16.mxu0 %v2543_v2 }
  0x37   : > { %2270 = vmatmul.mubr.bf16.vlgmr.msra.gmra.mrb[8].mxu1 %v2641_v11 }
  0x38   : > { %2275 = vmatprep.mubr.msk.bf16.mxu1 %vm2544_vm0, %v2543_v2 }
  0xea   : > { %v418_v23 = vpop.f32.mrb[0].mxu1 }
  0xeb   : > { %v419_v24 = vadd.f32 %v2028_v22, %v418_v23  ;;  %v2255_v25 = vpop.f32.mrb[1].mxu1  ;;  %v544_v23 = vld [vmem:[%s3221_s3 + $0x38] sm:$0xff] }
  0xec   : > { %v421_v26 = vpop.f32.mrb[2].mxu1 }
  0xed   : > { %v422_v27 = vadd.f32 %v2028_v22, %v421_v26  ;;  %v2256_v28 = vpop.f32.mrb[3].mxu1  ;;  %v543_v22 = vld [vmem:[%s3221_s3 + $0x30] sm:$0xff]  ;;  %v545_v26 = vld [vmem:[%s3221_s3 + $0x40] sm:$0xff] }
  0xef   : > { %v553_v29 = vpack.c.bf16 %v422_v27, %v419_v24  ;;  %v680_v24 = vpack.c.bf16 %v544_v23, %v543_v22  ;;  %v546_v27 = vld [vmem:[%s3221_s3 + $0x48] sm:$0xff] }
  0xf0   : > { %v681_v28 = vpack.c.bf16 %v546_v27, %v545_v26 }
  0xf1   : > { %v698_v25 = vsel %vm555_vm1, %v680_v24, 0 }
  0xf2   : > { %2292 = vmatpush3.bf16.xpose.msra.mxu0 %v698_v25 }
  0xf3   : > { %2293 = vmatprep.subr.bf16.mxu0 %v2543_v2 }
  0xfa   : > { %v474_v31 = vpop.f32.mrb[4].mxu1 }
  0xfb   : > { %v2263_v32 = vpop.f32.mrb[5].mxu1  ;;  %v475_v34 = vadd.f32 %v2034_v30, %v474_v31  ;;  %v548_v31 = vld [vmem:[%s3221_s3 + $0x58] sm:$0xff] }
  0xfc   : > { %v477_v33 = vpop.f32.mrb[6].mxu1 }
  0xfd   : > { %v478_v35 = vadd.f32 %v2034_v30, %v477_v33  ;;  %v2264_v36 = vpop.f32.mrb[7].mxu1  ;;  %v547_v30 = vld [vmem:[%s3221_s3 + $0x50] sm:$0xff] }
  0xfe   : > { %v682_v32 = vpack.c.bf16 %v548_v31, %v547_v30 }
  0xff   : > { %v554_v37 = vpack.c.bf16 %v478_v35, %v475_v34  ;;  %v549_v34 = vld [vmem:[%s3221_s3 + $0x60] sm:$0xff]  ;;  %v550_v35 = vld [vmem:[%s3221_s3 + $0x68] sm:$0xff] }
 0x100   : > { %v704_v33 = vsel %vm555_vm1, %v682_v32, 0  ;;  %v683_v36 = vpack.c.bf16 %v550_v35, %v549_v34 }
 0x101   : > { %v560_v38 = vsel %vm555_vm1, %v554_v37, 0 }
 0x102   : > { %2274 = vmatpush3.bf16.xpose.msra.mxu1 %v560_v38  ;;  %v707_v37 = vsel %vm555_vm1, %v683_v36, 0  ;;  %v551_v38 = vld [vmem:[%s3221_s3 + $0x70] sm:$0xff] }
 0x103   : > { %2279 = vmatprep.subr.bf16.mxu1 %v2543_v2 }
 0x109   : > { %2276 = vmatmul.mubr.msk.bf16.vlgmr.msra.gmra.mrb[12].mxu1 %vm555_vm1, %v553_v29  ;;  %v701_v29 = vsel %vm555_vm1, %v681_v28, 0 }
 0x10a   : > { %2281 = vmatprep.mubr.msk.bf16.mxu1 %vm2544_vm0, %v2543_v2  ;;  %v530_v40 = vpop.f32.mrb[8].mxu1  ;;  %2294 = vmatpush3.bf16.xpose.msra.mxu0 %v701_v29  ;;  %v2061_v29 = vld [vmem:[%s3220_s2 + $0x9] ss:$0 sm:$0xff] }
 0x10b   : > { %v531_v41 = vadd.f32 %v2040_v39, %v530_v40  ;;  %v2271_v42 = vpop.f32.mrb[9].mxu1  ;;  %2295 = vmatprep.subr.bf16.mxu0 %v2543_v2 }
 0x10c   : > { %v533_v43 = vpop.f32.mrb[10].mxu1 }
 0x10d   : > { %v534_v44 = vadd.f32 %v2040_v39, %v533_v43  ;;  %v2272_v45 = vpop.f32.mrb[11].mxu1  ;;  %v552_v39 = vld [vmem:[%s3221_s3 + $0x78] sm:$0xff] }
 0x10e   : > { %v684_v40 = vpack.c.bf16 %v552_v39, %v551_v38  ;;  %v2044_v45 = vld [vmem:[%s3219_s1 + $0x20] sm:$0xff] }
 0x10f   : > { %v631_v46 = vpack.c.bf16 %v534_v44, %v531_v41 }
 0x110   : > { %v710_v41 = vsel %vm555_vm1, %v684_v40, 0 }
 0x111   : > { %2280 = vmatpush3.bf16.msra.mxu1 %v631_v46  ;;  %v2045_v46 = vld [vmem:[%s3219_s1 + $0x28] sm:$0xff] }
 0x112   : > { %2305 = vmatprep.subr.bf16.mxu1 %v2543_v2  ;;  %2296 = vmatpush3.bf16.xpose.msra.mxu0 %v704_v33 }
 0x113   : > { %2297 = vmatprep.subr.bf16.mxu0 %v2543_v2 }
 0x11a   : > { %2298 = vmatpush3.bf16.xpose.msra.mxu0 %v707_v37 }
 0x11b   : > { %2299 = vmatprep.subr.bf16.mxu0 %v2543_v2 }
 0x122   : > { %2300 = vmatpush3.bf16.xpose.msra.mxu0 %v710_v41 }
 0x123   : > { %2341 = vmatprep.subr.bf16.mxu0 %v2543_v2 }
 0x1dc   : > { %v596_v51 = vpop.f32.mrb[12].mxu1 }
 0x1dd   : > { %v603_v52 = vmul.f32 0.17677669, %v596_v51  ;;  %v2277_v53 = vpop.f32.mrb[13].mxu1  ;;  %v762_v51 = vpack.c.bf16 %v2045_v46, %v2044_v45 }
 0x1de   : > { %v599_v55 = vpop.f32.mrb[14].mxu1  ;;  %v2046_v53 = vld [vmem:[%s3219_s1 + $0x30] sm:$0xff] }
 0x1df   : > { %v604_v56 = vmul.f32 0.17677669, %v599_v55  ;;  %v2278_v57 = vpop.f32.mrb[15].mxu1  ;;  %v605_v58 = vadd.f32 %v603_v52, %v2699_v50  ;;  %v2047_v55 = vld [vmem:[%s3219_s1 + $0x38] sm:$0xff] }
 0x1e0   : > { %v2050_v57 = vld [vmem:[%s3219_s1 + $0xa0] sm:$0xff] }
 0x1e1   : > { %v608_v59 = vsel %vm607_vm2, %v605_v58, -inf  ;;  %v606_v60 = vadd.f32 %v604_v56, %v2701_v54  ;;  %v763_v56 = vpack.c.bf16 %v2047_v55, %v2046_v53 }
 0x1e2   : > { %609 = vmax.xlane.f32.xlu0 %v608_v59 }
 0x1e3   : > { %v611_v61 = vsel %vm607_vm2, %v606_v60, -inf }
 0x1e6   : > { %612 = vmax.xlane.f32.xlu0 %v611_v61  ;;  %v2053_v61 = vld [vmem:[%s3219_s1 + $0xb8] sm:$0xff] }
 0x26f   : > { %v610_v62 = vpop.xlane.xlu0 %609 }
 0x270   : > { %v614_v63 = vsub.f32 %v605_v58, %v610_v62  ;;  %v2051_v58 = vld [vmem:[%s3219_s1 + $0xa8] sm:$0xff] }
 0x271   : > { %v818_v59 = vpack.c.bf16 %v2051_v58, %v2050_v57 }
 0x272   : > { %v616_v0 = vmul.f32 1.442695, %v614_v63  ;;  %v2056_v63 = vld [vmem:[%s3219_s1 + $0x120] sm:$0xff] }
 0x273   : > { %v613_v1 = vpop.xlane.xlu0 %612 }
 0x274   : > { %2497 = vpow2.f32 %v616_v0  ;;  %v615_v3 = vsub.f32 %v606_v60, %v613_v1  ;;  %v2052_v60 = vld [vmem:[%s3219_s1 + $0xb0] sm:$0xff]  ;;  %v2057_v0 = vld [vmem:[%s3219_s1 + $0x128] sm:$0xff] }
 0x275   : > { %v819_v62 = vpack.c.bf16 %v2053_v61, %v2052_v60  ;;  %v874_v1 = vpack.c.bf16 %v2057_v0, %v2056_v63  ;;  %v2063_v60 = vld [vmem:[%s3221_s3 + $0x88] sm:$0xff]  ;;  %v2065_v63 = vld [vmem:[%s3221_s3 + $0x98] sm:$0xff] }
 0x276   : > { %v618_v4 = vmul.f32 1.442695, %v615_v3  ;;  %v2058_v3 = vld [vmem:[%s3219_s1 + $0x130] sm:$0xff] }
 0x278   : > { %2499 = vpow2.f32 %v618_v4  ;;  %v2059_v4 = vld [vmem:[%s3219_s1 + $0x138] sm:$0xff] }
 0x27e   : > { %v2498_v5 = vpop.eup %2497 }
 0x27f   : > { %v620_v6 = vsel %vm607_vm2, %v2498_v5, 0.0 }
 0x280   : > { %621 = vadd.xlane.f32.xlu1 %v620_v6 }
 0x282   : > { %v2500_v7 = vpop.eup %2499 }
 0x283   : > { %v623_v8 = vsel %vm607_vm2, %v2500_v7, 0.0 }
 0x284   : > { %624 = vadd.xlane.f32.xlu1 %v623_v8 }
 0x30d   : > { %v622_v42 = vpop.xlane.xlu1 %621 }
 0x30e   : > { %2501 = vrcp.f32 %v622_v42 }
 0x311   : > { %v625_v43 = vpop.xlane.xlu1 %624 }
 0x312   : > { %2503 = vrcp.f32 %v625_v43 }
 0x318   : > { %v2502_v44 = vpop.eup %2501 }
 0x319   : > { %v628_v48 = vmul.f32 %v2502_v44, %v2498_v5  ;;  %v875_v5 = vpack.c.bf16 %v2059_v4, %v2058_v3  ;;  %v2066_v4 = vld [vmem:[%s3221_s3 + $0xa0] sm:$0xff] }
 0x31c   : > { %v2504_v47 = vpop.eup %2503 }
 0x31d   : > { %v629_v49 = vmul.f32 %v2504_v47, %v2500_v7 }
 0x31f   : > { %v630_v52 = vpack.c.bf16 %v629_v49, %v628_v48 }
 0x321   : > { %2282 = vmatmul.mubr.msk.bf16.vlgmr.msra.gmra.mrb[16].mxu1 %vm607_vm2, %v630_v52 }
 0x322   : > { %2306 = vmatpush3.bf16.xpose.msra.mxu1 %v762_v51  ;;  %2309 = vmatprep.mubr.msk.bf16.mxu1 %vm2544_vm0, %v2543_v2 }
 0x323   : > { %2307 = vmatprep.subr.bf16.mxu1 %v2543_v2 }
 0x32a   : > { %2308 = vmatpush3.bf16.xpose.msra.mxu1 %v763_v56 }
 0x32b   : > { %2313 = vmatprep.subr.bf16.mxu1 %v2543_v2 }
 0x331   : > { %2310 = vmatmul.mubr.bf16.vlgmr.msra.gmra.mrb[20].mxu1 %v2641_v11 }
 0x332   : > { %2314 = vmatpush3.bf16.xpose.msra.mxu1 %v818_v59  ;;  %2317 = vmatprep.mubr.msk.bf16.mxu1 %vm2544_vm0, %v2543_v2  ;;  %v2062_v59 = vld [vmem:[%s3221_s3 + $0x80] sm:$0xff] }
 0x333   : > { %2315 = vmatprep.subr.bf16.mxu1 %v2543_v2  ;;  %v1062_v61 = vpack.c.bf16 %v2063_v60, %v2062_v59 }
 0x335   : > { %v1074_v0 = vsel %vm555_vm1, %v1062_v61, 0  ;;  %v2086_v61 = vld [vmem:[%s3220_s2 + $0x2] ss:$0 sm:$0xff] }
 0x33a   : > { %2316 = vmatpush3.bf16.xpose.msra.mxu1 %v819_v62  ;;  %v2064_v62 = vld [vmem:[%s3221_s3 + $0x90] sm:$0xff] }
 0x33b   : > { %2321 = vmatprep.subr.bf16.mxu1 %v2543_v2 }
 0x341   : > { %2318 = vmatmul.mubr.bf16.vlgmr.msra.gmra.mrb[24].mxu1 %v2641_v11 }
 0x342   : > { %2325 = vmatprep.mubr.msk.bf16.mxu1 %vm2544_vm0, %v2543_v2  ;;  %2322 = vmatpush3.bf16.xpose.msra.mxu1 %v874_v1  ;;  %v1063_v1 = vpack.c.bf16 %v2065_v63, %v2064_v62 }
 0x343   : > { %2323 = vmatprep.subr.bf16.mxu1 %v2543_v2 }
 0x344   : > { %v1077_v3 = vsel %vm555_vm1, %v1063_v1, 0 }
 0x34a   : > { %2324 = vmatpush3.bf16.xpose.msra.mxu1 %v875_v5  ;;  %v2067_v5 = vld [vmem:[%s3221_s3 + $0xa8] sm:$0xff] }
 0x34b   : > { %2329 = vmatprep.subr.bf16.mxu1 %v2543_v2 }
 0x351   : > { %2326 = vmatmul.mubr.bf16.vlgmr.msra.gmra.mrb[28].mxu1 %v2641_v11 }
 0x352   : > { %2331 = vmatprep.mubr.msk.bf16.mxu1 %vm2544_vm0, %v2543_v2 }
 0x3f4   : > { %v669_v6 = vpop.f32.mrb[16].mxu1 }
 0x3f5   : > { %v2283_v7 = vpop.f32.mrb[17].mxu1 }
 0x3f6   : > { %v672_v8 = vpop.f32.mrb[18].mxu1 }
 0x3f7   : > { %v676_v9 = vpack.c.bf16 %v672_v8, %v669_v6  ;;  %v2284_v10 = vpop.f32.mrb[19].mxu1  ;;  %v1064_v6 = vpack.c.bf16 %v2067_v5, %v2066_v4  ;;  %v2068_v8 = vld [vmem:[%s3221_s3 + $0xb0] sm:$0xff] }
 0x3f9   : > { %2302 = vmatmul.mubr.msk.bf16.vlgmr.msra.gmra.mrb[0].mxu0 %vm555_vm1, %v676_v9  ;;  %v1080_v7 = vsel %vm555_vm1, %v1064_v6, 0  ;;  %v2069_v9 = vld [vmem:[%s3221_s3 + $0xb8] sm:$0xff]  ;;  %v2092_v6 = vld [vmem:[%s3220_s2 + $0x6] ss:$0 sm:$0xff] }
 0x3fa   : > { %2357 = vmatprep.mubr.msk.bf16.mxu0 %vm2544_vm0, %v2543_v2  ;;  %2342 = vmatpush3.bf16.xpose.msra.mxu0 %v1074_v0  ;;  %v1065_v10 = vpack.c.bf16 %v2069_v9, %v2068_v8 }
 0x3fb   : > { %2343 = vmatprep.subr.bf16.mxu0 %v2543_v2 }
 0x402   : > { %2344 = vmatpush3.bf16.xpose.msra.mxu0 %v1077_v3 }
 0x403   : > { %2345 = vmatprep.subr.bf16.mxu0 %v2543_v2 }
 0x404   : > { %v804_v13 = vpop.f32.mrb[20].mxu1 }
 0x405   : > { %v805_v14 = vadd.f32 %v2049_v12, %v804_v13  ;;  %v2311_v15 = vpop.f32.mrb[21].mxu1  ;;  %v2070_v13 = vld [vmem:[%s3221_s3 + $0xc0] sm:$0xff] }
 0x406   : > { %v807_v16 = vpop.f32.mrb[22].mxu1 }
 0x407   : > { %v808_v17 = vadd.f32 %v2049_v12, %v807_v16  ;;  %v2312_v18 = vpop.f32.mrb[23].mxu1  ;;  %v1083_v12 = vsel %vm555_vm1, %v1065_v10, 0 }
 0x408   : > { %v2073_v18 = vld [vmem:[%s3221_s3 + $0xd8] sm:$0xff] }
 0x409   : > { %v940_v19 = vpack.c.bf16 %v808_v17, %v805_v14  ;;  %v2071_v14 = vld [vmem:[%s3221_s3 + $0xc8] sm:$0xff]  ;;  %v2072_v17 = vld [vmem:[%s3221_s3 + $0xd0] sm:$0xff] }
 0x40a   : > { %2346 = vmatpush3.bf16.xpose.msra.mxu0 %v1080_v7  ;;  %v1066_v15 = vpack.c.bf16 %v2071_v14, %v2070_v13 }
 0x40b   : > { %2347 = vmatprep.subr.bf16.mxu0 %v2543_v2 }
 0x40c   : > { %v1086_v16 = vsel %vm555_vm1, %v1066_v15, 0 }
 0x412   : > { %2348 = vmatpush3.bf16.xpose.msra.mxu0 %v1083_v12 }
 0x413   : > { %2349 = vmatprep.subr.bf16.mxu0 %v2543_v2 }
 0x414   : > { %v860_v21 = vpop.f32.mrb[24].mxu1 }
 0x415   : > { %v2319_v22 = vpop.f32.mrb[25].mxu1  ;;  %v861_v24 = vadd.f32 %v2055_v20, %v860_v21  ;;  %v2074_v21 = vld [vmem:[%s3221_s3 + $0xe0] sm:$0xff] }
 0x416   : > { %v863_v23 = vpop.f32.mrb[26].mxu1  ;;  %v2075_v22 = vld [vmem:[%s3221_s3 + $0xe8] sm:$0xff] }
 0x417   : > { %v864_v25 = vadd.f32 %v2055_v20, %v863_v23  ;;  %v2320_v26 = vpop.f32.mrb[27].mxu1  ;;  %v1068_v23 = vpack.c.bf16 %v2075_v22, %v2074_v21 }
 0x418   : > { %v2077_v26 = vld [vmem:[%s3221_s3 + $0xf8] sm:$0xff] }
 0x419   : > { %v941_v27 = vpack.c.bf16 %v864_v25, %v861_v24  ;;  %v1092_v24 = vsel %vm555_vm1, %v1068_v23, 0  ;;  %v2076_v25 = vld [vmem:[%s3221_s3 + $0xf0] sm:$0xff] }
 0x41a   : > { %2350 = vmatpush3.bf16.xpose.msra.mxu0 %v1086_v16  ;;  %v2098_v16 = vld [vmem:[%s3220_s2 + $0xa] ss:$0 sm:$0xff] }
 0x41b   : > { %v946_v28 = vsel %vm555_vm1, %v941_v27, 0  ;;  %2351 = vmatprep.subr.bf16.mxu0 %v2543_v2  ;;  %v1069_v27 = vpack.c.bf16 %v2077_v26, %v2076_v25 }
 0x41c   : > { %2330 = vmatpush3.bf16.xpose.msra.mxu1 %v946_v28 }
 0x41d   : > { %2335 = vmatprep.subr.bf16.mxu1 %v2543_v2  ;;  %v1095_v28 = vsel %vm555_vm1, %v1069_v27, 0 }
 0x423   : > { %2332 = vmatmul.mubr.msk.bf16.vlgmr.msra.gmra.mrb[32].mxu1 %vm555_vm1, %v940_v19  ;;  %v1067_v19 = vpack.c.bf16 %v2073_v18, %v2072_v17 }
 0x424   : > { %2337 = vmatprep.mubr.msk.bf16.mxu1 %vm2544_vm0, %v2543_v2  ;;  %v916_v30 = vpop.f32.mrb[28].mxu1 }
 0x425   : > { %v917_v31 = vadd.f32 %v2061_v29, %v916_v30  ;;  %v2327_v32 = vpop.f32.mrb[29].mxu1  ;;  %v1089_v20 = vsel %vm555_vm1, %v1067_v19, 0 }
 0x426   : > { %v919_v33 = vpop.f32.mrb[30].mxu1  ;;  %2352 = vmatpush3.bf16.xpose.msra.mxu0 %v1089_v20  ;;  %v2081_v32 = vld [vmem:[%s3219_s1 + $0x40] sm:$0xff] }
 0x427   : > { %v920_v34 = vadd.f32 %v2061_v29, %v919_v33  ;;  %v2328_v35 = vpop.f32.mrb[31].mxu1  ;;  %2353 = vmatprep.subr.bf16.mxu0 %v2543_v2  ;;  %v2082_v33 = vld [vmem:[%s3219_s1 + $0x48] sm:$0xff] }
 0x429   : > { %v1016_v36 = vpack.c.bf16 %v920_v34, %v917_v31 }
 0x42b   : > { %2336 = vmatpush3.bf16.msra.mxu1 %v1016_v36 }
 0x42c   : > { %2361 = vmatprep.subr.bf16.mxu1 %v2543_v2 }
 0x42e   : > { %2354 = vmatpush3.bf16.xpose.msra.mxu0 %v1092_v24 }
 0x42f   : > { %2355 = vmatprep.subr.bf16.mxu0 %v2543_v2 }
 0x436   : > { %2356 = vmatpush3.bf16.xpose.msra.mxu0 %v1095_v28 }
 0x437   : > { %2397 = vmatprep.subr.bf16.mxu0 %v2543_v2 }
 0x4f6   : > { %v982_v37 = vpop.f32.mrb[32].mxu1 }
 0x4f7   : > { %v989_v38 = vmul.f32 0.17677669, %v982_v37  ;;  %v2333_v39 = vpop.f32.mrb[33].mxu1  ;;  %v1147_v37 = vpack.c.bf16 %v2082_v33, %v2081_v32 }
 0x4f8   : > { %v985_v40 = vpop.f32.mrb[34].mxu1  ;;  %v2083_v39 = vld [vmem:[%s3219_s1 + $0x50] sm:$0xff] }
 0x4f9   : > { %v990_v41 = vmul.f32 0.17677669, %v985_v40  ;;  %v2334_v42 = vpop.f32.mrb[35].mxu1  ;;  %v991_v43 = vadd.f32 %v989_v38, %v2699_v50  ;;  %v2084_v40 = vld [vmem:[%s3219_s1 + $0x58] sm:$0xff] }
 0x4fa   : > { %v2087_v42 = vld [vmem:[%s3219_s1 + $0xc0] sm:$0xff] }
 0x4fb   : > { %v993_v44 = vsel %vm607_vm2, %v991_v43, -inf  ;;  %v992_v45 = vadd.f32 %v990_v41, %v2701_v54  ;;  %v1148_v41 = vpack.c.bf16 %v2084_v40, %v2083_v39 }
 0x4fc   : > { %994 = vmax.xlane.f32.xlu0 %v993_v44 }
 0x4fd   : > { %v996_v46 = vsel %vm607_vm2, %v992_v45, -inf }
 0x4fe   : > { %997 = vmax.xlane.f32.xlu1 %v996_v46  ;;  %v2090_v46 = vld [vmem:[%s3219_s1 + $0xd8] sm:$0xff] }
 0x589   : > { %v995_v47 = vpop.xlane.xlu0 %994 }
 0x58a   : > { %v999_v48 = vsub.f32 %v991_v43, %v995_v47  ;;  %v2088_v43 = vld [vmem:[%s3219_s1 + $0xc8] sm:$0xff] }
 0x58b   : > { %v998_v49 = vpop.xlane.xlu1 %997  ;;  %v1203_v44 = vpack.c.bf16 %v2088_v43, %v2087_v42 }
 0x58c   : > { %v1001_v51 = vmul.f32 1.442695, %v999_v48  ;;  %v1000_v52 = vsub.f32 %v992_v45, %v998_v49  ;;  %v2089_v45 = vld [vmem:[%s3219_s1 + $0xd0] sm:$0xff]  ;;  %v2093_v48 = vld [vmem:[%s3219_s1 + $0x140] sm:$0xff]  ;;  %v2094_v49 = vld [vmem:[%s3219_s1 + $0x148] sm:$0xff] }
 0x58d   : > { %v1204_v47 = vpack.c.bf16 %v2090_v46, %v2089_v45  ;;  %v2100_v45 = vld [vmem:[%s3221_s3 + $0x108] sm:$0xff] }
 0x58e   : > { %2505 = vpow2.f32 %v1001_v51  ;;  %v1003_v53 = vmul.f32 1.442695, %v1000_v52  ;;  %v1259_v51 = vpack.c.bf16 %v2094_v49, %v2093_v48  ;;  %v2095_v52 = vld [vmem:[%s3219_s1 + $0x150] sm:$0xff]  ;;  %v2102_v48 = vld [vmem:[%s3221_s3 + $0x118] sm:$0xff] }
 0x590   : > { %2507 = vpow2.f32 %v1003_v53  ;;  %v2096_v53 = vld [vmem:[%s3219_s1 + $0x158] sm:$0xff] }
 0x598   : > { %v2506_v55 = vpop.eup %2505 }
 0x599   : > { %v1005_v56 = vsel %vm607_vm2, %v2506_v55, 0.0 }
 0x59a   : > { %v2508_v57 = vpop.eup %2507  ;;  %1006 = vadd.xlane.f32.xlu0 %v1005_v56 }
 0x59b   : > { %v1008_v58 = vsel %vm607_vm2, %v2508_v57, 0.0 }
 0x59c   : > { %1009 = vadd.xlane.f32.xlu1 %v1008_v58 }
 0x627   : > { %v1007_v29 = vpop.xlane.xlu0 %1006 }
 0x628   : > { %2509 = vrcp.f32 %v1007_v29 }
 0x629   : > { %v1010_v30 = vpop.xlane.xlu1 %1009 }
 0x62a   : > { %2511 = vrcp.f32 %v1010_v30 }
 0x632   : > { %v2510_v31 = vpop.eup %2509 }
 0x633   : > { %v1013_v35 = vmul.f32 %v2510_v31, %v2506_v55  ;;  %v1260_v55 = vpack.c.bf16 %v2096_v53, %v2095_v52  ;;  %v2103_v53 = vld [vmem:[%s3221_s3 + $0x120] sm:$0xff] }
 0x634   : > { %v2512_v34 = vpop.eup %2511 }
 0x635   : > { %v1014_v36 = vmul.f32 %v2512_v34, %v2508_v57 }
 0x637   : > { %v1015_v38 = vpack.c.bf16 %v1014_v36, %v1013_v35 }
 0x639   : > { %2338 = vmatmul.mubr.msk.bf16.vlgmr.msra.gmra.mrb[36].mxu1 %vm607_vm2, %v1015_v38 }
 0x63a   : > { %2362 = vmatpush3.bf16.xpose.msra.mxu1 %v1147_v37  ;;  %2365 = vmatprep.mubr.msk.bf16.mxu1 %vm2544_vm0, %v2543_v2 }
 0x63b   : > { %2363 = vmatprep.subr.bf16.mxu1 %v2543_v2 }
 0x642   : > { %2364 = vmatpush3.bf16.xpose.msra.mxu1 %v1148_v41 }
 0x643   : > { %2369 = vmatprep.subr.bf16.mxu1 %v2543_v2 }
 0x649   : > { %2366 = vmatmul.mubr.bf16.vlgmr.msra.gmra.mrb[40].mxu1 %v2641_v11 }
 0x64a   : > { %2370 = vmatpush3.bf16.xpose.msra.mxu1 %v1203_v44  ;;  %2373 = vmatprep.mubr.msk.bf16.mxu1 %vm2544_vm0, %v2543_v2  ;;  %v2099_v44 = vld [vmem:[%s3221_s3 + $0x100] sm:$0xff] }
 0x64b   : > { %2371 = vmatprep.subr.bf16.mxu1 %v2543_v2  ;;  %v1447_v46 = vpack.c.bf16 %v2100_v45, %v2099_v44 }
 0x64d   : > { %v1459_v49 = vsel %vm555_vm1, %v1447_v46, 0  ;;  %v2123_v46 = vld [vmem:[%s3220_s2 + $0x3] ss:$0 sm:$0xff] }
 0x652   : > { %2372 = vmatpush3.bf16.xpose.msra.mxu1 %v1204_v47  ;;  %v2101_v47 = vld [vmem:[%s3221_s3 + $0x110] sm:$0xff] }
 0x653   : > { %2377 = vmatprep.subr.bf16.mxu1 %v2543_v2 }
 0x659   : > { %2374 = vmatmul.mubr.bf16.vlgmr.msra.gmra.mrb[44].mxu1 %v2641_v11 }
 0x65a   : > { %2381 = vmatprep.mubr.msk.bf16.mxu1 %vm2544_vm0, %v2543_v2  ;;  %2378 = vmatpush3.bf16.xpose.msra.mxu1 %v1259_v51  ;;  %v1448_v51 = vpack.c.bf16 %v2102_v48, %v2101_v47 }
 0x65b   : > { %2379 = vmatprep.subr.bf16.mxu1 %v2543_v2 }
 0x65c   : > { %v1462_v52 = vsel %vm555_vm1, %v1448_v51, 0 }
 0x662   : > { %2380 = vmatpush3.bf16.xpose.msra.mxu1 %v1260_v55  ;;  %v2104_v55 = vld [vmem:[%s3221_s3 + $0x128] sm:$0xff] }
 0x663   : > { %2385 = vmatprep.subr.bf16.mxu1 %v2543_v2 }
 0x669   : > { %2382 = vmatmul.mubr.bf16.vlgmr.msra.gmra.mrb[48].mxu1 %v2641_v11 }
 0x66a   : > { %2387 = vmatprep.mubr.msk.bf16.mxu1 %vm2544_vm0, %v2543_v2 }
 0x70c   : > { %v1054_v56 = vpop.f32.mrb[36].mxu1 }
 0x70d   : > { %v2339_v57 = vpop.f32.mrb[37].mxu1 }
 0x70e   : > { %v1057_v58 = vpop.f32.mrb[38].mxu1 }
 0x70f   : > { %v1061_v59 = vpack.c.bf16 %v1057_v58, %v1054_v56  ;;  %v2340_v60 = vpop.f32.mrb[39].mxu1  ;;  %v1449_v56 = vpack.c.bf16 %v2104_v55, %v2103_v53  ;;  %v2105_v58 = vld [vmem:[%s3221_s3 + $0x130] sm:$0xff]  ;;  %v2129_v55 = vld [vmem:[%s3220_s2 + $0x7] ss:$0 sm:$0xff] }
 0x711   : > { %2358 = vmatmul.mubr.msk.bf16.vlgmr.msra.gmra.mrb[0].mxu0 %vm555_vm1, %v1061_v59  ;;  %v1465_v57 = vsel %vm555_vm1, %v1449_v56, 0  ;;  %v2106_v59 = vld [vmem:[%s3221_s3 + $0x138] sm:$0xff] }
 0x712   : > { %2413 = vmatprep.mubr.msk.bf16.mxu0 %vm2544_vm0, %v2543_v2  ;;  %2398 = vmatpush3.bf16.xpose.msra.mxu0 %v1459_v49  ;;  %v1450_v60 = vpack.c.bf16 %v2106_v59, %v2105_v58 }
 0x713   : > { %2399 = vmatprep.subr.bf16.mxu0 %v2543_v2 }
 0x71a   : > { %2400 = vmatpush3.bf16.xpose.msra.mxu0 %v1462_v52 }
 0x71b   : > { %2401 = vmatprep.subr.bf16.mxu0 %v2543_v2 }
 0x71c   : > { %v1189_v62 = vpop.f32.mrb[40].mxu1 }
 0x71d   : > { %v1190_v63 = vadd.f32 %v2086_v61, %v1189_v62  ;;  %v2367_v0 = vpop.f32.mrb[41].mxu1  ;;  %v2107_v62 = vld [vmem:[%s3221_s3 + $0x140] sm:$0xff] }
 0x71e   : > { %v1192_v1 = vpop.f32.mrb[42].mxu1 }
 0x71f   : > { %v1193_v3 = vadd.f32 %v2086_v61, %v1192_v1  ;;  %v2368_v4 = vpop.f32.mrb[43].mxu1  ;;  %v1468_v61 = vsel %vm555_vm1, %v1450_v60, 0 }
 0x720   : > { %v2110_v4 = vld [vmem:[%s3221_s3 + $0x158] sm:$0xff] }
 0x721   : > { %v1325_v5 = vpack.c.bf16 %v1193_v3, %v1190_v63  ;;  %v2108_v63 = vld [vmem:[%s3221_s3 + $0x148] sm:$0xff]  ;;  %v2109_v3 = vld [vmem:[%s3221_s3 + $0x150] sm:$0xff] }
 0x722   : > { %2402 = vmatpush3.bf16.xpose.msra.mxu0 %v1465_v57  ;;  %v1451_v0 = vpack.c.bf16 %v2108_v63, %v2107_v62 }
 0x723   : > { %2403 = vmatprep.subr.bf16.mxu0 %v2543_v2 }
 0x724   : > { %v1471_v1 = vsel %vm555_vm1, %v1451_v0, 0  ;;  %v2135_v0 = vld [vmem:[%s3220_s2 + $0xb] ss:$0 sm:$0xff] }
 0x72a   : > { %2404 = vmatpush3.bf16.xpose.msra.mxu0 %v1468_v61 }
 0x72b   : > { %2405 = vmatprep.subr.bf16.mxu0 %v2543_v2 }
 0x72c   : > { %v1245_v7 = vpop.f32.mrb[44].mxu1 }
 0x72d   : > { %v2375_v8 = vpop.f32.mrb[45].mxu1  ;;  %v1246_v10 = vadd.f32 %v2092_v6, %v1245_v7  ;;  %v2111_v7 = vld [vmem:[%s3221_s3 + $0x160] sm:$0xff] }
 0x72e   : > { %v1248_v9 = vpop.f32.mrb[46].mxu1  ;;  %v2112_v8 = vld [vmem:[%s3221_s3 + $0x168] sm:$0xff] }
 0x72f   : > { %v1249_v12 = vadd.f32 %v2092_v6, %v1248_v9  ;;  %v2376_v13 = vpop.f32.mrb[47].mxu1  ;;  %v1453_v9 = vpack.c.bf16 %v2112_v8, %v2111_v7 }
 0x730   : > { %v2114_v13 = vld [vmem:[%s3221_s3 + $0x178] sm:$0xff] }
 0x731   : > { %v1326_v14 = vpack.c.bf16 %v1249_v12, %v1246_v10  ;;  %v1477_v10 = vsel %vm555_vm1, %v1453_v9, 0  ;;  %v2113_v12 = vld [vmem:[%s3221_s3 + $0x170] sm:$0xff] }
 0x732   : > { %2406 = vmatpush3.bf16.xpose.msra.mxu0 %v1471_v1 }
 0x733   : > { %v1331_v15 = vsel %vm555_vm1, %v1326_v14, 0  ;;  %2407 = vmatprep.subr.bf16.mxu0 %v2543_v2  ;;  %v1454_v14 = vpack.c.bf16 %v2114_v13, %v2113_v12 }
 0x734   : > { %2386 = vmatpush3.bf16.xpose.msra.mxu1 %v1331_v15 }
 0x735   : > { %2391 = vmatprep.subr.bf16.mxu1 %v2543_v2  ;;  %v1480_v15 = vsel %vm555_vm1, %v1454_v14, 0 }
 0x73b   : > { %2388 = vmatmul.mubr.msk.bf16.vlgmr.msra.gmra.mrb[52].mxu1 %vm555_vm1, %v1325_v5  ;;  %v1452_v5 = vpack.c.bf16 %v2110_v4, %v2109_v3 }
 0x73c   : > { %2393 = vmatprep.mubr.msk.bf16.mxu1 %vm2544_vm0, %v2543_v2  ;;  %v1301_v17 = vpop.f32.mrb[48].mxu1 }
 0x73d   : > { %v1302_v18 = vadd.f32 %v2098_v16, %v1301_v17  ;;  %v2383_v19 = vpop.f32.mrb[49].mxu1  ;;  %v1474_v6 = vsel %vm555_vm1, %v1452_v5, 0 }
 0x73e   : > { %v1304_v20 = vpop.f32.mrb[50].mxu1  ;;  %2408 = vmatpush3.bf16.xpose.msra.mxu0 %v1474_v6  ;;  %v2118_v19 = vld [vmem:[%s3219_s1 + $0x60] sm:$0xff] }
 0x73f   : > { %v1305_v21 = vadd.f32 %v2098_v16, %v1304_v20  ;;  %v2384_v22 = vpop.f32.mrb[51].mxu1  ;;  %2409 = vmatprep.subr.bf16.mxu0 %v2543_v2  ;;  %v2119_v20 = vld [vmem:[%s3219_s1 + $0x68] sm:$0xff] }
 0x741   : > { %v1401_v23 = vpack.c.bf16 %v1305_v21, %v1302_v18 }
 0x743   : > { %2392 = vmatpush3.bf16.msra.mxu1 %v1401_v23 }
 0x744   : > { %2417 = vmatprep.subr.bf16.mxu1 %v2543_v2 }
 0x746   : > { %2410 = vmatpush3.bf16.xpose.msra.mxu0 %v1477_v10 }
 0x747   : > { %2411 = vmatprep.subr.bf16.mxu0 %v2543_v2 }
 0x74e   : > { %2412 = vmatpush3.bf16.xpose.msra.mxu0 %v1480_v15 }
 0x74f   : > { %2453 = vmatprep.subr.bf16.mxu0 %v2543_v2 }
 0x80e   : > { %v1367_v24 = vpop.f32.mrb[52].mxu1 }
 0x80f   : > { %v1374_v25 = vmul.f32 0.17677669, %v1367_v24  ;;  %v2389_v26 = vpop.f32.mrb[53].mxu1  ;;  %v1532_v24 = vpack.c.bf16 %v2119_v20, %v2118_v19 }
 0x810   : > { %v1370_v27 = vpop.f32.mrb[54].mxu1  ;;  %v2120_v26 = vld [vmem:[%s3219_s1 + $0x70] sm:$0xff] }
 0x811   : > { %v1375_v28 = vmul.f32 0.17677669, %v1370_v27  ;;  %v2390_v29 = vpop.f32.mrb[55].mxu1  ;;  %v1376_v30 = vadd.f32 %v1374_v25, %v2699_v50  ;;  %v2121_v27 = vld [vmem:[%s3219_s1 + $0x78] sm:$0xff] }
 0x812   : > { %v2124_v29 = vld [vmem:[%s3219_s1 + $0xe0] sm:$0xff] }
 0x813   : > { %v1378_v31 = vsel %vm607_vm2, %v1376_v30, -inf  ;;  %v1377_v32 = vadd.f32 %v1375_v28, %v2701_v54  ;;  %v1533_v28 = vpack.c.bf16 %v2121_v27, %v2120_v26 }
 0x814   : > { %1379 = vmax.xlane.f32.xlu0 %v1378_v31 }
 0x815   : > { %v1381_v33 = vsel %vm607_vm2, %v1377_v32, -inf }
 0x816   : > { %1382 = vmax.xlane.f32.xlu1 %v1381_v33  ;;  %v2127_v33 = vld [vmem:[%s3219_s1 + $0xf8] sm:$0xff] }
 0x8a1   : > { %v1380_v34 = vpop.xlane.xlu0 %1379 }
 0x8a2   : > { %v1384_v35 = vsub.f32 %v1376_v30, %v1380_v34  ;;  %v2125_v30 = vld [vmem:[%s3219_s1 + $0xe8] sm:$0xff] }
 0x8a3   : > { %v1383_v36 = vpop.xlane.xlu1 %1382  ;;  %v1588_v31 = vpack.c.bf16 %v2125_v30, %v2124_v29  ;;  %v2137_v29 = vld [vmem:[%s3221_s3 + $0x188] sm:$0xff] }
 0x8a4   : > { %v1386_v37 = vmul.f32 1.442695, %v1384_v35  ;;  %v1385_v38 = vsub.f32 %v1377_v32, %v1383_v36  ;;  %v2126_v32 = vld [vmem:[%s3219_s1 + $0xf0] sm:$0xff]  ;;  %v2130_v35 = vld [vmem:[%s3219_s1 + $0x160] sm:$0xff]  ;;  %v2131_v36 = vld [vmem:[%s3219_s1 + $0x168] sm:$0xff] }
 0x8a5   : > { %v1589_v34 = vpack.c.bf16 %v2127_v33, %v2126_v32  ;;  %v2139_v32 = vld [vmem:[%s3221_s3 + $0x198] sm:$0xff] }
 0x8a6   : > { %2513 = vpow2.f32 %v1386_v37  ;;  %v1388_v39 = vmul.f32 1.442695, %v1385_v38  ;;  %v1644_v37 = vpack.c.bf16 %v2131_v36, %v2130_v35  ;;  %v2132_v38 = vld [vmem:[%s3219_s1 + $0x170] sm:$0xff]  ;;  %v2140_v36 = vld [vmem:[%s3221_s3 + $0x1a0] sm:$0xff] }
 0x8a8   : > { %2515 = vpow2.f32 %v1388_v39  ;;  %v2133_v39 = vld [vmem:[%s3219_s1 + $0x178] sm:$0xff] }
 0x8b0   : > { %v2514_v40 = vpop.eup %2513 }
 0x8b1   : > { %v1390_v41 = vsel %vm607_vm2, %v2514_v40, 0.0 }
 0x8b2   : > { %v2516_v42 = vpop.eup %2515  ;;  %1391 = vadd.xlane.f32.xlu0 %v1390_v41 }
 0x8b3   : > { %v1393_v43 = vsel %vm607_vm2, %v2516_v42, 0.0 }
 0x8b4   : > { %1394 = vadd.xlane.f32.xlu1 %v1393_v43 }
 0x93f   : > { %v1392_v16 = vpop.xlane.xlu0 %1391 }
 0x940   : > { %2517 = vrcp.f32 %v1392_v16 }
 0x941   : > { %v1395_v17 = vpop.xlane.xlu1 %1394 }
 0x942   : > { %2519 = vrcp.f32 %v1395_v17 }
 0x94a   : > { %v2518_v18 = vpop.eup %2517 }
 0x94b   : > { %v1398_v22 = vmul.f32 %v2518_v18, %v2514_v40  ;;  %v1645_v40 = vpack.c.bf16 %v2133_v39, %v2132_v38 }
 0x94c   : > { %v2520_v21 = vpop.eup %2519 }
 0x94d   : > { %v1399_v23 = vmul.f32 %v2520_v21, %v2516_v42 }
 0x94f   : > { %v1400_v25 = vpack.c.bf16 %v1399_v23, %v1398_v22 }
 0x951   : > { %2394 = vmatmul.mubr.msk.bf16.vlgmr.msra.gmra.mrb[56].mxu1 %vm607_vm2, %v1400_v25 }
 0x952   : > { %2418 = vmatpush3.bf16.xpose.msra.mxu1 %v1532_v24  ;;  %2421 = vmatprep.mubr.msk.bf16.mxu1 %vm2544_vm0, %v2543_v2 }
 0x953   : > { %2419 = vmatprep.subr.bf16.mxu1 %v2543_v2 }
 0x95a   : > { %2420 = vmatpush3.bf16.xpose.msra.mxu1 %v1533_v28 }
 0x95b   : > { %2425 = vmatprep.subr.bf16.mxu1 %v2543_v2 }
 0x961   : > { %2422 = vmatmul.mubr.bf16.vlgmr.msra.gmra.mrb[60].mxu1 %v2641_v11 }
 0x962   : > { %2426 = vmatpush3.bf16.xpose.msra.mxu1 %v1588_v31  ;;  %2429 = vmatprep.mubr.msk.bf16.mxu1 %vm2544_vm0, %v2543_v2  ;;  %v2138_v31 = vld [vmem:[%s3221_s3 + $0x190] sm:$0xff] }
 0x963   : > { %2427 = vmatprep.subr.bf16.mxu1 %v2543_v2 }
 0x96a   : > { %2428 = vmatpush3.bf16.xpose.msra.mxu1 %v1589_v34  ;;  %v1833_v34 = vpack.c.bf16 %v2139_v32, %v2138_v31 }
 0x96b   : > { %2433 = vmatprep.subr.bf16.mxu1 %v2543_v2 }
 0x96c   : > { %v1847_v35 = vsel %vm555_vm1, %v1833_v34, 0  ;;  %v2155_v34 = vld [vmem:[%s3225_s7] ss:$0 sm:$0xff] }
 0x971   : > { %2430 = vmatmul.mubr.bf16.vlgmr.msra.gmra.mrb[64].mxu1 %v2641_v11 }
 0x972   : > { %2437 = vmatprep.mubr.msk.bf16.mxu1 %vm2544_vm0, %v2543_v2  ;;  %2434 = vmatpush3.bf16.xpose.msra.mxu1 %v1644_v37  ;;  %v2141_v37 = vld [vmem:[%s3221_s3 + $0x1a8] sm:$0xff] }
 0x973   : > { %2435 = vmatprep.subr.bf16.mxu1 %v2543_v2  ;;  %v1834_v38 = vpack.c.bf16 %v2141_v37, %v2140_v36  ;;  %v2156_v37 = vld [vmem:[%s3226_s8] ss:$0 sm:$0xff] }
 0x975   : > { %v1850_v39 = vsel %vm555_vm1, %v1834_v38, 0 }
 0x97a   : > { %2436 = vmatpush3.bf16.xpose.msra.mxu1 %v1645_v40  ;;  %v2142_v40 = vld [vmem:[%s3221_s3 + $0x1b0] sm:$0xff] }
 0x97b   : > { %2441 = vmatprep.subr.bf16.mxu1 %v2543_v2 }
 0x981   : > { %2438 = vmatmul.mubr.bf16.vlgmr.msra.gmra.mrb[68].mxu1 %v2641_v11 }
 0x982   : > { %2443 = vmatprep.mubr.msk.bf16.mxu1 %vm2544_vm0, %v2543_v2 }
 0xa24   : > { %v1439_v41 = vpop.f32.mrb[56].mxu1 }
 0xa25   : > { %v2395_v42 = vpop.f32.mrb[57].mxu1 }
 0xa26   : > { %v1442_v43 = vpop.f32.mrb[58].mxu1 }
 0xa27   : > { %v1446_v44 = vpack.c.bf16 %v1442_v43, %v1439_v41  ;;  %v2396_v45 = vpop.f32.mrb[59].mxu1  ;;  %v2143_v41 = vld [vmem:[%s3221_s3 + $0x1b8] sm:$0xff] }
 0xa28   : > { %v1835_v42 = vpack.c.bf16 %v2143_v41, %v2142_v40  ;;  %v2145_v45 = vld [vmem:[%s3221_s3 + $0x1c8] sm:$0xff] }
 0xa29   : > { %2414 = vmatmul.mubr.msk.bf16.vlgmr.msra.gmra.mrb[0].mxu0 %vm555_vm1, %v1446_v44  ;;  %v2144_v44 = vld [vmem:[%s3221_s3 + $0x1c0] sm:$0xff] }
 0xa2a   : > { %2469 = vmatprep.mubr.msk.bf16.mxu0 %vm2544_vm0, %v2543_v2  ;;  %v1853_v43 = vsel %vm555_vm1, %v1835_v42, 0 }
 0xa34   : > { %v1574_v47 = vpop.f32.mrb[60].mxu1 }
 0xa35   : > { %v1575_v48 = vadd.f32 %v2123_v46, %v1574_v47  ;;  %v2423_v11 = vpop.f32.mrb[61].mxu1 }
 0xa36   : > { %v1577_v49 = vpop.f32.mrb[62].mxu1  ;;  %v2147_v11 = vld [vmem:[%s3221_s3 + $0x1d8] sm:$0xff] }
 0xa37   : > { %v1578_v51 = vadd.f32 %v2123_v46, %v1577_v49  ;;  %v2424_v52 = vpop.f32.mrb[63].mxu1  ;;  %v1836_v46 = vpack.c.bf16 %v2145_v45, %v2144_v44 }
 0xa38   : > { %v2148_v52 = vld [vmem:[%s3221_s3 + $0x1e0] sm:$0xff] }
 0xa39   : > { %v1710_v53 = vpack.c.bf16 %v1578_v51, %v1575_v48  ;;  %v1856_v47 = vsel %vm555_vm1, %v1836_v46, 0  ;;  %v2146_v48 = vld [vmem:[%s3221_s3 + $0x1d0] sm:$0xff] }
 0xa3a   : > { %v1837_v49 = vpack.c.bf16 %v2147_v11, %v2146_v48 }
 0xa3c   : > { %v1859_v51 = vsel %vm555_vm1, %v1837_v49, 0 }
 0xa44   : > { %v1630_v56 = vpop.f32.mrb[64].mxu1 }
 0xa45   : > { %v2431_v57 = vpop.f32.mrb[65].mxu1  ;;  %v1631_v59 = vadd.f32 %v2129_v55, %v1630_v56 }
 0xa46   : > { %v1633_v58 = vpop.f32.mrb[66].mxu1  ;;  %v2150_v57 = vld [vmem:[%s3221_s3 + $0x1f0] sm:$0xff] }
 0xa47   : > { %v1634_v60 = vadd.f32 %v2129_v55, %v1633_v58  ;;  %v2432_v61 = vpop.f32.mrb[67].mxu1  ;;  %v2151_v58 = vld [vmem:[%s3221_s3 + $0x1f8] sm:$0xff] }
 0xa49   : > { %v1711_v62 = vpack.c.bf16 %v1634_v60, %v1631_v59  ;;  %v1839_v59 = vpack.c.bf16 %v2151_v58, %v2150_v57 }
 0xa4b   : > { %v1716_v63 = vsel %vm555_vm1, %v1711_v62, 0  ;;  %v1865_v60 = vsel %vm555_vm1, %v1839_v59, 0 }
 0xa4c   : > { %2442 = vmatpush3.bf16.xpose.msra.mxu1 %v1716_v63 }
 0xa4d   : > { %2447 = vmatprep.subr.bf16.mxu1 %v2543_v2 }
 0xa53   : > { %2444 = vmatmul.mubr.msk.bf16.vlgmr.msra.gmra.mrb[72].mxu1 %vm555_vm1, %v1710_v53  ;;  %v2149_v53 = vld [vmem:[%s3221_s3 + $0x1e8] sm:$0xff] }
 0xa54   : > { %2449 = vmatprep.mubr.msk.bf16.mxu1 %vm2544_vm0, %v2543_v2  ;;  %v1686_v1 = vpop.f32.mrb[68].mxu1  ;;  %v1838_v55 = vpack.c.bf16 %v2149_v53, %v2148_v52 }
 0xa55   : > { %v1687_v3 = vadd.f32 %v2135_v0, %v1686_v1  ;;  %v2439_v4 = vpop.f32.mrb[69].mxu1 }
 0xa56   : > { %v1689_v5 = vpop.f32.mrb[70].mxu1  ;;  %v1862_v56 = vsel %vm555_vm1, %v1838_v55, 0 }
 0xa57   : > { %v1690_v6 = vadd.f32 %v2135_v0, %v1689_v5  ;;  %v2440_v7 = vpop.f32.mrb[71].mxu1 }
 0xa59   : > { %v1786_v8 = vpack.c.bf16 %v1690_v6, %v1687_v3 }
 0xa5b   : > { %2448 = vmatpush3.bf16.msra.mxu1 %v1786_v8 }
 0xb26   : > { %v1752_v9 = vpop.f32.mrb[72].mxu1 }
 0xb27   : > { %v1759_v10 = vmul.f32 0.17677669, %v1752_v9  ;;  %v2445_v12 = vpop.f32.mrb[73].mxu1  ;;  %v2027_v9 = vld [vmem:[%s3222_s4] ss:$0 sm:$0xff] }
 0xb28   : > { %v1755_v13 = vpop.f32.mrb[74].mxu1 }
 0xb29   : > { %v1760_v14 = vmul.f32 0.17677669, %v1755_v13  ;;  %v2446_v15 = vpop.f32.mrb[75].mxu1  ;;  %v1761_v16 = vadd.f32 %v1759_v10, %v2699_v50  ;;  %v2533_v10 = vld [vmem:[%s2630_s22] sm:$0xff]  ;;  %v2534_v13 = vld [vmem:[%s2630_s22 + $0x8] sm:$0xff] }
 0xb2a   : > { %v369_v12 = vadd.f32 %v2533_v10, %v2027_v9 }
 0xb2b   : > { %v1763_v17 = vsel %vm607_vm2, %v1761_v16, -inf  ;;  %v1762_v18 = vadd.f32 %v1760_v14, %v2701_v54  ;;  %v2136_v54 = vld [vmem:[%s3221_s3 + $0x180] sm:$0xff]  ;;  %v370_v14 = vadd.f32 %v2534_v13, %v2027_v9 }
 0xb2c   : > { %1764 = vmax.xlane.f32.xlu0 %v1763_v17  ;;  %v1832_v30 = vpack.c.bf16 %v2137_v29, %v2136_v54 }
 0xb2d   : > { %v1766_v19 = vsel %vm607_vm2, %v1762_v18, -inf }
 0xb2e   : > { %1767 = vmax.xlane.f32.xlu1 %v1766_v19  ;;  %v1844_v33 = vsel %vm555_vm1, %v1832_v30, 0 }
 0xb2f   : > { %2454 = vmatpush3.bf16.xpose.msra.mxu0 %v1844_v33 }
 0xb30   : > { %2455 = vmatprep.subr.bf16.mxu0 %v2543_v2 }
 0xb37   : > { %2456 = vmatpush3.bf16.xpose.msra.mxu0 %v1847_v35 }
 0xb38   : > { %2457 = vmatprep.subr.bf16.mxu0 %v2543_v2 }
 0xb3f   : > { %2458 = vmatpush3.bf16.xpose.msra.mxu0 %v1850_v39 }
 0xb40   : > { %2459 = vmatprep.subr.bf16.mxu0 %v2543_v2 }
 0xb47   : > { %2460 = vmatpush3.bf16.xpose.msra.mxu0 %v1853_v43 }
 0xb48   : > { %2461 = vmatprep.subr.bf16.mxu0 %v2543_v2 }
 0xb4f   : > { %2462 = vmatpush3.bf16.xpose.msra.mxu0 %v1856_v47 }
 0xb50   : > { %2463 = vmatprep.subr.bf16.mxu0 %v2543_v2 }
 0xb57   : > { %2464 = vmatpush3.bf16.xpose.msra.mxu0 %v1859_v51 }
 0xb58   : > { %2465 = vmatprep.subr.bf16.mxu0 %v2543_v2 }
 0xb5f   : > { %2466 = vmatpush3.bf16.xpose.msra.mxu0 %v1862_v56 }
 0xb60   : > { %2467 = vmatprep.subr.bf16.mxu0 %v2543_v2 }
 0xb67   : > { %2468 = vmatpush3.bf16.xpose.msra.mxu0 %v1865_v60 }
 0xbb9   : > { %v1765_v20 = vpop.xlane.xlu0 %1764 }
 0xbba   : > { %v1769_v21 = vsub.f32 %v1761_v16, %v1765_v20 }
 0xbbb   : > { %v1768_v22 = vpop.xlane.xlu1 %1767 }
 0xbbc   : > { %v1771_v23 = vmul.f32 1.442695, %v1769_v21  ;;  %v1770_v24 = vsub.f32 %v1762_v18, %v1768_v22 }
 0xbbe   : > { %2521 = vpow2.f32 %v1771_v23  ;;  %v1773_v25 = vmul.f32 1.442695, %v1770_v24 }
 0xbc0   : > { %2523 = vpow2.f32 %v1773_v25 }
 0xbc8   : > { %v2522_v26 = vpop.eup %2521 }
 0xbc9   : > { %v1775_v27 = vsel %vm607_vm2, %v2522_v26, 0.0 }
 0xbca   : > { %v2524_v50 = vpop.eup %2523  ;;  %1776 = vadd.xlane.f32.xlu0 %v1775_v27 }
 0xbcb   : > { %v1778_v28 = vsel %vm607_vm2, %v2524_v50, 0.0 }
 0xbcc   : > { %1779 = vadd.xlane.f32.xlu1 %v1778_v28 }
 0xc57   : > { %v1777_v61 = vpop.xlane.xlu0 %1776 }
 0xc58   : > { %2525 = vrcp.f32 %v1777_v61 }
 0xc59   : > { %v1780_v62 = vpop.xlane.xlu1 %1779 }
 0xc5a   : > { %2527 = vrcp.f32 %v1780_v62 }
 0xc62   : > { %v2526_v63 = vpop.eup %2525 }
 0xc63   : > { %v1783_v1 = vmul.f32 %v2526_v63, %v2522_v26 }
 0xc64   : > { %v2528_v0 = vpop.eup %2527 }
 0xc65   : > { %v1784_v3 = vmul.f32 %v2528_v0, %v2524_v50 }
 0xc67   : > { %v1785_v4 = vpack.c.bf16 %v1784_v3, %v1783_v1 }
 0xc69   : > { %2450 = vmatmul.mubr.msk.bf16.vlgmr.msra.gmra.mrb[76].mxu1 %vm607_vm2, %v1785_v4 }
 0xd3c   : > { %v1824_v5 = vpop.f32.mrb[76].mxu1 }
 0xd3d   : > { %v2451_v6 = vpop.f32.mrb[77].mxu1 }
 0xd3e   : > { %v1827_v2 = vpop.f32.mrb[78].mxu1 }
 0xd3f   : > { %v1831_v7 = vpack.c.bf16 %v1827_v2, %v1824_v5  ;;  %v2452_v8 = vpop.f32.mrb[79].mxu1 }
 0xd41   : > { %2470 = vmatmul.mubr.msk.bf16.vlgmr.msra.gmra.mrb[0].mxu0 %vm555_vm1, %v1831_v7 }
 0xe14   : > { %v1901_v15 = vpop.f32.mrb[0].mxu0 }
 0xe15   : > { %v2473_v16 = vadd.f32 %v1901_v15, %v369_v12  ;;  %v2471_v17 = vpop.f32.mrb[1].mxu0 }
 0xe16   : > { %v1904_v18 = vpop.f32.mrb[2].mxu0 }
 0xe17   : > { %v2474_v19 = vadd.f32 %v1904_v18, %v370_v14  ;;  %1912 = vadd.xlane.f32.xlu0 %v2473_v16  ;;  %v2472_v20 = vpop.f32.mrb[3].mxu0 }
 0xe19   : > { %1914 = vadd.xlane.f32.xlu1 %v2474_v19 }
 0xea4   : > { %v1913_v21 = vpop.xlane.xlu0 %1912 }
 0xea5   : > { %v1917_v22 = vmul.f32 0.0078125, %v1913_v21 }
 0xea6   : > { %v1915_v23 = vpop.xlane.xlu1 %1914 }
 0xea7   : > { %v1919_v24 = vsub.f32 %v2473_v16, %v1917_v22  ;;  %v1918_v25 = vmul.f32 0.0078125, %v1915_v23 }
 0xea9   : > { %v1920_v26 = vsub.f32 %v2474_v19, %v1918_v25  ;;  %v1921_v27 = vmul.f32 %v1919_v24, %v1919_v24 }
 0xeab   : > { %1923 = vadd.xlane.f32.xlu0 %v1921_v27  ;;  %v1922_v50 = vmul.f32 %v1920_v26, %v1920_v26 }
 0xead   : > { %1925 = vadd.xlane.f32.xlu1 %v1922_v50 }
 0xf38   : > { %v1924_v28 = vpop.xlane.xlu0 %1923 }
 0xf39   : > { %v1927_v54 = vmul.f32 0.0078125, %v1924_v28 }
 0xf3a   : > { %v1926_v29 = vpop.xlane.xlu1 %1925 }
 0xf3b   : > { %v1929_v30 = vadd.f32 1e-05, %v1927_v54  ;;  %v1928_v31 = vmul.f32 0.0078125, %v1926_v29 }
 0xf3d   : > { %2529 = vrsqrt.f32 %v1929_v30  ;;  %v1930_v32 = vadd.f32 1e-05, %v1928_v31 }
 0xf3f   : > { %2531 = vrsqrt.f32 %v1930_v32 }
 0xf47   : > { %v2530_v33 = vpop.eup %2529 }
 0xf48   : > { %v1933_v35 = vmul.f32 %v2530_v33, %v1919_v24 }
 0xf49   : > { %v2532_v36 = vpop.eup %2531 }
 0xf4a   : > { %v1941_v38 = vmul.f32 %v2155_v34, %v1933_v35  ;;  %v1934_v39 = vmul.f32 %v2532_v36, %v1920_v26 }
 0xf4c   : > { %v1949_v40 = vadd.f32 %v2156_v37, %v1941_v38  ;;  %v1942_v41 = vmul.f32 %v2155_v34, %v1934_v39 }
 0xf4e   : > { %1951 = vst [vmem:[%s346_s21] sm:$0xff] %v1949_v40  ;;  %v1950_v42 = vadd.f32 %v2156_v37, %v1942_v41 }
 0xf50   : > { %1952 = vst [vmem:[%s346_s21 + $0x8] sm:$0xff] %v1950_v42 }
 0xf51 PF: > { %s19_s30 = sadd.s32 1, %s2541_s30  }
 0xf52   : > { %p16_p4 = scmp.ge.s32.totalorder %s19_s30, 6  }
 0xf54   :  { %18 = sbr.rel (!%p16_p4) target bundleno = 1 (0x1), region = 114 }

// kernel: seq2seq_forward.25
= control target key start
LH: loop header
LB: loop body
LE: loop exit
PB: predicated region body
PF: predicated region fallthrough
CT: control target
= control target key end

     0   :  { %v237_v60 = vlaneseq  ;;  %s522_s1 = inlined_call_operand.vmem [shape: f32[256,128], index: 1, kind: input, shape index: {}]   ;;  %s523_s0 = inlined_call_operand.vmem [shape: f32[64,128], index: 0, kind: input, shape index: {}]   ;;  %s524_s2 = inlined_call_operand.vmem [shape: f32[1,256], index: 2, kind: input, shape index: {}]   ;;  %s525_s3 = inlined_call_operand.vmem [shape: f32[64,256], index: 3, kind: output, shape index: {}]  }
   0x1   :  { %v79_v0 = vld [vmem:[%s522_s1 + $0x80] sm:$0xff]  ;;  %v80_v1 = vld [vmem:[%s522_s1 + $0x88] sm:$0xff]  ;;  %v81_v5 = vld [vmem:[%s522_s1 + $0x90] sm:$0xff] }
   0x2   :  { %v63_v2 = vld [vmem:[%s522_s1] sm:$0xff]  ;;  %v103_v3 = vpack.c.bf16 %v80_v1, %v79_v0  ;;  %v64_v4 = vld [vmem:[%s522_s1 + $0x8] sm:$0xff]  ;;  %v82_v6 = vld [vmem:[%s522_s1 + $0x98] sm:$0xff]  ;;  %v238_v61 = vshrl.u32 %v237_v60, 7 }
   0x3   :  { %v95_v7 = vpack.c.bf16 %v64_v4, %v63_v2  ;;  %v104_v8 = vpack.c.bf16 %v82_v6, %v81_v5  ;;  %v65_v9 = vld [vmem:[%s522_s1 + $0x10] sm:$0xff]  ;;  %v66_v10 = vld [vmem:[%s522_s1 + $0x18] sm:$0xff]  ;;  %v83_v11 = vld [vmem:[%s522_s1 + $0xa0] sm:$0xff] }
   0x4   :  { %283 = vmatprep.subr.bf16.mxu0 %v103_v3  ;;  %307 = vmatprep.subr.bf16.mxu1 %v103_v3  ;;  %v84_v12 = vld [vmem:[%s522_s1 + $0xa8] sm:$0xff]  ;;  %v96_v13 = vpack.c.bf16 %v66_v10, %v65_v9  ;;  %v51_v15 = vld [vmem:[%s523_s0] sm:$0xff]  ;;  %v85_v23 = vld [vmem:[%s522_s1 + $0xb0] sm:$0xff]  ;;  %v239_v62 = vsub.s32 0, %v238_v61  ;;  %v243_v0 = vsub.s32 1, %v238_v61 }
   0x5   :  { %284 = vmatpush3.bf16.xpose.msra.mxu0 %v95_v7  ;;  %315 = vmatpush3.bf16.xpose.msra.mxu1 %v95_v7  ;;  %v105_v14 = vpack.c.bf16 %v84_v12, %v83_v11  ;;  %v52_v16 = vld [vmem:[%s523_s0 + $0x8] sm:$0xff]  ;;  %v55_v17 = vld [vmem:[%s523_s0 + $0x20] sm:$0xff]  ;;  %v86_v24 = vld [vmem:[%s522_s1 + $0xb8] sm:$0xff] }
   0x6   :  { %285 = vmatprep.subr.bf16.mxu0 %v104_v8  ;;  %308 = vmatprep.subr.bf16.mxu1 %v104_v8  ;;  %v56_v18 = vld [vmem:[%s523_s0 + $0x28] sm:$0xff]  ;;  %v385_v19 = vpack.c.bf16 %v52_v16, %v51_v15  ;;  %v67_v21 = vld [vmem:[%s522_s1 + $0x20] sm:$0xff]  ;;  %v106_v26 = vpack.c.bf16 %v86_v24, %v85_v23  ;;  %v69_v27 = vld [vmem:[%s522_s1 + $0x30] sm:$0xff] }
   0x7   :  { %v387_v20 = vpack.c.bf16 %v56_v18, %v55_v17  ;;  %v68_v22 = vld [vmem:[%s522_s1 + $0x28] sm:$0xff]  ;;  %v70_v28 = vld [vmem:[%s522_s1 + $0x38] sm:$0xff]  ;;  %v87_v29 = vld [vmem:[%s522_s1 + $0xc0] sm:$0xff] }
   0x8   :  { %299 = vmatprep.mubr.bf16.mxu0 %v385_v19  ;;  %v97_v25 = vpack.c.bf16 %v68_v22, %v67_v21  ;;  %v88_v30 = vld [vmem:[%s522_s1 + $0xc8] sm:$0xff]  ;;  %v98_v31 = vpack.c.bf16 %v70_v28, %v69_v27  ;;  %v71_v33 = vld [vmem:[%s522_s1 + $0x40] sm:$0xff]  ;;  %v89_v35 = vld [vmem:[%s522_s1 + $0xd0] sm:$0xff] }
   0x9   :  { %303 = vmatprep.mubr.bf16.mxu1 %v387_v20  ;;  %v107_v32 = vpack.c.bf16 %v88_v30, %v87_v29  ;;  %v72_v34 = vld [vmem:[%s522_s1 + $0x48] sm:$0xff]  ;;  %v90_v36 = vld [vmem:[%s522_s1 + $0xd8] sm:$0xff]  ;;  %v73_v39 = vld [vmem:[%s522_s1 + $0x50] sm:$0xff] }
   0xa   :  { %v99_v37 = vpack.c.bf16 %v72_v34, %v71_v33  ;;  %v108_v38 = vpack.c.bf16 %v90_v36, %v89_v35  ;;  %v74_v40 = vld [vmem:[%s522_s1 + $0x58] sm:$0xff]  ;;  %v91_v41 = vld [vmem:[%s522_s1 + $0xe0] sm:$0xff]  ;;  %v92_v42 = vld [vmem:[%s522_s1 + $0xe8] sm:$0xff] }
   0xb   :  { %v100_v43 = vpack.c.bf16 %v74_v40, %v73_v39  ;;  %v109_v44 = vpack.c.bf16 %v92_v42, %v91_v41  ;;  %v75_v45 = vld [vmem:[%s522_s1 + $0x60] sm:$0xff]  ;;  %v76_v46 = vld [vmem:[%s522_s1 + $0x68] sm:$0xff]  ;;  %v93_v47 = vld [vmem:[%s522_s1 + $0xf0] sm:$0xff] }
   0xc   :  { %v94_v48 = vld [vmem:[%s522_s1 + $0xf8] sm:$0xff]  ;;  %v101_v49 = vpack.c.bf16 %v76_v46, %v75_v45  ;;  %v77_v51 = vld [vmem:[%s522_s1 + $0x70] sm:$0xff]  ;;  %v235_v63 = vld [vmem:[%s524_s2] sm:$0x3] }
   0xd   :  { %286 = vmatpush3.bf16.xpose.msra.mxu0 %v96_v13  ;;  %316 = vmatpush3.bf16.xpose.msra.mxu1 %v96_v13  ;;  %v110_v50 = vpack.c.bf16 %v94_v48, %v93_v47  ;;  %v78_v52 = vld [vmem:[%s522_s1 + $0x78] sm:$0xff]  ;;  %v53_v54 = vld [vmem:[%s523_s0 + $0x10] sm:$0xff]  ;;  %v240_v1 = vrot.slane %v235_v63, %v239_v62  ;;  %v244_v2 = vrot.slane %v235_v63, %v243_v0 }
   0xe   :  { %287 = vmatprep.subr.bf16.mxu0 %v105_v14  ;;  %309 = vmatprep.subr.bf16.mxu1 %v105_v14  ;;  %v102_v53 = vpack.c.bf16 %v78_v52, %v77_v51  ;;  %v54_v55 = vld [vmem:[%s523_s0 + $0x18] sm:$0xff]  ;;  %v57_v56 = vld [vmem:[%s523_s0 + $0x30] sm:$0xff] }
   0xf   :  { %v58_v57 = vld [vmem:[%s523_s0 + $0x38] sm:$0xff]  ;;  %v60_v58 = vpack.c.bf16 %v54_v55, %v53_v54 }
  0x10   :  { %v62_v59 = vpack.c.bf16 %v58_v57, %v57_v56 }
  0x15   :  { %288 = vmatpush3.bf16.xpose.msra.mxu0 %v97_v25  ;;  %317 = vmatpush3.bf16.xpose.msra.mxu1 %v97_v25 }
  0x16   :  { %289 = vmatprep.subr.bf16.mxu0 %v106_v26  ;;  %310 = vmatprep.subr.bf16.mxu1 %v106_v26 }
  0x1d   :  { %290 = vmatpush3.bf16.xpose.msra.mxu0 %v98_v31  ;;  %318 = vmatpush3.bf16.xpose.msra.mxu1 %v98_v31 }
  0x1e   :  { %291 = vmatprep.subr.bf16.mxu0 %v107_v32  ;;  %311 = vmatprep.subr.bf16.mxu1 %v107_v32 }
  0x25   :  { %292 = vmatpush3.bf16.xpose.msra.mxu0 %v99_v37  ;;  %319 = vmatpush3.bf16.xpose.msra.mxu1 %v99_v37 }
  0x26   :  { %293 = vmatprep.subr.bf16.mxu0 %v108_v38  ;;  %312 = vmatprep.subr.bf16.mxu1 %v108_v38 }
  0x2d   :  { %294 = vmatpush3.bf16.xpose.msra.mxu0 %v100_v43  ;;  %320 = vmatpush3.bf16.xpose.msra.mxu1 %v100_v43 }
  0x2e   :  { %295 = vmatprep.subr.bf16.mxu0 %v109_v44  ;;  %313 = vmatprep.subr.bf16.mxu1 %v109_v44 }
  0x35   :  { %296 = vmatpush3.bf16.xpose.msra.mxu0 %v101_v49  ;;  %321 = vmatpush3.bf16.xpose.msra.mxu1 %v101_v49 }
  0x36   :  { %297 = vmatprep.subr.bf16.mxu0 %v110_v50  ;;  %314 = vmatprep.subr.bf16.mxu1 %v110_v50 }
  0x3d   :  { %298 = vmatpush3.bf16.xpose.msra.mxu0 %v102_v53  ;;  %322 = vmatpush3.bf16.xpose.msra.mxu1 %v102_v53 }
  0x44   :  { %300 = vmatmul.mubr.bf16.vlgmr.msra.gmra.mrb[0].mxu0 %v385_v19  ;;  %304 = vmatmul.mubr.bf16.vlgmr.msra.gmra.mrb[0].mxu1 %v387_v20 }
  0x45   :  { %301 = vmatprep.mubr.bf16.mxu0 %v60_v58  ;;  %305 = vmatprep.mubr.bf16.mxu1 %v62_v59 }
  0x4c   :  { %302 = vmatmul.mubr.bf16.gmra.mrb[4].mxu0 %v60_v58  ;;  %306 = vmatmul.mubr.bf16.gmra.mrb[4].mxu1 %v62_v59 }
 0x117   :  { %v145_v3 = vpop.f32.mrb[0].mxu0  ;;  %v165_v4 = vpop.f32.mrb[0].mxu1 }
 0x118   :  { %v247_v5 = vadd.f32 %v240_v1, %v145_v3  ;;  %v255_v6 = vadd.f32 %v240_v1, %v165_v4  ;;  %v147_v7 = vpop.f32.mrb[1].mxu0  ;;  %v167_v8 = vpop.f32.mrb[1].mxu1 }
 0x119   :  { %v248_v9 = vadd.f32 %v244_v2, %v147_v7  ;;  %v256_v10 = vadd.f32 %v244_v2, %v167_v8  ;;  %v149_v11 = vpop.f32.mrb[2].mxu0  ;;  %v169_v12 = vpop.f32.mrb[2].mxu1 }
 0x11a   :  { %263 = vst [vmem:[%s525_s3] sm:$0xff] %v247_v5  ;;  %271 = vst [vmem:[%s525_s3 + $0x40] sm:$0xff] %v255_v6  ;;  %v249_v13 = vadd.f32 %v240_v1, %v149_v11  ;;  %v257_v14 = vadd.f32 %v240_v1, %v169_v12  ;;  %v151_v15 = vpop.f32.mrb[3].mxu0  ;;  %v171_v16 = vpop.f32.mrb[3].mxu1 }
 0x11b   :  { %264 = vst [vmem:[%s525_s3 + $0x8] sm:$0xff] %v248_v9  ;;  %272 = vst [vmem:[%s525_s3 + $0x48] sm:$0xff] %v256_v10  ;;  %v250_v17 = vadd.f32 %v244_v2, %v151_v15  ;;  %v258_v18 = vadd.f32 %v244_v2, %v171_v16 }
 0x11c   :  { %265 = vst [vmem:[%s525_s3 + $0x10] sm:$0xff] %v249_v13  ;;  %273 = vst [vmem:[%s525_s3 + $0x50] sm:$0xff] %v257_v14 }
 0x11d   :  { %266 = vst [vmem:[%s525_s3 + $0x18] sm:$0xff] %v250_v17  ;;  %274 = vst [vmem:[%s525_s3 + $0x58] sm:$0xff] %v258_v18 }
 0x11f   :  { %v155_v19 = vpop.f32.mrb[4].mxu0  ;;  %v175_v20 = vpop.f32.mrb[4].mxu1 }
 0x120   :  { %v251_v21 = vadd.f32 %v240_v1, %v155_v19  ;;  %v259_v22 = vadd.f32 %v240_v1, %v175_v20  ;;  %v157_v23 = vpop.f32.mrb[5].mxu0  ;;  %v177_v24 = vpop.f32.mrb[5].mxu1 }
 0x121   :  { %v252_v25 = vadd.f32 %v244_v2, %v157_v23  ;;  %v260_v26 = vadd.f32 %v244_v2, %v177_v24  ;;  %v159_v27 = vpop.f32.mrb[6].mxu0  ;;  %v179_v28 = vpop.f32.mrb[6].mxu1 }
 0x122   :  { %267 = vst [vmem:[%s525_s3 + $0x20] sm:$0xff] %v251_v21  ;;  %275 = vst [vmem:[%s525_s3 + $0x60] sm:$0xff] %v259_v22  ;;  %v253_v29 = vadd.f32 %v240_v1, %v159_v27  ;;  %v261_v30 = vadd.f32 %v240_v1, %v179_v28  ;;  %v161_v31 = vpop.f32.mrb[7].mxu0  ;;  %v181_v32 = vpop.f32.mrb[7].mxu1 }
 0x123   :  { %268 = vst [vmem:[%s525_s3 + $0x28] sm:$0xff] %v252_v25  ;;  %276 = vst [vmem:[%s525_s3 + $0x68] sm:$0xff] %v260_v26  ;;  %v254_v33 = vadd.f32 %v244_v2, %v161_v31  ;;  %v262_v34 = vadd.f32 %v244_v2, %v181_v32 }
 0x124   :  { %269 = vst [vmem:[%s525_s3 + $0x30] sm:$0xff] %v253_v29  ;;  %277 = vst [vmem:[%s525_s3 + $0x70] sm:$0xff] %v261_v30 }
 0x125   :  { %270 = vst [vmem:[%s525_s3 + $0x38] sm:$0xff] %v254_v33  ;;  %278 = vst [vmem:[%s525_s3 + $0x78] sm:$0xff] %v262_v34 }

</bundles_post_ra>
